<compile_context>
chip_gen: v5e
topology: v5e:2x2
jax: 0.10.0
libtpu: 0.0.40
codegen_flags: <defaults>
</compile_context>

<pallas_src>
import jax
import jax.numpy as jnp
from jax import lax
from jax.experimental import pallas as pl
from jax.experimental.pallas import tpu as pltpu

LANE = 128  # TPU lane width; channel axes are zero-padded to this


# ----------------------------------------------------------------------------
# Pallas kernels
# ----------------------------------------------------------------------------
def conv1_mm_bn_relu_kernel(p_ref, w_ref, scale_ref, shift_ref, o_ref):
    """Fused (im2col-matmul conv1) + folded BatchNorm + ReLU for one M-tile.

    p_ref:     (TM, Kp)  bf16 im2col patches (K padded 27 -> 32)
    w_ref:     (Kp, Cp)  bf16 conv weight (Cout padded to 128), grid-resident
    scale_ref: (1,  Cp)  f32 folded BN scale  = gamma / sqrt(var + eps)
    shift_ref: (1,  Cp)  f32 folded BN shift  = beta - mean * scale
    o_ref:     (TM, Cp)  bf16 activation tile (lane-dense store)
    """
    acc = jnp.dot(p_ref[...], w_ref[...], preferred_element_type=jnp.float32)
    y = acc * scale_ref[...] + shift_ref[...]          # f32 epilogue
    o_ref[...] = jnp.maximum(y, 0.0).astype(o_ref.dtype)


def conv2_gap_kernel(x_ref, w_ref, scale_ref, shift_ref, o_ref):
    """Fused 3x3 conv (in-kernel gather, no im2col) + BN + ReLU + global
    average pool for one batch element.

    x_ref:     (1, H+2, W+2, Cp1) bf16 zero-padded NHWC activation slab
    w_ref:     (9, Cp1, Cp2)      bf16 weights, one (Cin, Cout) slab per tap
    scale_ref: (1, Cp2)           f32
    shift_ref: (1, Cp2)           f32
    o_ref:     (1, 1, Cp2)        f32 pooled features for this image
    """
    Hp, Wp, Cp1 = x_ref.shape[1], x_ref.shape[2], x_ref.shape[3]
    H, W = Hp - 2, Wp - 2
    Cp2 = o_ref.shape[-1]

    acc = jnp.zeros((H * W, Cp2), jnp.float32)
    # Nine shifted bf16 MXU dots accumulated in f32 — replaces the 9x im2col
    # HBM expansion of the previous version.
    for dh in range(3):
        for dw in range(3):
            patch = x_ref[0, dh:dh + H, dw:dw + W, :].reshape(H * W, Cp1)
            acc = acc + jnp.dot(patch, w_ref[dh * 3 + dw],
                                preferred_element_type=jnp.float32)

    y = acc * scale_ref[...] + shift_ref[...]          # f32 epilogue
    y = jnp.maximum(y, 0.0)
    # Fused global average pool (f32) — conv2 activation never hits HBM.
    o_ref[...] = jnp.mean(y, axis=0, keepdims=True).reshape(1, 1, Cp2)


# ----------------------------------------------------------------------------
# Wrappers (glue: im2col / pad / reshape in plain JAX, compute in Pallas)
# ----------------------------------------------------------------------------
def conv1_block(x_nhwc, w_kp_cp, scale_p, shift_p, *, tm=256):
    """3x3 stride-1 'same' conv + folded BN + ReLU via im2col + tiled matmul.

    x_nhwc:  (B, H, W, 3)  bf16
    w_kp_cp: (Kp, Cp)      bf16, (kh, kw, cin)-flattened & zero-padded weight
    Returns  (B, H, W, Cp) bf16, Cout zero-padded to Cp=128 (lane-dense).
    """
    B, H, W, Cin = x_nhwc.shape
    Kp, Cp = w_kp_cp.shape

    # im2col in plain JAX (only here, where Cin=3; the 9x expansion is tiny).
    xp = jnp.pad(x_nhwc, ((0, 0), (1, 1), (1, 1), (0, 0)))
    cols = [xp[:, dh:dh + H, dw:dw + W, :] for dh in range(3) for dw in range(3)]
    patches = jnp.concatenate(cols, axis=-1).reshape(B * H * W, 9 * Cin)
    # Pad K (27 -> 32) so the contraction axis is sublane-aligned; bf16 feed.
    patches = jnp.pad(patches, ((0, 0), (0, Kp - 9 * Cin))).astype(jnp.bfloat16)

    M = B * H * W
    tm = min(tm, M)                       # multiple of 8 at these shapes
    n_m = pl.cdiv(M, tm)
    Mp = n_m * tm
    if Mp != M:
        patches = jnp.pad(patches, ((0, Mp - M), (0, 0)))

    out = pl.pallas_call(
        conv1_mm_bn_relu_kernel,
        out_shape=jax.ShapeDtypeStruct((Mp, Cp), jnp.bfloat16),
        grid=(n_m,),
        in_specs=[
            pl.BlockSpec((tm, Kp), lambda i: (i, 0)),    # streamed over M
            pl.BlockSpec((Kp, Cp), lambda i: (0, 0)),    # resident weight
            pl.BlockSpec((1, Cp), lambda i: (0, 0)),
            pl.BlockSpec((1, Cp), lambda i: (0, 0)),
        ],
        out_specs=pl.BlockSpec((tm, Cp), lambda i: (i, 0)),
        compiler_params=pltpu.CompilerParams(
            dimension_semantics=("parallel",)),
    )(patches, w_kp_cp, scale_p, shift_p)

    return out[:M].reshape(B, H, W, Cp)


def conv2_gap_block(a_nhwc, w_taps, scale_p, shift_p):
    """3x3 'same' conv + BN + ReLU + global average pool, fused per image.

    a_nhwc: (B, H, W, Cp1) bf16 channel-padded activations
    w_taps: (9, Cp1, Cp2)  bf16 weights (one slab per 3x3 tap)
    Returns (B, Cp2) f32 pooled features (Cout zero-padded to 128).
    """
    B, H, W, Cp1 = a_nhwc.shape
    _, _, Cp2 = w_taps.shape

    # Zero-pad the spatial border once (halo for the in-kernel 3x3 gather).
    a_pad = jnp.pad(a_nhwc, ((0, 0), (1, 1), (1, 1), (0, 0)))

    out = pl.pallas_call(
        conv2_gap_kernel,
        out_shape=jax.ShapeDtypeStruct((B, 1, Cp2), jnp.float32),
        grid=(B,),
        in_specs=[
            pl.BlockSpec((1, H + 2, W + 2, Cp1), lambda b: (b, 0, 0, 0)),
            pl.BlockSpec((9, Cp1, Cp2), lambda b: (0, 0, 0)),   # resident
            pl.BlockSpec((1, Cp2), lambda b: (0, 0)),
            pl.BlockSpec((1, Cp2), lambda b: (0, 0)),
        ],
        out_specs=pl.BlockSpec((1, 1, Cp2), lambda b: (b, 0, 0)),
        compiler_params=pltpu.CompilerParams(
            dimension_semantics=("parallel",)),
    )(a_pad, w_taps, scale_p, shift_p)

    return out.reshape(B, Cp2)


# ----------------------------------------------------------------------------
# Parameters (deterministic, synthetic) + kernel-layout conversion
# ----------------------------------------------------------------------------
def make_raw_block(key, cin, cout, eps=1e-5):
    k_w, k_g, k_b, k_m, k_v = jax.random.split(key, 5)
    # PyTorch Conv2d layout (Cout, Cin, KH, KW).
    w_oihw = jax.random.normal(k_w, (cout, cin, 3, 3), jnp.float32) * 0.1
    gamma = 1.0 + 0.1 * jax.random.normal(k_g, (cout,), jnp.float32)
    beta = 0.1 * jax.random.normal(k_b, (cout,), jnp.float32)
    mean = 0.1 * jax.random.normal(k_m, (cout,), jnp.float32)
    var = jnp.abs(jax.random.normal(k_v, (cout,), jnp.float32)) + 0.5
    scale = gamma / jnp.sqrt(var + eps)     # folded eval-mode BN
    shift = beta - mean * scale
    return dict(w_oihw=w_oihw, scale=scale, shift=shift)


def conv1_kernel_params(raw, cout_pad):
    w_oihw = raw["w_oihw"]
    cout, cin, kh, kw = w_oihw.shape
    w_hwio = jnp.transpose(w_oihw, (2, 3, 1, 0))              # (3,3,Cin,Cout)
    w_mat = w_hwio.reshape(kh * kw * cin, cout)               # (27, Cout), (kh,kw,cin)
    kp = 32                                                   # pad K 27 -> 32
    w_mat = jnp.pad(w_mat, ((0, kp - kh * kw * cin), (0, cout_pad - cout)))
    scale_p = jnp.pad(raw["scale"], (0, cout_pad - cout),
                      constant_values=1.0).reshape(1, cout_pad)
    shift_p = jnp.pad(raw["shift"], (0, cout_pad - cout)).reshape(1, cout_pad)
    return w_mat.astype(jnp.bfloat16), scale_p, shift_p


def conv2_kernel_params(raw, cin_pad, cout_pad):
    w_oihw = raw["w_oihw"]
    cout, cin, kh, kw = w_oihw.shape
    w_hwio = jnp.transpose(w_oihw, (2, 3, 1, 0))              # (3,3,Cin,Cout)
    w_hwio = jnp.pad(w_hwio, ((0, 0), (0, 0),
                              (0, cin_pad - cin), (0, cout_pad - cout)))
    w_taps = w_hwio.reshape(kh * kw, cin_pad, cout_pad)       # (9, Cp1, Cp2)
    scale_p = jnp.pad(raw["scale"], (0, cout_pad - cout),
                      constant_values=1.0).reshape(1, cout_pad)
    shift_p = jnp.pad(raw["shift"], (0, cout_pad - cout)).reshape(1, cout_pad)
    return w_taps.astype(jnp.bfloat16), scale_p, shift_p


# ----------------------------------------------------------------------------
# Forward pass (feature extractor) + pure-JAX reference
# ----------------------------------------------------------------------------
def timm_features_forward(x_nchw, kernel_params, num_features):
    (w1, s1, b1), (w2, s2, b2) = kernel_params
    x = jnp.transpose(x_nchw, (0, 2, 3, 1)).astype(jnp.bfloat16)   # NCHW -> NHWC
    a1 = conv1_block(x, w1, s1, b1)            # (B, H, W, 128) bf16
    feats = conv2_gap_block(a1, w2, s2, b2)    # (B, 128) f32, GAP fused in-kernel
    return feats[:, :num_features]             # un-pad to (B, C2)


def reference_forward(x_nchw, raw_params):
    x = jnp.transpose(x_nchw, (0, 2, 3, 1)).astype(jnp.float32)
    for raw in raw_params:
        w = jnp.transpose(raw["w_oihw"], (2, 3, 1, 0))             # HWIO
        y = lax.conv_general_dilated(
            x, w, window_strides=(1, 1), padding="SAME",
            dimension_numbers=("NHWC", "HWIO", "NHWC"))
        y = y * raw["scale"] + raw["shift"]
        x = jnp.maximum(y, 0.0)
    return jnp.mean(x, axis=(1, 2))


# ----------------------------------------------------------------------------
# Main
# ----------------------------------------------------------------------------
if __name__ == "__main__":
    key = jax.random.PRNGKey(0)
    k_x, k_p = jax.random.split(key)

    B, Cin, H, W = 2, 3, 16, 16        # small RGB image batch (NCHW)
    C1, C2 = 32, 64

    x = jax.random.normal(k_x, (B, Cin, H, W), jnp.float32)

    k1, k2 = jax.random.split(k_p)
    raw1 = make_raw_block(k1, Cin, C1)
    raw2 = make_raw_block(k2, C1, C2)
    kparams = (conv1_kernel_params(raw1, LANE),
               conv2_kernel_params(raw2, LANE, LANE))

    fwd = jax.jit(lambda inp: timm_features_forward(inp, kparams, C2))
    feats = jax.block_until_ready(fwd(x))

    assert feats.shape == (B, C2), feats.shape
    assert feats.dtype == jnp.float32

    # Numerical check against a pure-JAX f32 reference (bf16 MXU tolerance).
    ref = reference_forward(x, [raw1, raw2])
    assert jnp.allclose(feats, ref, atol=5e-2, rtol=5e-2), (
        float(jnp.max(jnp.abs(feats - ref))))

    print("KERNEL_OK")
</pallas_src>

<mosaic_0001>
module attributes {stable_mosaic.version = 11 : i64} {
  func.func @conv1_mm_bn_relu_kernel(%arg0: i32, %arg1: memref<256x32xbf16, #tpu.memory_space<vmem>>, %arg2: memref<32x128xbf16, #tpu.memory_space<vmem>>, %arg3: memref<1x128xf32, #tpu.memory_space<vmem>>, %arg4: memref<1x128xf32, #tpu.memory_space<vmem>>, %arg5: memref<256x128xbf16, #tpu.memory_space<vmem>>) attributes {dimension_semantics = [#tpu.dimension_semantics<parallel>], iteration_bounds = array<i64: 2>, scalar_prefetch = 0 : i64, scratch_operands = 0 : i64, tpu.core_type = #tpu.core_type<tc>, window_params = [{transform_indices = @transform_0, window_bounds = array<i64: 256, 32>}, {pipeline_mode = #tpu.pipeline_mode<synchronous>, transform_indices = @transform_1, window_bounds = array<i64: 32, 128>}, {pipeline_mode = #tpu.pipeline_mode<synchronous>, transform_indices = @transform_2, window_bounds = array<i64: 1, 128>}, {pipeline_mode = #tpu.pipeline_mode<synchronous>, transform_indices = @transform_3, window_bounds = array<i64: 1, 128>}, {transform_indices = @transform_4, window_bounds = array<i64: 256, 128>}]} {
    %c0 = arith.constant 0 : index
    %c0_0 = arith.constant 0 : index
    %0 = vector.load %arg1[%c0, %c0_0] : memref<256x32xbf16, #tpu.memory_space<vmem>>, vector<256x32xbf16>
    %c0_1 = arith.constant 0 : index
    %c0_2 = arith.constant 0 : index
    %1 = vector.load %arg2[%c0_1, %c0_2] : memref<32x128xbf16, #tpu.memory_space<vmem>>, vector<32x128xbf16>
    %cst = arith.constant dense<0.000000e+00> : vector<256x128xf32>
    %2 = tpu.matmul %0, %1, %cst {dimension_numbers = #tpu.dot_dimension_numbers<[1], [0], [0], [1], [0, 0, 1, 1], [], []>} : vector<256x32xbf16>, vector<32x128xbf16>, vector<256x128xf32> -> vector<256x128xf32>
    %c0_3 = arith.constant 0 : index
    %c0_4 = arith.constant 0 : index
    %3 = vector.load %arg3[%c0_3, %c0_4] : memref<1x128xf32, #tpu.memory_space<vmem>>, vector<1x128xf32>
    %4 = vector.broadcast %3 : vector<1x128xf32> to vector<256x128xf32>
    %5 = arith.mulf %2, %4 : vector<256x128xf32>
    %c0_5 = arith.constant 0 : index
    %c0_6 = arith.constant 0 : index
    %6 = vector.load %arg4[%c0_5, %c0_6] : memref<1x128xf32, #tpu.memory_space<vmem>>, vector<1x128xf32>
    %7 = vector.broadcast %6 : vector<1x128xf32> to vector<256x128xf32>
    %8 = arith.addf %5, %7 : vector<256x128xf32>
    %cst_7 = arith.constant 0.000000e+00 : f32
    %9 = vector.broadcast %cst_7 : f32 to vector<256x128xf32>
    %10 = arith.maximumf %8, %9 : vector<256x128xf32>
    %11 = arith.truncf %10 : vector<256x128xf32> to vector<256x128xbf16>
    %c0_8 = arith.constant 0 : index
    %c0_9 = arith.constant 0 : index
    %12 = vector.load %arg5[%c0_8, %c0_9] : memref<256x128xbf16, #tpu.memory_space<vmem>>, vector<256x128xbf16>
    tpu.vector_store %arg5[%c0_8, %c0_9], %11 {strides = array<i32>} : memref<256x128xbf16, #tpu.memory_space<vmem>>, vector<256x128xbf16>,
    return
  }
  func.func @transform_0(%arg0: i32) -> (i32, i32) {
    %c0_i32 = arith.constant 0 : i32
    %c0_i32_0 = arith.constant 0 : i32
    return %arg0, %c0_i32 : i32, i32
  }
  func.func @transform_1(%arg0: i32) -> (i32, i32) {
    %c0_i32 = arith.constant 0 : i32
    %c0_i32_0 = arith.constant 0 : i32
    %c0_i32_1 = arith.constant 0 : i32
    return %c0_i32, %c0_i32_0 : i32, i32
  }
  func.func @transform_2(%arg0: i32) -> (i32, i32) {
    %c0_i32 = arith.constant 0 : i32
    %c0_i32_0 = arith.constant 0 : i32
    %c0_i32_1 = arith.constant 0 : i32
    return %c0_i32, %c0_i32_0 : i32, i32
  }
  func.func @transform_3(%arg0: i32) -> (i32, i32) {
    %c0_i32 = arith.constant 0 : i32
    %c0_i32_0 = arith.constant 0 : i32
    %c0_i32_1 = arith.constant 0 : i32
    return %c0_i32, %c0_i32_0 : i32, i32
  }
  func.func @transform_4(%arg0: i32) -> (i32, i32) {
    %c0_i32 = arith.constant 0 : i32
    %c0_i32_0 = arith.constant 0 : i32
    return %arg0, %c0_i32 : i32, i32
  }
}

module attributes {stable_mosaic.version = 11 : i64} {
  func.func @conv2_gap_kernel(%arg0: i32, %arg1: memref<1x18x18x128xbf16, #tpu.memory_space<vmem>>, %arg2: memref<9x128x128xbf16, #tpu.memory_space<vmem>>, %arg3: memref<1x128xf32, #tpu.memory_space<vmem>>, %arg4: memref<1x128xf32, #tpu.memory_space<vmem>>, %arg5: memref<1x1x128xf32, #tpu.memory_space<vmem>>) attributes {dimension_semantics = [#tpu.dimension_semantics<parallel>], iteration_bounds = array<i64: 2>, scalar_prefetch = 0 : i64, scratch_operands = 0 : i64, tpu.core_type = #tpu.core_type<tc>, window_params = [{transform_indices = @transform_0, window_bounds = array<i64: 1, 18, 18, 128>}, {pipeline_mode = #tpu.pipeline_mode<synchronous>, transform_indices = @transform_1, window_bounds = array<i64: 9, 128, 128>}, {pipeline_mode = #tpu.pipeline_mode<synchronous>, transform_indices = @transform_2, window_bounds = array<i64: 1, 128>}, {pipeline_mode = #tpu.pipeline_mode<synchronous>, transform_indices = @transform_3, window_bounds = array<i64: 1, 128>}, {transform_indices = @transform_4, window_bounds = array<i64: 1, 1, 128>}]} {
    %cst = arith.constant 0.000000e+00 : f32
    %0 = vector.broadcast %cst : f32 to vector<256x128xf32>
    %c0 = arith.constant 0 : index
    %c0_0 = arith.constant 0 : index
    %c0_1 = arith.constant 0 : index
    %c0_2 = arith.constant 0 : index
    %1 = vector.load %arg1[%c0, %c0_0, %c0_1, %c0_2] : memref<1x18x18x128xbf16, #tpu.memory_space<vmem>>, vector<1x16x16x128xbf16>
    %2 = vector.shape_cast %1 : vector<1x16x16x128xbf16> to vector<16x16x128xbf16>
    %3 = vector.shape_cast %2 : vector<16x16x128xbf16> to vector<256x128xbf16>
    %c0_3 = arith.constant 0 : index
    %c0_4 = arith.constant 0 : index
    %c0_5 = arith.constant 0 : index
    %4 = vector.load %arg2[%c0_3, %c0_4, %c0_5] : memref<9x128x128xbf16, #tpu.memory_space<vmem>>, vector<1x128x128xbf16>
    %5 = vector.shape_cast %4 : vector<1x128x128xbf16> to vector<128x128xbf16>
    %cst_6 = arith.constant dense<0.000000e+00> : vector<256x128xf32>
    %6 = tpu.matmul %3, %5, %cst_6 {dimension_numbers = #tpu.dot_dimension_numbers<[1], [0], [0], [1], [0, 0, 1, 1], [], []>} : vector<256x128xbf16>, vector<128x128xbf16>, vector<256x128xf32> -> vector<256x128xf32>
    %7 = arith.addf %0, %6 : vector<256x128xf32>
    %c0_7 = arith.constant 0 : index
    %c0_8 = arith.constant 0 : index
    %c1 = arith.constant 1 : index
    %c0_9 = arith.constant 0 : index
    %8 = vector.load %arg1[%c0_7, %c0_8, %c1, %c0_9] : memref<1x18x18x128xbf16, #tpu.memory_space<vmem>>, vector<1x16x16x128xbf16>
    %9 = vector.shape_cast %8 : vector<1x16x16x128xbf16> to vector<16x16x128xbf16>
    %10 = vector.shape_cast %9 : vector<16x16x128xbf16> to vector<256x128xbf16>
    %c1_10 = arith.constant 1 : index
    %c0_11 = arith.constant 0 : index
    %c0_12 = arith.constant 0 : index
    %11 = vector.load %arg2[%c1_10, %c0_11, %c0_12] : memref<9x128x128xbf16, #tpu.memory_space<vmem>>, vector<1x128x128xbf16>
    %12 = vector.shape_cast %11 : vector<1x128x128xbf16> to vector<128x128xbf16>
    %cst_13 = arith.constant dense<0.000000e+00> : vector<256x128xf32>
    %13 = tpu.matmul %10, %12, %cst_13 {dimension_numbers = #tpu.dot_dimension_numbers<[1], [0], [0], [1], [0, 0, 1, 1], [], []>} : vector<256x128xbf16>, vector<128x128xbf16>, vector<256x128xf32> -> vector<256x128xf32>
    %14 = arith.addf %7, %13 : vector<256x128xf32>
    %c0_14 = arith.constant 0 : index
    %c0_15 = arith.constant 0 : index
    %c2 = arith.constant 2 : index
    %c0_16 = arith.constant 0 : index
    %15 = vector.load %arg1[%c0_14, %c0_15, %c2, %c0_16] : memref<1x18x18x128xbf16, #tpu.memory_space<vmem>>, vector<1x16x16x128xbf16>
    %16 = vector.shape_cast %15 : vector<1x16x16x128xbf16> to vector<16x16x128xbf16>
    %17 = vector.shape_cast %16 : vector<16x16x128xbf16> to vector<256x128xbf16>
    %c2_17 = arith.constant 2 : index
    %c0_18 = arith.constant 0 : index
    %c0_19 = arith.constant 0 : index
    %18 = vector.load %arg2[%c2_17, %c0_18, %c0_19] : memref<9x128x128xbf16, #tpu.memory_space<vmem>>, vector<1x128x128xbf16>
    %19 = vector.shape_cast %18 : vector<1x128x128xbf16> to vector<128x128xbf16>
    %cst_20 = arith.constant dense<0.000000e+00> : vector<256x128xf32>
    %20 = tpu.matmul %17, %19, %cst_20 {dimension_numbers = #tpu.dot_dimension_numbers<[1], [0], [0], [1], [0, 0, 1, 1], [], []>} : vector<256x128xbf16>, vector<128x128xbf16>, vector<256x128xf32> -> vector<256x128xf32>
    %21 = arith.addf %14, %20 : vector<256x128xf32>
    %c0_21 = arith.constant 0 : index
    %c1_22 = arith.constant 1 : index
    %c0_23 = arith.constant 0 : index
    %c0_24 = arith.constant 0 : index
    %22 = vector.load %arg1[%c0_21, %c1_22, %c0_23, %c0_24] : memref<1x18x18x128xbf16, #tpu.memory_space<vmem>>, vector<1x16x16x128xbf16>
    %23 = vector.shape_cast %22 : vector<1x16x16x128xbf16> to vector<16x16x128xbf16>
    %24 = vector.shape_cast %23 : vector<16x16x128xbf16> to vector<256x128xbf16>
    %c3 = arith.constant 3 : index
    %c0_25 = arith.constant 0 : index
    %c0_26 = arith.constant 0 : index
    %25 = vector.load %arg2[%c3, %c0_25, %c0_26] : memref<9x128x128xbf16, #tpu.memory_space<vmem>>, vector<1x128x128xbf16>
    %26 = vector.shape_cast %25 : vector<1x128x128xbf16> to vector<128x128xbf16>
    %cst_27 = arith.constant dense<0.000000e+00> : vector<256x128xf32>
    %27 = tpu.matmul %24, %26, %cst_27 {dimension_numbers = #tpu.dot_dimension_numbers<[1], [0], [0], [1], [0, 0, 1, 1], [], []>} : vector<256x128xbf16>, vector<128x128xbf16>, vector<256x128xf32> -> vector<256x128xf32>
    %28 = arith.addf %21, %27 : vector<256x128xf32>
    %c0_28 = arith.constant 0 : index
    %c1_29 = arith.constant 1 : index
    %c1_30 = arith.constant 1 : index
    %c0_31 = arith.constant 0 : index
    %29 = vector.load %arg1[%c0_28, %c1_29, %c1_30, %c0_31] : memref<1x18x18x128xbf16, #tpu.memory_space<vmem>>, vector<1x16x16x128xbf16>
    %30 = vector.shape_cast %29 : vector<1x16x16x128xbf16> to vector<16x16x128xbf16>
    %31 = vector.shape_cast %30 : vector<16x16x128xbf16> to vector<256x128xbf16>
    %c4 = arith.constant 4 : index
    %c0_32 = arith.constant 0 : index
    %c0_33 = arith.constant 0 : index
    %32 = vector.load %arg2[%c4, %c0_32, %c0_33] : memref<9x128x128xbf16, #tpu.memory_space<vmem>>, vector<1x128x128xbf16>
    %33 = vector.shape_cast %32 : vector<1x128x128xbf16> to vector<128x128xbf16>
    %cst_34 = arith.constant dense<0.000000e+00> : vector<256x128xf32>
    %34 = tpu.matmul %31, %33, %cst_34 {dimension_numbers = #tpu.dot_dimension_numbers<[1], [0], [0], [1], [0, 0, 1, 1], [], []>} : vector<256x128xbf16>, vector<128x128xbf16>, vector<256x128xf32> -> vector<256x128xf32>
    %35 = arith.addf %28, %34 : vector<256x128xf32>
    %c0_35 = arith.constant 0 : index
    %c1_36 = arith.constant 1 : index
    %c2_37 = arith.constant 2 : index
    %c0_38 = arith.constant 0 : index
    %36 = vector.load %arg1[%c0_35, %c1_36, %c2_37, %c0_38] : memref<1x18x18x128xbf16, #tpu.memory_space<vmem>>, vector<1x16x16x128xbf16>
    %37 = vector.shape_cast %36 : vector<1x16x16x128xbf16> to vector<16x16x128xbf16>
    %38 = vector.shape_cast %37 : vector<16x16x128xbf16> to vector<256x128xbf16>
    %c5 = arith.constant 5 : index
    %c0_39 = arith.constant 0 : index
    %c0_40 = arith.constant 0 : index
    %39 = vector.load %arg2[%c5, %c0_39, %c0_40] : memref<9x128x128xbf16, #tpu.memory_space<vmem>>, vector<1x128x128xbf16>
    %40 = vector.shape_cast %39 : vector<1x128x128xbf16> to vector<128x128xbf16>
    %cst_41 = arith.constant dense<0.000000e+00> : vector<256x128xf32>
    %41 = tpu.matmul %38, %40, %cst_41 {dimension_numbers = #tpu.dot_dimension_numbers<[1], [0], [0], [1], [0, 0, 1, 1], [], []>} : vector<256x128xbf16>, vector<128x128xbf16>, vector<256x128xf32> -> vector<256x128xf32>
    %42 = arith.addf %35, %41 : vector<256x128xf32>
    %c0_42 = arith.constant 0 : index
    %c2_43 = arith.constant 2 : index
    %c0_44 = arith.constant 0 : index
    %c0_45 = arith.constant 0 : index
    %43 = vector.load %arg1[%c0_42, %c2_43, %c0_44, %c0_45] : memref<1x18x18x128xbf16, #tpu.memory_space<vmem>>, vector<1x16x16x128xbf16>
    %44 = vector.shape_cast %43 : vector<1x16x16x128xbf16> to vector<16x16x128xbf16>
    %45 = vector.shape_cast %44 : vector<16x16x128xbf16> to vector<256x128xbf16>
    %c6 = arith.constant 6 : index
    %c0_46 = arith.constant 0 : index
    %c0_47 = arith.constant 0 : index
    %46 = vector.load %arg2[%c6, %c0_46, %c0_47] : memref<9x128x128xbf16, #tpu.memory_space<vmem>>, vector<1x128x128xbf16>
    %47 = vector.shape_cast %46 : vector<1x128x128xbf16> to vector<128x128xbf16>
    %cst_48 = arith.constant dense<0.000000e+00> : vector<256x128xf32>
    %48 = tpu.matmul %45, %47, %cst_48 {dimension_numbers = #tpu.dot_dimension_numbers<[1], [0], [0], [1], [0, 0, 1, 1], [], []>} : vector<256x128xbf16>, vector<128x128xbf16>, vector<256x128xf32> -> vector<256x128xf32>
    %49 = arith.addf %42, %48 : vector<256x128xf32>
    %c0_49 = arith.constant 0 : index
    %c2_50 = arith.constant 2 : index
    %c1_51 = arith.constant 1 : index
    %c0_52 = arith.constant 0 : index
    %50 = vector.load %arg1[%c0_49, %c2_50, %c1_51, %c0_52] : memref<1x18x18x128xbf16, #tpu.memory_space<vmem>>, vector<1x16x16x128xbf16>
    %51 = vector.shape_cast %50 : vector<1x16x16x128xbf16> to vector<16x16x128xbf16>
    %52 = vector.shape_cast %51 : vector<16x16x128xbf16> to vector<256x128xbf16>
    %c7 = arith.constant 7 : index
    %c0_53 = arith.constant 0 : index
    %c0_54 = arith.constant 0 : index
    %53 = vector.load %arg2[%c7, %c0_53, %c0_54] : memref<9x128x128xbf16, #tpu.memory_space<vmem>>, vector<1x128x128xbf16>
    %54 = vector.shape_cast %53 : vector<1x128x128xbf16> to vector<128x128xbf16>
    %cst_55 = arith.constant dense<0.000000e+00> : vector<256x128xf32>
    %55 = tpu.matmul %52, %54, %cst_55 {dimension_numbers = #tpu.dot_dimension_numbers<[1], [0], [0], [1], [0, 0, 1, 1], [], []>} : vector<256x128xbf16>, vector<128x128xbf16>, vector<256x128xf32> -> vector<256x128xf32>
    %56 = arith.addf %49, %55 : vector<256x128xf32>
    %c0_56 = arith.constant 0 : index
    %c2_57 = arith.constant 2 : index
    %c2_58 = arith.constant 2 : index
    %c0_59 = arith.constant 0 : index
    %57 = vector.load %arg1[%c0_56, %c2_57, %c2_58, %c0_59] : memref<1x18x18x128xbf16, #tpu.memory_space<vmem>>, vector<1x16x16x128xbf16>
    %58 = vector.shape_cast %57 : vector<1x16x16x128xbf16> to vector<16x16x128xbf16>
    %59 = vector.shape_cast %58 : vector<16x16x128xbf16> to vector<256x128xbf16>
    %c8 = arith.constant 8 : index
    %c0_60 = arith.constant 0 : index
    %c0_61 = arith.constant 0 : index
    %60 = vector.load %arg2[%c8, %c0_60, %c0_61] : memref<9x128x128xbf16, #tpu.memory_space<vmem>>, vector<1x128x128xbf16>
    %61 = vector.shape_cast %60 : vector<1x128x128xbf16> to vector<128x128xbf16>
    %cst_62 = arith.constant dense<0.000000e+00> : vector<256x128xf32>
    %62 = tpu.matmul %59, %61, %cst_62 {dimension_numbers = #tpu.dot_dimension_numbers<[1], [0], [0], [1], [0, 0, 1, 1], [], []>} : vector<256x128xbf16>, vector<128x128xbf16>, vector<256x128xf32> -> vector<256x128xf32>
    %63 = arith.addf %56, %62 : vector<256x128xf32>
    %c0_63 = arith.constant 0 : index
    %c0_64 = arith.constant 0 : index
    %64 = vector.load %arg3[%c0_63, %c0_64] : memref<1x128xf32, #tpu.memory_space<vmem>>, vector<1x128xf32>
    %65 = vector.broadcast %64 : vector<1x128xf32> to vector<256x128xf32>
    %66 = arith.mulf %63, %65 : vector<256x128xf32>
    %c0_65 = arith.constant 0 : index
    %c0_66 = arith.constant 0 : index
    %67 = vector.load %arg4[%c0_65, %c0_66] : memref<1x128xf32, #tpu.memory_space<vmem>>, vector<1x128xf32>
    %68 = vector.broadcast %67 : vector<1x128xf32> to vector<256x128xf32>
    %69 = arith.addf %66, %68 : vector<256x128xf32>
    %cst_67 = arith.constant 0.000000e+00 : f32
    %70 = vector.broadcast %cst_67 : f32 to vector<256x128xf32>
    %71 = arith.maximumf %69, %70 : vector<256x128xf32>
    %cst_68 = arith.constant dense<0.000000e+00> : vector<128xf32>
    %72 = vector.multi_reduction <add>, %71, %cst_68 [0] : vector<256x128xf32> to vector<128xf32>
    %73 = vector.shape_cast %72 : vector<128xf32> to vector<1x128xf32>
    %cst_69 = arith.constant 2.560000e+02 : f32
    %74 = vector.broadcast %cst_69 : f32 to vector<1x128xf32>
    %75 = arith.divf %73, %74 : vector<1x128xf32>
    %76 = vector.shape_cast %75 : vector<1x128xf32> to vector<1x1x128xf32>
    %c0_70 = arith.constant 0 : index
    %c0_71 = arith.constant 0 : index
    %c0_72 = arith.constant 0 : index
    %77 = vector.load %arg5[%c0_70, %c0_71, %c0_72] : memref<1x1x128xf32, #tpu.memory_space<vmem>>, vector<1x1x128xf32>
    tpu.vector_store %arg5[%c0_70, %c0_71, %c0_72], %76 {strides = array<i32>} : memref<1x1x128xf32, #tpu.memory_space<vmem>>, vector<1x1x128xf32>,
    return
  }
  func.func @transform_0(%arg0: i32) -> (i32, i32, i32, i32) {
    %c0_i32 = arith.constant 0 : i32
    %c0_i32_0 = arith.constant 0 : i32
    %c0_i32_1 = arith.constant 0 : i32
    %c0_i32_2 = arith.constant 0 : i32
    return %arg0, %c0_i32, %c0_i32_0, %c0_i32_1 : i32, i32, i32, i32
  }
  func.func @transform_1(%arg0: i32) -> (i32, i32, i32) {
    %c0_i32 = arith.constant 0 : i32
    %c0_i32_0 = arith.constant 0 : i32
    %c0_i32_1 = arith.constant 0 : i32
    %c0_i32_2 = arith.constant 0 : i32
    return %c0_i32, %c0_i32_0, %c0_i32_1 : i32, i32, i32
  }
  func.func @transform_2(%arg0: i32) -> (i32, i32) {
    %c0_i32 = arith.constant 0 : i32
    %c0_i32_0 = arith.constant 0 : i32
    %c0_i32_1 = arith.constant 0 : i32
    return %c0_i32, %c0_i32_0 : i32, i32
  }
  func.func @transform_3(%arg0: i32) -> (i32, i32) {
    %c0_i32 = arith.constant 0 : i32
    %c0_i32_0 = arith.constant 0 : i32
    %c0_i32_1 = arith.constant 0 : i32
    return %c0_i32, %c0_i32_0 : i32, i32
  }
  func.func @transform_4(%arg0: i32) -> (i32, i32, i32) {
    %c0_i32 = arith.constant 0 : i32
    %c0_i32_0 = arith.constant 0 : i32
    %c0_i32_1 = arith.constant 0 : i32
    return %arg0, %c0_i32, %c0_i32_0 : i32, i32, i32
  }
}

</mosaic_0001>

<bundles_post_ra>
// kernel: _lambda_.2
= control target key start
LH: loop header
LB: loop body
LE: loop exit
PB: predicated region body
PF: predicated region fallthrough
CT: control target
= control target key end

     0   :  { %s953_s15 = smov 0   ;;  %s1109_s0 = inlined_call_operand.vmem [shape: bf16[512,32], index: 0, kind: input, shape index: {}]   ;;  %s1110_s1 = inlined_call_operand.vmem [shape: bf16[32,128], index: 1, kind: input, shape index: {}]   ;;  %s1111_s2 = inlined_call_operand.vmem [shape: f32[1,128], index: 2, kind: input, shape index: {}]   ;;  %s1112_s3 = inlined_call_operand.vmem [shape: f32[1,128], index: 3, kind: input, shape index: {}]   ;;  %s1113_s4 = inlined_call_operand.vmem [shape: bf16[512,128], index: 4, kind: output, shape index: {}]  }
   0x1 LB: > { %s692_s16 = sadd.s32 4294967295, %s926_s15   ;;  %p696_p0 = scmp.ge.s32.totalorder %s926_s15, 1  ;;  %s926_s15 = sphi %s953_s15, %s14_s15  }
   0x2   : > { %p163_p1 = scmp.lt.s32.totalorder %s926_s15, 3 }
   0x4   : > { %p164_p2 = pnand %p696_p0, %p163_p1 }
   0x5   : > { %s697_s19 = sshll.u32 (!%p164_p2), %s692_s16, 5 }
   0x6   : > { %167 = sbr.rel (%p164_p2) target bundleno = 218 (0xda), region = 36  ;;  %p190_p3 = scmp.lt.s32.totalorder (!%p164_p2), %s697_s19, 63 }
   0xb   : > { %v808_v0 = vld [vmem:[%s1110_s1 + $0x8] sm:$0xff]  ;;  %v807_v1 = vld [vmem:[%s1110_s1] sm:$0xff]  ;;  %s1115_s19 = smov (!%p190_p3, %s697_s19), 63  ;;  %vm330_vm0 = vcmask 261120  }
   0xc   : > { %385 = vmatpush.bf16.msra.mxu0 %v808_v0  ;;  %904 = vmatpush.bf16.msra.mxu1 %v808_v0  ;;  %s698_s22 = sshll.u32 %s1115_s19, 2  ;;  %v1012_v20 = vld [vmem:[%s1111_s2] ss:$0 sm:$0xff] }
   0xd   : > { %905 = vmatpush.bf16.msra.mxu2 %v808_v0  ;;  %906 = vmatpush.bf16.msra.mxu3 %v808_v0  ;;  %s975_s25 = scalar_lea.vmem %s1109_s0, %s698_s22  ;;  %v1018_v22 = vld [vmem:[%s1112_s3] ss:$0 sm:$0xff]  ;;  %s1034_s6 = scalar_lea.vmem %s1113_s4, %s698_s22 }
   0xe   : > { %v791_v2 = vld [vmem:[%s975_s25] sm:$0xff]  ;;  %v792_v6 = vld [vmem:[%s975_s25 + $0x8] sm:$0xff]  ;;  %v793_v10 = vld [vmem:[%s975_s25 + $0x10] sm:$0xff] }
   0xf   : > { %v795_v3 = vld [vmem:[%s975_s25 + $0x20] sm:$0xff]  ;;  %v796_v7 = vld [vmem:[%s975_s25 + $0x28] sm:$0xff]  ;;  %v797_v11 = vld [vmem:[%s975_s25 + $0x30] sm:$0xff] }
  0x10   : > { %386 = vmatpush.bf16.msra.mxu0 %v807_v1  ;;  %907 = vmatpush.bf16.msra.mxu1 %v807_v1  ;;  %v799_v4 = vld [vmem:[%s975_s25 + $0x40] sm:$0xff]  ;;  %v800_v8 = vld [vmem:[%s975_s25 + $0x48] sm:$0xff]  ;;  %v801_v12 = vld [vmem:[%s975_s25 + $0x50] sm:$0xff] }
  0x11   : > { %908 = vmatpush.bf16.msra.mxu2 %v807_v1  ;;  %909 = vmatpush.bf16.msra.mxu3 %v807_v1  ;;  %v803_v5 = vld [vmem:[%s975_s25 + $0x60] sm:$0xff]  ;;  %v804_v9 = vld [vmem:[%s975_s25 + $0x68] sm:$0xff]  ;;  %v805_v13 = vld [vmem:[%s975_s25 + $0x70] sm:$0xff] }
  0x12   : > { %v794_v14 = vld [vmem:[%s975_s25 + $0x18] sm:$0xff] }
  0x13   : > { %773 = vmatmul.msk.bf16.vlgmr.msra.gmra.mxu0 %vm330_vm0, %v791_v2  ;;  %777 = vmatmul.msk.bf16.vlgmr.msra.gmra.mxu1 %vm330_vm0, %v795_v3  ;;  %v798_v15 = vld [vmem:[%s975_s25 + $0x38] sm:$0xff] }
  0x14   : > { %781 = vmatmul.msk.bf16.vlgmr.msra.gmra.mxu2 %vm330_vm0, %v799_v4  ;;  %785 = vmatmul.msk.bf16.vlgmr.msra.gmra.mxu3 %vm330_vm0, %v803_v5  ;;  %v802_v16 = vld [vmem:[%s975_s25 + $0x58] sm:$0xff] }
  0x15   : > { %v806_v17 = vld [vmem:[%s975_s25 + $0x78] sm:$0xff] }
  0x23   : > { %774 = vmatmul.msk.bf16.gmra.mxu0 %vm330_vm0, %v792_v6  ;;  %778 = vmatmul.msk.bf16.gmra.mxu1 %vm330_vm0, %v796_v7 }
  0x24   : > { %782 = vmatmul.msk.bf16.gmra.mxu2 %vm330_vm0, %v800_v8  ;;  %786 = vmatmul.msk.bf16.gmra.mxu3 %vm330_vm0, %v804_v9 }
  0x33   : > { %775 = vmatmul.msk.bf16.gmra.mxu0 %vm330_vm0, %v793_v10  ;;  %779 = vmatmul.msk.bf16.gmra.mxu1 %vm330_vm0, %v797_v11 }
  0x34   : > { %783 = vmatmul.msk.bf16.gmra.mxu2 %vm330_vm0, %v801_v12  ;;  %787 = vmatmul.msk.bf16.gmra.mxu3 %vm330_vm0, %v805_v13 }
  0x43   : > { %776 = vmatmul.msk.bf16.gmra.mxu0 %vm330_vm0, %v794_v14  ;;  %780 = vmatmul.msk.bf16.gmra.mxu1 %vm330_vm0, %v798_v15 }
  0x44   : > { %784 = vmatmul.msk.bf16.gmra.mxu2 %vm330_vm0, %v802_v16  ;;  %788 = vmatmul.msk.bf16.gmra.mxu3 %vm330_vm0, %v806_v17 }
  0x90   : > { %v388_v18 = vpop.f32.mrf.mxu0  ;;  %v408_v19 = vpop.f32.mrf.mxu1 }
  0x91   : > { %v472_v21 = vmul.f32 %v1012_v20, %v388_v18  ;;  %v480_v23 = vmul.f32 %v1012_v20, %v408_v19 }
  0x93   : > { %v508_v28 = vadd.f32 %v1018_v22, %v472_v21  ;;  %v516_v29 = vadd.f32 %v1018_v22, %v480_v23 }
  0x95   : > { %v540_v36 = vmax.f32 %v508_v28, 0.0  ;;  %v548_v37 = vmax.f32 %v516_v29, 0.0 }
  0x97   : > { %v428_v24 = vpop.f32.mrf.mxu2  ;;  %v448_v25 = vpop.f32.mrf.mxu3 }
  0x98   : > { %v390_v26 = vpop.f32.mrf.mxu0  ;;  %v410_v27 = vpop.f32.mrf.mxu1  ;;  %v488_v34 = vmul.f32 %v1012_v20, %v428_v24  ;;  %v496_v35 = vmul.f32 %v1012_v20, %v448_v25 }
  0x99   : > { %v473_v30 = vmul.f32 %v1012_v20, %v390_v26  ;;  %v481_v31 = vmul.f32 %v1012_v20, %v410_v27 }
  0x9a   : > { %v524_v44 = vadd.f32 %v1018_v22, %v488_v34  ;;  %v532_v45 = vadd.f32 %v1018_v22, %v496_v35 }
  0x9b   : > { %v509_v32 = vadd.f32 %v1018_v22, %v473_v30  ;;  %v517_v33 = vadd.f32 %v1018_v22, %v481_v31 }
  0x9c   : > { %v556_v52 = vmax.f32 %v524_v44, 0.0  ;;  %v564_v53 = vmax.f32 %v532_v45, 0.0 }
  0x9d   : > { %v541_v38 = vmax.f32 %v509_v32, 0.0  ;;  %v549_v39 = vmax.f32 %v517_v33, 0.0 }
  0x9f   : > { %v812_v40 = vpack.c.bf16 %v541_v38, %v540_v36  ;;  %v832_v41 = vpack.c.bf16 %v549_v39, %v548_v37  ;;  %v430_v42 = vpop.f32.mrf.mxu2  ;;  %v450_v43 = vpop.f32.mrf.mxu3 }
  0xa0   : > { %v489_v46 = vmul.f32 %v1012_v20, %v430_v42  ;;  %v497_v47 = vmul.f32 %v1012_v20, %v450_v43  ;;  %v393_v48 = vpop.f32.mrf.mxu0  ;;  %v413_v49 = vpop.f32.mrf.mxu1 }
  0xa1   : > { %813 = vst [vmem:[%s1034_s6] sm:$0xff] %v812_v40   ;;  %v474_v56 = vmul.f32 %v1012_v20, %v393_v48  ;;  %v482_v57 = vmul.f32 %v1012_v20, %v413_v49 }
  0xa2   : > { %892 = vst [vmem:[%s1034_s6 + $0x20] sm:$0xff] %v832_v41   ;;  %v525_v50 = vadd.f32 %v1018_v22, %v489_v46  ;;  %v533_v51 = vadd.f32 %v1018_v22, %v497_v47 }
  0xa3   : > { %v510_v0 = vadd.f32 %v1018_v22, %v474_v56  ;;  %v518_v1 = vadd.f32 %v1018_v22, %v482_v57 }
  0xa4   : > { %v557_v54 = vmax.f32 %v525_v50, 0.0  ;;  %v565_v55 = vmax.f32 %v533_v51, 0.0 }
  0xa5   : > { %v542_v8 = vmax.f32 %v510_v0, 0.0  ;;  %v550_v9 = vmax.f32 %v518_v1, 0.0 }
  0xa6   : > { %v852_v58 = vpack.c.bf16 %v557_v54, %v556_v52  ;;  %v872_v59 = vpack.c.bf16 %v565_v55, %v564_v53 }
  0xa7   : > { %v433_v60 = vpop.f32.mrf.mxu2  ;;  %v453_v61 = vpop.f32.mrf.mxu3 }
  0xa8   : > { %896 = vst [vmem:[%s1034_s6 + $0x40] sm:$0xff] %v852_v58   ;;  %v395_v62 = vpop.f32.mrf.mxu0  ;;  %v415_v63 = vpop.f32.mrf.mxu1  ;;  %v490_v6 = vmul.f32 %v1012_v20, %v433_v60  ;;  %v498_v7 = vmul.f32 %v1012_v20, %v453_v61 }
  0xa9   : > { %900 = vst [vmem:[%s1034_s6 + $0x60] sm:$0xff] %v872_v59   ;;  %v475_v2 = vmul.f32 %v1012_v20, %v395_v62  ;;  %v483_v3 = vmul.f32 %v1012_v20, %v415_v63 }
  0xaa   : > { %v526_v16 = vadd.f32 %v1018_v22, %v490_v6  ;;  %v534_v17 = vadd.f32 %v1018_v22, %v498_v7 }
  0xab   : > { %v511_v4 = vadd.f32 %v1018_v22, %v475_v2  ;;  %v519_v5 = vadd.f32 %v1018_v22, %v483_v3 }
  0xac   : > { %v558_v26 = vmax.f32 %v526_v16, 0.0  ;;  %v566_v27 = vmax.f32 %v534_v17, 0.0 }
  0xad   : > { %v543_v10 = vmax.f32 %v511_v4, 0.0  ;;  %v551_v11 = vmax.f32 %v519_v5, 0.0 }
  0xaf   : > { %v817_v12 = vpack.c.bf16 %v543_v10, %v542_v8  ;;  %v837_v13 = vpack.c.bf16 %v551_v11, %v550_v9  ;;  %v435_v14 = vpop.f32.mrf.mxu2  ;;  %v455_v15 = vpop.f32.mrf.mxu3 }
  0xb0   : > { %v491_v18 = vmul.f32 %v1012_v20, %v435_v14  ;;  %v499_v19 = vmul.f32 %v1012_v20, %v455_v15  ;;  %v398_v21 = vpop.f32.mrf.mxu0  ;;  %v418_v23 = vpop.f32.mrf.mxu1 }
  0xb1   : > { %889 = vst [vmem:[%s1034_s6 + $0x8] sm:$0xff] %v817_v12   ;;  %v476_v30 = vmul.f32 %v1012_v20, %v398_v21  ;;  %v484_v31 = vmul.f32 %v1012_v20, %v418_v23 }
  0xb2   : > { %893 = vst [vmem:[%s1034_s6 + $0x28] sm:$0xff] %v837_v13   ;;  %v527_v24 = vadd.f32 %v1018_v22, %v491_v18  ;;  %v535_v25 = vadd.f32 %v1018_v22, %v499_v19 }
  0xb3   : > { %v512_v38 = vadd.f32 %v1018_v22, %v476_v30  ;;  %v520_v39 = vadd.f32 %v1018_v22, %v484_v31 }
  0xb4   : > { %v559_v28 = vmax.f32 %v527_v24, 0.0  ;;  %v567_v29 = vmax.f32 %v535_v25, 0.0 }
  0xb5   : > { %v544_v46 = vmax.f32 %v512_v38, 0.0  ;;  %v552_v47 = vmax.f32 %v520_v39, 0.0 }
  0xb6   : > { %v857_v32 = vpack.c.bf16 %v559_v28, %v558_v26  ;;  %v877_v33 = vpack.c.bf16 %v567_v29, %v566_v27 }
  0xb7   : > { %v438_v34 = vpop.f32.mrf.mxu2  ;;  %v458_v35 = vpop.f32.mrf.mxu3 }
  0xb8   : > { %897 = vst [vmem:[%s1034_s6 + $0x48] sm:$0xff] %v857_v32   ;;  %v400_v36 = vpop.f32.mrf.mxu0  ;;  %v420_v37 = vpop.f32.mrf.mxu1  ;;  %v492_v44 = vmul.f32 %v1012_v20, %v438_v34  ;;  %v500_v45 = vmul.f32 %v1012_v20, %v458_v35 }
  0xb9   : > { %901 = vst [vmem:[%s1034_s6 + $0x68] sm:$0xff] %v877_v33   ;;  %v477_v40 = vmul.f32 %v1012_v20, %v400_v36  ;;  %v485_v41 = vmul.f32 %v1012_v20, %v420_v37 }
  0xba   : > { %v528_v54 = vadd.f32 %v1018_v22, %v492_v44  ;;  %v536_v55 = vadd.f32 %v1018_v22, %v500_v45 }
  0xbb   : > { %v513_v42 = vadd.f32 %v1018_v22, %v477_v40  ;;  %v521_v43 = vadd.f32 %v1018_v22, %v485_v41 }
  0xbc   : > { %v560_v62 = vmax.f32 %v528_v54, 0.0  ;;  %v568_v63 = vmax.f32 %v536_v55, 0.0 }
  0xbd   : > { %v545_v48 = vmax.f32 %v513_v42, 0.0  ;;  %v553_v49 = vmax.f32 %v521_v43, 0.0 }
  0xbf   : > { %v822_v50 = vpack.c.bf16 %v545_v48, %v544_v46  ;;  %v842_v51 = vpack.c.bf16 %v553_v49, %v552_v47  ;;  %v440_v52 = vpop.f32.mrf.mxu2  ;;  %v460_v53 = vpop.f32.mrf.mxu3 }
  0xc0   : > { %v493_v56 = vmul.f32 %v1012_v20, %v440_v52  ;;  %v501_v57 = vmul.f32 %v1012_v20, %v460_v53  ;;  %v403_v58 = vpop.f32.mrf.mxu0  ;;  %v423_v59 = vpop.f32.mrf.mxu1 }
  0xc1   : > { %890 = vst [vmem:[%s1034_s6 + $0x10] sm:$0xff] %v822_v50   ;;  %v478_v2 = vmul.f32 %v1012_v20, %v403_v58  ;;  %v486_v3 = vmul.f32 %v1012_v20, %v423_v59 }
  0xc2   : > { %894 = vst [vmem:[%s1034_s6 + $0x30] sm:$0xff] %v842_v51   ;;  %v529_v60 = vadd.f32 %v1018_v22, %v493_v56  ;;  %v537_v61 = vadd.f32 %v1018_v22, %v501_v57 }
  0xc3   : > { %v514_v10 = vadd.f32 %v1018_v22, %v478_v2  ;;  %v522_v11 = vadd.f32 %v1018_v22, %v486_v3 }
  0xc4   : > { %v561_v0 = vmax.f32 %v529_v60, 0.0  ;;  %v569_v1 = vmax.f32 %v537_v61, 0.0 }
  0xc5   : > { %v546_v18 = vmax.f32 %v514_v10, 0.0  ;;  %v554_v19 = vmax.f32 %v522_v11, 0.0 }
  0xc6   : > { %v862_v4 = vpack.c.bf16 %v561_v0, %v560_v62  ;;  %v882_v5 = vpack.c.bf16 %v569_v1, %v568_v63 }
  0xc7   : > { %v443_v6 = vpop.f32.mrf.mxu2  ;;  %v463_v7 = vpop.f32.mrf.mxu3 }
  0xc8   : > { %898 = vst [vmem:[%s1034_s6 + $0x50] sm:$0xff] %v862_v4   ;;  %v405_v8 = vpop.f32.mrf.mxu0  ;;  %v425_v9 = vpop.f32.mrf.mxu1  ;;  %v494_v16 = vmul.f32 %v1012_v20, %v443_v6  ;;  %v502_v17 = vmul.f32 %v1012_v20, %v463_v7 }
  0xc9   : > { %902 = vst [vmem:[%s1034_s6 + $0x70] sm:$0xff] %v882_v5   ;;  %v479_v12 = vmul.f32 %v1012_v20, %v405_v8  ;;  %v487_v13 = vmul.f32 %v1012_v20, %v425_v9 }
  0xca   : > { %v530_v28 = vadd.f32 %v1018_v22, %v494_v16  ;;  %v538_v29 = vadd.f32 %v1018_v22, %v502_v17 }
  0xcb   : > { %v515_v14 = vadd.f32 %v1018_v22, %v479_v12  ;;  %v523_v15 = vadd.f32 %v1018_v22, %v487_v13 }
  0xcc   : > { %v562_v34 = vmax.f32 %v530_v28, 0.0  ;;  %v570_v35 = vmax.f32 %v538_v29, 0.0 }
  0xcd   : > { %v547_v21 = vmax.f32 %v515_v14, 0.0  ;;  %v555_v23 = vmax.f32 %v523_v15, 0.0 }
  0xcf   : > { %v827_v24 = vpack.c.bf16 %v547_v21, %v546_v18  ;;  %v847_v25 = vpack.c.bf16 %v555_v23, %v554_v19  ;;  %v445_v26 = vpop.f32.mrf.mxu2  ;;  %v465_v27 = vpop.f32.mrf.mxu3 }
  0xd0   : > { %v495_v30 = vmul.f32 %v1012_v20, %v445_v26  ;;  %v503_v31 = vmul.f32 %v1012_v20, %v465_v27 }
  0xd1   : > { %891 = vst [vmem:[%s1034_s6 + $0x18] sm:$0xff] %v827_v24  }
  0xd2   : > { %895 = vst [vmem:[%s1034_s6 + $0x38] sm:$0xff] %v847_v25   ;;  %v531_v32 = vadd.f32 %v1018_v22, %v495_v30  ;;  %v539_v33 = vadd.f32 %v1018_v22, %v503_v31 }
  0xd4   : > { %v563_v36 = vmax.f32 %v531_v32, 0.0  ;;  %v571_v37 = vmax.f32 %v539_v33, 0.0 }
  0xd6   : > { %v867_v38 = vpack.c.bf16 %v563_v36, %v562_v34  ;;  %v887_v39 = vpack.c.bf16 %v571_v37, %v570_v35 }
  0xd8   : > { %899 = vst [vmem:[%s1034_s6 + $0x58] sm:$0xff] %v867_v38  }
  0xd9   : > { %903 = vst [vmem:[%s1034_s6 + $0x78] sm:$0xff] %v887_v39  }
  0xda PF: > { %s14_s15 = sadd.s32 1, %s926_s15  }
  0xdb   : > { %p11_p4 = scmp.ge.s32.totalorder %s14_s15, 4  }
  0xdd   :  { %13 = sbr.rel (!%p11_p4) target bundleno = 1 (0x1), region = 66 }

// kernel: _lambda_.3
= control target key start
LH: loop header
LB: loop body
LE: loop exit
PB: predicated region body
PF: predicated region fallthrough
CT: control target
= control target key end

     0   :  { %9 = vsyncpa [#allocation3], 0  ;;  %s7316_s0 = inlined_call_operand.vmem [shape: bf16[2,18,18,128], index: 0, kind: input, shape index: {}]   ;;  %s7317_s1 = inlined_call_operand.vmem [shape: bf16[9,128,128], index: 1, kind: input, shape index: {}]   ;;  %s7318_s2 = inlined_call_operand.vmem [shape: f32[1,128], index: 2, kind: input, shape index: {}]   ;;  %s7319_s3 = inlined_call_operand.vmem [shape: f32[1,128], index: 3, kind: input, shape index: {}]   ;;  %s7320_s4 = inlined_call_operand.hbm [shape: f32[2,1,128], index: 4, kind: output, shape index: {}]  }
   0x1   :  { %11 = vsyncpa [#allocation3 + $0x1], 0  ;;  %s5763_s15 = smov 0   ;;  %s5765_s16 = smov 0  }
   0x2   :  { %s5767_s17 = smov 0   ;;  %s5769_s18 = smov 0  }
   0x3 LB: > { %s5784_s19 = sadd.s32 4294967295, %s5735_s18   ;;  %s4574_s20 = sadd.s32 4294967294, %s5735_s18   ;;  %s5735_s18 = sphi %s5769_s18, %s7334_s18   ;;  %s5731_s17 = sphi %s5767_s17, %s7333_s17   ;;  %s5727_s16 = sphi %s5765_s16, %s7332_s16   ;;  %s5723_s15 = sphi %s5763_s15, %s7331_s15  }
   0x4   : > { %s5788_s21 = sadd.s32 1, %s5735_s18   ;;  %s113_s22 = sadd.s32 1, %s5731_s17 }
   0x5   : > { %s110_s23 = ssub.s32 %s5735_s18, %s5788_s21  ;;  %p123_p0 = scmp.ne.s32.totalorder %s5731_s17, %s5727_s16 }
   0x6   : > { %p111_p1 = scmp.eq.s32.totalorder %s110_s23, 0  ;;  %p124_p2 = scmp.eq.s32.totalorder %s5784_s19, 1 }
   0x7   : > { %p129_p3 = scmp.ne.s32.totalorder %s5727_s16, %s5723_s15  ;;  %p130_p4 = scmp.eq.s32.totalorder %s4574_s20, 1 }
   0x8   : > { %s5799_s24 = scalar_select %p111_p1, %s5731_s17, %s113_s22  }
   0x9   : > { %p5801_p5 = por %p124_p2, %p123_p0  ;;  %p5805_p6 = por %p130_p4, %p129_p3 }
   0xa   : > { %p4577_p7 = scmp.ge.s32.totalorder %s5735_s18, 1  ;;  %p165_p8 = scmp.lt.s32.totalorder %s5735_s18, 3 }
   0xc   : > { %p166_p9 = pnand %p4577_p7, %p165_p8 }
   0xe   : > { %169 = sbr.rel (%p166_p9) target bundleno = 787 (0x313), region = 36 }
  0x13   : > { %v5460_v0 = vld [vmem:[%s7317_s1 + $0x78] sm:$0xff]  ;;  %p190_p10 = scmp.lt.s32.totalorder %s5784_s19, 1  ;;  %v5459_v1 = vld [vmem:[%s7317_s1 + $0x70] sm:$0xff]  ;;  %v5458_v2 = vld [vmem:[%s7317_s1 + $0x68] sm:$0xff]  ;;  %vm259_vm0 = vsmask.f32 3328  ;;  %s4515_s22 = scalar_lea.hbm %s7320_s4, %s5784_s19 }
  0x14   : > { %5549 = vmatpush.bf16.msra.mxu1 %v5460_v0  ;;  %5550 = vmatpush.bf16.msra.mxu2 %v5460_v0  ;;  %vm260_vm1 = vsmask.f32 7440  ;;  %v5457_v6 = vld [vmem:[%s7317_s1 + $0x60] sm:$0xff]  ;;  %v5456_v35 = vld [vmem:[%s7317_s1 + $0x58] sm:$0xff]  ;;  %v5455_v54 = vld [vmem:[%s7317_s1 + $0x50] sm:$0xff]  ;;  %vm1145_vm3 = vcmask 1042432  }
  0x15   : > { %s191_s5 = scalar_select %p190_p10, %s5784_s19, 1  ;;  %5551 = vmatpush.bf16.msra.mxu3 %v5460_v0  ;;  %775 = vmatpush.bf16.msra.mxu0 %v5460_v0  ;;  %vm5840_vm2 = vmor %vm259_vm0, %vm260_vm1  ;;  %vm1146_vm4 = vcmask 1046532  }
  0x16   : > { %vm6140_vm5 = vmor %vm1145_vm3, %vm1146_vm4  ;;  %s188_s13 = sand.u32 1, %s5727_s16   ;;  %s4519_s28 = sshll.u32 %s4515_s22, 4  ;;  %s4520_s28 = int_to_ptr.hbm [resolvable:$true] %s4519_s28 }
  0x17   : > { %s5573_s6 = smul.u32 216, %s191_s5  ;;  %s189_s23 = scalar_lea.vmem [#allocation2], %s188_s13 }
  0x18   : > { %5552 = vmatpush.bf16.msra.mxu1 %v5459_v1  ;;  %5553 = vmatpush.bf16.msra.mxu2 %v5459_v1  ;;  %s4517_s27 = sshll.u32 %s189_s23, 4  ;;  %s4507_s29 = scalar_lea.sflag [#allocation3], %s188_s13  ;;  %s4518_s27 = int_to_ptr.vmem [resolvable:$true] %s4517_s27 }
  0x19   : > { %s5825_s11 = scalar_lea.vmem %s7316_s0, %s5573_s6  ;;  %5554 = vmatpush.bf16.msra.mxu3 %v5459_v1  ;;  %776 = vmatpush.bf16.msra.mxu0 %v5459_v1  ;;  %s5687_s30 = sshra.s32 %s4520_s28, 4  ;;  %s5688_s30 = int_to_ptr.hbm [resolvable:$true] %s5687_s30 }
  0x1a   : > { %v203_v3 = vld [vmem:[%s5825_s11 + $0x30] sm:$0xf]  ;;  %v204_v4 = vld [vmem:[%s5825_s11 + $0x34] sm:$0xf]  ;;  %v247_v5 = vld [vmem:[%s5825_s11 + $0x38] sm:$0x1]  ;;  %p5694_p0 = scmp.lt.s32.totalorder %s5688_s30, %s7320_s4 }
  0x1b   : > { %v359_v7 = vshrl.u32 %v203_v3, 16  ;;  %v362_v8 = vshll.u32 %v203_v3, 16  ;;  %v368_v9 = vshll.u32 %v204_v4, 16  ;;  %v372_v10 = vshrl.u32 %v204_v4, 16  ;;  %v211_v11 = vld [vmem:[%s5825_s11 + $0x60] sm:$0xf] }
  0x1c   : > { %v378_v12 = vshll.u32 %v247_v5, 16  ;;  %v212_v13 = vld [vmem:[%s5825_s11 + $0x64] sm:$0xf]  ;;  %v251_v14 = vld [vmem:[%s5825_s11 + $0x68] sm:$0x1]  ;;  %v455_v15 = vshrl.u32 %v211_v11, 16  ;;  %5555 = vmatpush.bf16.msra.mxu1 %v5458_v2  ;;  %5556 = vmatpush.bf16.msra.mxu2 %v5458_v2 }
  0x1d   : > { %v361_v16 = vrot.slane %v359_v7, 4  ;;  %v364_v17 = vrot.slane %v362_v8, 5  ;;  %v370_v18 = vrot.slane %v368_v9, 5  ;;  %v374_v19 = vrot.slane %v372_v10, 4  ;;  %v219_v20 = vld [vmem:[%s5825_s11 + $0x90] sm:$0xf]  ;;  %5557 = vmatpush.bf16.msra.mxu3 %v5458_v2  ;;  %777 = vmatpush.bf16.msra.mxu0 %v5458_v2 }
  0x1e   : > { %v380_v21 = vrot.slane %v378_v12, 5  ;;  %v457_v22 = vrot.slane %v455_v15, 4  ;;  %v458_v23 = vshll.u32 %v211_v11, 16  ;;  %v464_v24 = vshll.u32 %v212_v13, 16  ;;  %v220_v29 = vld [vmem:[%s5825_s11 + $0x94] sm:$0xf] }
  0x1f   : > { %v365_v25 = vor.u32 %v364_v17, %v361_v16  ;;  %v375_v26 = vor.u32 %v374_v19, %v370_v18  ;;  %v468_v27 = vshrl.u32 %v212_v13, 16  ;;  %v474_v28 = vshll.u32 %v251_v14, 16  ;;  %v255_v41 = vld [vmem:[%s5825_s11 + $0x98] sm:$0x1]  ;;  %v195_v49 = vld [vmem:[%s5825_s11] sm:$0xf] }
  0x20   : > { %v460_v31 = vrot.slane %v458_v23, 5  ;;  %v466_v32 = vrot.slane %v464_v24, 5  ;;  %v551_v33 = vshrl.u32 %v219_v20, 16  ;;  %v554_v34 = vshll.u32 %v219_v20, 16  ;;  %5558 = vmatpush.bf16.msra.mxu1 %v5457_v6  ;;  %5559 = vmatpush.bf16.msra.mxu2 %v5457_v6  ;;  %v5865_v62 = vld [vmem:[%s5825_s11 + $0x4] sm:$0xf] }
  0x21   : > { %v366_v36 = vrot.slane %v365_v25, 4  ;;  %v376_v37 = vrot.slane %v375_v26, 4  ;;  %v470_v38 = vrot.slane %v468_v27, 4  ;;  %v476_v39 = vrot.slane %v474_v28, 5  ;;  %5560 = vmatpush.bf16.msra.mxu3 %v5457_v6  ;;  %778 = vmatpush.bf16.msra.mxu0 %v5457_v6  ;;  %v5872_v4 = vld [vmem:[%s5825_s11 + $0x8] sm:$0x1] }
  0x22   : > { %v461_v40 = vor.u32 %v460_v31, %v457_v22  ;;  %v553_v42 = vrot.slane %v551_v33, 4  ;;  %v556_v43 = vrot.slane %v554_v34, 5  ;;  %v560_v44 = vshll.u32 %v220_v29, 16  ;;  %v205_v5 = vld [vmem:[%s5825_s11 + $0x3c] sm:$0xf]  ;;  %v5454_v10 = vld [vmem:[%s7317_s1 + $0x48] sm:$0xff] }
  0x23   : > { %v371_v45 = vsel %vm5840_vm2, %v366_v36, %v370_v18  ;;  %v381_v46 = vsel %vm5840_vm2, %v376_v37, %v380_v21  ;;  %v471_v47 = vor.u32 %v470_v38, %v466_v32  ;;  %v564_v48 = vshrl.u32 %v220_v29, 16  ;;  %v206_v15 = vld [vmem:[%s5825_s11 + $0x40] sm:$0xf]  ;;  %v248_v19 = vld [vmem:[%s5825_s11 + $0x44] sm:$0x1]  ;;  %v5468_v37 = vld [vmem:[%s7317_s1 + $0xb8] sm:$0xff] }
  0x24   : > { %v5853_v50 = vunpack.c.l.b16 %v371_v45  ;;  %v5855_v51 = vunpack.c.l.b16 %v381_v46  ;;  %v462_v52 = vrot.slane %v461_v40, 4  ;;  %v557_v53 = vor.u32 %v556_v43, %v553_v42  ;;  %5561 = vmatpush.bf16.msra.mxu1 %v5456_v35  ;;  %5562 = vmatpush.bf16.msra.mxu2 %v5456_v35  ;;  %v213_v25 = vld [vmem:[%s5825_s11 + $0x6c] sm:$0xf]  ;;  %v5453_v31 = vld [vmem:[%s7317_s1 + $0x40] sm:$0xff]  ;;  %v214_v40 = vld [vmem:[%s5825_s11 + $0x70] sm:$0xf] }
  0x25   : > { %v472_v55 = vrot.slane %v471_v47, 4  ;;  %v562_v56 = vrot.slane %v560_v44, 5  ;;  %v566_v57 = vrot.slane %v564_v48, 4  ;;  %v570_v58 = vshll.u32 %v255_v41, 16  ;;  %5563 = vmatpush.bf16.msra.mxu3 %v5456_v35  ;;  %779 = vmatpush.bf16.msra.mxu0 %v5456_v35  ;;  %v5492_v43 = vld [vmem:[%s7317_s1 + $0xf8] sm:$0xff]  ;;  %s5689_s5 = scalar_lea.hbm %s5688_s30, 1 }
  0x26   : > { %v699_v59 = vpack.c.b16 %v5855_v51, %v5853_v50  ;;  %v467_v60 = vsel %vm5840_vm2, %v462_v52, %v466_v32  ;;  %v558_v61 = vrot.slane %v557_v53, 4  ;;  %v263_v63 = vshrl.u32 %v195_v49, 16  ;;  %v252_v47 = vld [vmem:[%s5825_s11 + $0x74] sm:$0x1]  ;;  %p5690_p11 = scmp.ne.s32.totalorder %s5688_s30, %s5689_s5  ;;  %s5693_s7 = scalar_lea.hbm %s7320_s4, 2 }
  0x27   : > { %v477_v0 = vsel %vm5840_vm2, %v472_v55, %v476_v39  ;;  %v5869_v1 = vunpack.c.l.b16 %v467_v60  ;;  %v567_v2 = vor.u32 %v566_v57, %v562_v56  ;;  %v572_v3 = vrot.slane %v570_v58, 5  ;;  %v5452_v57 = vld [vmem:[%s7317_s1 + $0x38] sm:$0xff]  ;;  %p5695_p1 = scmp.lt.s32.totalorder %s5693_s7, %s5689_s5 }
  0x28   : > { %v5875_v6 = vunpack.c.l.b16 %v477_v0  ;;  %v563_v7 = vsel %vm5840_vm2, %v558_v61, %v562_v56  ;;  %v265_v8 = vrot.slane %v263_v63, 4  ;;  %v266_v9 = vshll.u32 %v195_v49, 16  ;;  %5564 = vmatpush.bf16.msra.mxu1 %v5455_v54  ;;  %5565 = vmatpush.bf16.msra.mxu2 %v5455_v54  ;;  %v5467_v63 = vld [vmem:[%s7317_s1 + $0xb0] sm:$0xff]  ;;  %p5691_p12 = pnand %p5690_p11, %p5801_p5 }
  0x29   : > { %v568_v11 = vrot.slane %v567_v2, 4  ;;  %v5882_v12 = vunpack.c.l.b16 %v563_v7  ;;  %v272_v13 = vshll.u32 %v5865_v62, 16  ;;  %v276_v14 = vshrl.u32 %v5865_v62, 16  ;;  %5566 = vmatpush.bf16.msra.mxu3 %v5455_v54  ;;  %780 = vmatpush.bf16.msra.mxu0 %v5455_v54  ;;  %v221_v54 = vld [vmem:[%s5825_s11 + $0x9c] sm:$0xf]  ;;  %p5696_p2 = por %p5695_p1, %p5694_p0 }
  0x2a   : > { %v703_v16 = vpack.c.b16 %v5875_v6, %v5869_v1  ;;  %v268_v17 = vrot.slane %v266_v9, 5  ;;  %v282_v18 = vshll.u32 %v5872_v4, 16  ;;  %v383_v20 = vshrl.u32 %v205_v5, 16  ;;  %p5692_p13 = pneg %p5691_p12 }
  0x2b   : > { %v573_v21 = vsel %vm5840_vm2, %v568_v11, %v572_v3  ;;  %v274_v22 = vrot.slane %v272_v13, 5  ;;  %v278_v23 = vrot.slane %v276_v14, 4  ;;  %v386_v24 = vshll.u32 %v205_v5, 16  ;;  %v5491_v3 = vld [vmem:[%s7317_s1 + $0xf0] sm:$0xff]  ;;  %v5500_v11 = vld [vmem:[%s7317_s1 + $0x138] sm:$0xff] }
  0x2c   : > { %v688_v26 = vunpack.c.l.b16 %v573_v21  ;;  %v269_v27 = vor.u32 %v268_v17, %v265_v8  ;;  %v284_v28 = vrot.slane %v282_v18, 5  ;;  %v385_v29 = vrot.slane %v383_v20, 4  ;;  %5567 = vmatpush.bf16.msra.mxu1 %v5454_v10  ;;  %5568 = vmatpush.bf16.msra.mxu2 %v5454_v10  ;;  %v222_v8 = vld [vmem:[%s5825_s11 + $0xa0] sm:$0xf]  ;;  %v197_v17 = vld [vmem:[%s5825_s11 + $0xc] sm:$0xf]  ;;  %p5697_p3 = pnand %p5696_p2, %p5692_p13 }
  0x2d   : > { %v279_v32 = vor.u32 %v278_v23, %v274_v22  ;;  %v388_v33 = vrot.slane %v386_v24, 5  ;;  %v392_v34 = vshll.u32 %v206_v15, 16  ;;  %v396_v35 = vshrl.u32 %v206_v15, 16  ;;  %5569 = vmatpush.bf16.msra.mxu3 %v5454_v10  ;;  %781 = vmatpush.bf16.msra.mxu0 %v5454_v10  ;;  %v256_v15 = vld [vmem:[%s5825_s11 + $0xa4] sm:$0x1]  ;;  %v5451_v18 = vld [vmem:[%s7317_s1 + $0x30] sm:$0xff] }
  0x2e   : > { %v707_v36 = vpack.c.b16 %v688_v26, %v5882_v12  ;;  %v270_v38 = vrot.slane %v269_v27, 4  ;;  %v402_v39 = vshll.u32 %v248_v19, 16  ;;  %v479_v41 = vshrl.u32 %v213_v25, 16  ;;  %v5466_v23 = vld [vmem:[%s7317_s1 + $0xa8] sm:$0xff]  ;;  %v5944_v27 = vld [vmem:[%s5825_s11 + $0x10] sm:$0xf] }
  0x2f   : > { %v280_v42 = vrot.slane %v279_v32, 4  ;;  %v389_v44 = vor.u32 %v388_v33, %v385_v29  ;;  %v394_v45 = vrot.slane %v392_v34, 5  ;;  %v398_v46 = vrot.slane %v396_v35, 4  ;;  %v5490_v29 = vld [vmem:[%s7317_s1 + $0xe8] sm:$0xff]  ;;  %v5954_v35 = vld [vmem:[%s5825_s11 + $0x14] sm:$0x1] }
  0x30   : > { %v275_v48 = vsel %vm5840_vm2, %v270_v38, %v274_v22  ;;  %v404_v49 = vrot.slane %v402_v39, 5  ;;  %v481_v52 = vrot.slane %v479_v41, 4  ;;  %v482_v53 = vshll.u32 %v213_v25, 16  ;;  %5570 = vmatpush.bf16.msra.mxu1 %v5453_v31  ;;  %5571 = vmatpush.bf16.msra.mxu2 %v5453_v31  ;;  %v5450_v41 = vld [vmem:[%s7317_s1 + $0x28] sm:$0xff] }
  0x31   : > { %v285_v55 = vsel %vm5840_vm2, %v280_v42, %v284_v28  ;;  %v663_v56 = vunpack.c.l.b16 %v275_v48  ;;  %v390_v58 = vrot.slane %v389_v44, 4  ;;  %v399_v60 = vor.u32 %v398_v46, %v394_v45  ;;  %5572 = vmatpush.bf16.msra.mxu3 %v5453_v31  ;;  %782 = vmatpush.bf16.msra.mxu0 %v5453_v31  ;;  %v207_v46 = vld [vmem:[%s5825_s11 + $0x48] sm:$0xf] }
  0x32   : > { %v664_v61 = vunpack.c.l.b16 %v285_v55  ;;  %v484_v0 = vrot.slane %v482_v53, 5  ;;  %v488_v1 = vshll.u32 %v214_v40, 16  ;;  %v492_v2 = vshrl.u32 %v214_v40, 16  ;;  %v5465_v53 = vld [vmem:[%s7317_s1 + $0xa0] sm:$0xff] }
  0x33   : > { %v395_v5 = vsel %vm5840_vm2, %v390_v58, %v394_v45  ;;  %v400_v6 = vrot.slane %v399_v60, 4  ;;  %v498_v7 = vshll.u32 %v252_v47, 16  ;;  %v575_v9 = vshrl.u32 %v221_v54, 16  ;;  %803 = vmatmul.bf16.vlgmr.msra.gmra.mxu1 %v699_v59  ;;  %823 = vmatmul.bf16.vlgmr.msra.gmra.mxu2 %v703_v16  ;;  %v5498_v60 = vld [vmem:[%s7317_s1 + $0x128] sm:$0xff] }
  0x34   : > { %1389 = vmatpush.bf16.msrb.mxu2 %v5468_v37  ;;  %v695_v10 = vpack.c.b16 %v664_v61, %v663_v56  ;;  %v5929_v12 = vunpack.c.l.b16 %v395_v5  ;;  %v485_v13 = vor.u32 %v484_v0, %v481_v52  ;;  %v490_v14 = vrot.slane %v488_v1, 5  ;;  %843 = vmatmul.bf16.vlgmr.msra.gmra.mxu3 %v707_v36  ;;  %v5499_v36 = vld [vmem:[%s7317_s1 + $0x130] sm:$0xff]  ;;  %v5449_v61 = vld [vmem:[%s7317_s1 + $0x20] sm:$0xff] }
  0x35   : > { %1704 = vmatpush.bf16.msrb.mxu3 %v5492_v43  ;;  %1008 = vmatpush.bf16.msrb.mxu1 %v5452_v57  ;;  %v405_v50 = vsel %vm5840_vm2, %v400_v6, %v404_v49  ;;  %v494_v51 = vrot.slane %v492_v2, 4  ;;  %v500_v59 = vrot.slane %v498_v7, 5  ;;  %v577_v16 = vrot.slane %v575_v9, 4  ;;  %v5983_v2 = vld [vmem:[%s5825_s11 + $0x4c] sm:$0xf] }
  0x36   : > { %783 = vmatmul.bf16.vlgmr.msra.gmra.mxu0 %v695_v10  ;;  %v5938_v19 = vunpack.c.l.b16 %v405_v50  ;;  %v486_v20 = vrot.slane %v485_v13, 4  ;;  %v578_v21 = vshll.u32 %v221_v54, 16  ;;  %v584_v22 = vshll.u32 %v222_v8, 16  ;;  %v5489_v54 = vld [vmem:[%s7317_s1 + $0xe0] sm:$0xff]  ;;  %v215_v10 = vld [vmem:[%s5825_s11 + $0x78] sm:$0xf] }
  0x37   : > { %v495_v24 = vor.u32 %v494_v51, %v490_v14  ;;  %v588_v25 = vshrl.u32 %v222_v8, 16  ;;  %v594_v26 = vshll.u32 %v256_v15, 16  ;;  %v287_v28 = vshrl.u32 %v197_v17, 16  ;;  %2386 = vmatpush.bf16.msrb.mxu0 %v5500_v11  ;;  %v249_v8 = vld [vmem:[%s5825_s11 + $0x50] sm:$0x1] }
  0x38   : > { %1390 = vmatpush.bf16.msrb.mxu2 %v5467_v63  ;;  %v700_v31 = vpack.c.b16 %v5938_v19, %v5929_v12  ;;  %v491_v32 = vsel %vm5840_vm2, %v486_v20, %v490_v14  ;;  %v580_v33 = vrot.slane %v578_v21, 5  ;;  %v586_v34 = vrot.slane %v584_v22, 5 }
  0x39   : > { %1705 = vmatpush.bf16.msrb.mxu3 %v5491_v3  ;;  %1009 = vmatpush.bf16.msrb.mxu1 %v5451_v18  ;;  %v496_v37 = vrot.slane %v495_v24, 4  ;;  %v5959_v38 = vunpack.c.l.b16 %v491_v32  ;;  %v590_v39 = vrot.slane %v588_v25, 4  ;;  %v596_v40 = vrot.slane %v594_v26, 5  ;;  %v5488_v18 = vld [vmem:[%s7317_s1 + $0xd8] sm:$0xff]  ;;  %v5497_v24 = vld [vmem:[%s7317_s1 + $0x120] sm:$0xff] }
  0x3a   : > { %v581_v42 = vor.u32 %v580_v33, %v577_v16  ;;  %v289_v43 = vrot.slane %v287_v28, 4  ;;  %v290_v44 = vshll.u32 %v197_v17, 16  ;;  %v296_v45 = vshll.u32 %v5944_v27, 16  ;;  %v5464_v17 = vld [vmem:[%s7317_s1 + $0x98] sm:$0xff]  ;;  %v253_v33 = vld [vmem:[%s5825_s11 + $0x80] sm:$0x1] }
  0x3b   : > { %v501_v47 = vsel %vm5840_vm2, %v496_v37, %v500_v59  ;;  %v591_v48 = vor.u32 %v590_v39, %v586_v34  ;;  %v300_v49 = vshrl.u32 %v5944_v27, 16  ;;  %v306_v52 = vshll.u32 %v5954_v35, 16  ;;  %2387 = vmatpush.bf16.msrb.mxu0 %v5499_v36  ;;  %v216_v32 = vld [vmem:[%s5825_s11 + $0x7c] sm:$0xf] }
  0x3c   : > { %1391 = vmatpush.bf16.msrb.mxu2 %v5466_v23  ;;  %v682_v55 = vunpack.c.l.b16 %v501_v47  ;;  %v582_v56 = vrot.slane %v581_v42, 4  ;;  %v292_v57 = vrot.slane %v290_v44, 5  ;;  %v298_v58 = vrot.slane %v296_v45, 5  ;;  %v5487_v42 = vld [vmem:[%s7317_s1 + $0xd0] sm:$0xff] }
  0x3d   : > { %1706 = vmatpush.bf16.msrb.mxu3 %v5490_v29  ;;  %v592_v63 = vrot.slane %v591_v48, 4  ;;  %v302_v0 = vrot.slane %v300_v49, 4  ;;  %v308_v1 = vrot.slane %v306_v52, 5  ;;  %1010 = vmatpush.bf16.msrb.mxu1 %v5450_v41  ;;  %v407_v3 = vshrl.u32 %v207_v46, 16  ;;  %v5463_v41 = vld [vmem:[%s7317_s1 + $0x90] sm:$0xff] }
  0x3e   : > { %v704_v5 = vpack.c.b16 %v682_v55, %v5959_v38  ;;  %v587_v6 = vsel %vm5840_vm2, %v582_v56, %v586_v34  ;;  %v293_v7 = vor.u32 %v292_v57, %v289_v43  ;;  %v410_v9 = vshll.u32 %v207_v46, 16  ;;  %v5448_v34 = vld [vmem:[%s7317_s1 + $0x18] sm:$0xff]  ;;  %v5447_v56 = vld [vmem:[%s7317_s1 + $0x10] sm:$0xff] }
  0x3f   : > { %v597_v11 = vsel %vm5840_vm2, %v592_v63, %v596_v40  ;;  %v689_v13 = vunpack.c.l.b16 %v587_v6  ;;  %v303_v14 = vor.u32 %v302_v0, %v298_v58  ;;  %v409_v15 = vrot.slane %v407_v3, 4  ;;  %2388 = vmatpush.bf16.msrb.mxu0 %v5498_v60  ;;  %v223_v40 = vld [vmem:[%s5825_s11 + $0xa8] sm:$0xf]  ;;  %v257_v63 = vld [vmem:[%s5825_s11 + $0xb0] sm:$0x1] }
  0x40   : > { %1392 = vmatpush.bf16.msrb.mxu2 %v5465_v53  ;;  %v690_v50 = vunpack.c.l.b16 %v597_v11  ;;  %v294_v51 = vrot.slane %v293_v7, 4  ;;  %v412_v59 = vrot.slane %v410_v9, 5  ;;  %v416_v16 = vshll.u32 %v5983_v2, 16  ;;  %v5496_v53 = vld [vmem:[%s7317_s1 + $0x118] sm:$0xff] }
  0x41   : > { %1707 = vmatpush.bf16.msrb.mxu3 %v5489_v54  ;;  %v304_v20 = vrot.slane %v303_v14, 4  ;;  %1011 = vmatpush.bf16.msrb.mxu1 %v5449_v61  ;;  %v420_v21 = vshrl.u32 %v5983_v2, 16  ;;  %v426_v22 = vshll.u32 %v249_v8, 16  ;;  %v503_v23 = vshrl.u32 %v215_v10, 16  ;;  %v199_v6 = vld [vmem:[%s5825_s11 + $0x18] sm:$0xf] }
  0x42   : > { %v708_v25 = vpack.c.b16 %v690_v50, %v689_v13  ;;  %v299_v26 = vsel %vm5840_vm2, %v294_v51, %v298_v58  ;;  %v413_v28 = vor.u32 %v412_v59, %v409_v15  ;;  %v418_v29 = vrot.slane %v416_v16, 5  ;;  %v6041_v59 = vld [vmem:[%s5825_s11 + $0x1c] sm:$0xf] }
  0x43   : > { %v309_v36 = vsel %vm5840_vm2, %v304_v20, %v308_v1  ;;  %v665_v37 = vunpack.c.l.b16 %v299_v26  ;;  %v422_v38 = vrot.slane %v420_v21, 4  ;;  %v428_v39 = vrot.slane %v426_v22, 5  ;;  %808 = vmatmul.bf16.gmra.mxu1 %v700_v31  ;;  %828 = vmatmul.bf16.gmra.mxu2 %v704_v5  ;;  %v224_v31 = vld [vmem:[%s5825_s11 + $0xac] sm:$0xf] }
  0x44   : > { %1393 = vmatpush.bf16.msrb.mxu2 %v5464_v17  ;;  %v666_v43 = vunpack.c.l.b16 %v309_v36  ;;  %v414_v44 = vrot.slane %v413_v28, 4  ;;  %v505_v45 = vrot.slane %v503_v23, 4  ;;  %v506_v46 = vshll.u32 %v215_v10, 16  ;;  %848 = vmatmul.bf16.gmra.mxu3 %v708_v25  ;;  %v5462_v17 = vld [vmem:[%s7317_s1 + $0x88] sm:$0xff]  ;;  %v209_v25 = vld [vmem:[%s5825_s11 + $0x54] sm:$0xf] }
  0x45   : > { %1708 = vmatpush.bf16.msrb.mxu3 %v5488_v18  ;;  %v423_v47 = vor.u32 %v422_v38, %v418_v29  ;;  %v512_v48 = vshll.u32 %v216_v32, 16  ;;  %v516_v49 = vshrl.u32 %v216_v32, 16  ;;  %v522_v52 = vshll.u32 %v253_v33, 16  ;;  %2389 = vmatpush.bf16.msrb.mxu0 %v5497_v24  ;;  %v6047_v24 = vld [vmem:[%s5825_s11 + $0x20] sm:$0x1]  ;;  %v5486_v38 = vld [vmem:[%s7317_s1 + $0xc8] sm:$0xff] }
  0x46   : > { %v696_v54 = vpack.c.b16 %v666_v43, %v665_v37  ;;  %v419_v12 = vsel %vm5840_vm2, %v414_v44, %v418_v29  ;;  %v508_v19 = vrot.slane %v506_v46, 5  ;;  %v599_v55 = vshrl.u32 %v223_v40, 16  ;;  %1012 = vmatpush.bf16.msrb.mxu1 %v5448_v34 }
  0x47   : > { %v424_v57 = vrot.slane %v423_v47, 4  ;;  %v6031_v58 = vunpack.c.l.b16 %v419_v12  ;;  %v514_v60 = vrot.slane %v512_v48, 5  ;;  %v518_v61 = vrot.slane %v516_v49, 4 }
  0x48   : > { %1394 = vmatpush.bf16.msrb.mxu2 %v5463_v41  ;;  %788 = vmatmul.bf16.gmra.mxu0 %v696_v54  ;;  %v509_v0 = vor.u32 %v508_v19, %v505_v45  ;;  %v524_v1 = vrot.slane %v522_v52, 5  ;;  %v601_v3 = vrot.slane %v599_v55, 4  ;;  %v602_v5 = vshll.u32 %v223_v40, 16  ;;  %v5446_v40 = vld [vmem:[%s7317_s1 + $0x8] sm:$0xff]  ;;  %v5461_v45 = vld [vmem:[%s7317_s1 + $0x80] sm:$0xff] }
  0x49   : > { %1709 = vmatpush.bf16.msrb.mxu3 %v5487_v42  ;;  %v429_v7 = vsel %vm5840_vm2, %v424_v57, %v428_v39  ;;  %v519_v8 = vor.u32 %v518_v61, %v514_v60  ;;  %v608_v9 = vshll.u32 %v224_v31, 16  ;;  %v612_v10 = vshrl.u32 %v224_v31, 16  ;;  %2390 = vmatpush.bf16.msrb.mxu0 %v5496_v53  ;;  %v5495_v39 = vld [vmem:[%s7317_s1 + $0x110] sm:$0xff]  ;;  %v6070_v52 = vld [vmem:[%s5825_s11 + $0x58] sm:$0xf]  ;;  %v5494_v57 = vld [vmem:[%s7317_s1 + $0x108] sm:$0xff] }
  0x4a   : > { %v676_v11 = vunpack.c.l.b16 %v429_v7  ;;  %v510_v13 = vrot.slane %v509_v0, 4  ;;  %v604_v14 = vrot.slane %v602_v5, 5  ;;  %v618_v15 = vshll.u32 %v257_v63, 16  ;;  %1013 = vmatpush.bf16.msrb.mxu1 %v5447_v56  ;;  %v6073_v53 = vld [vmem:[%s5825_s11 + $0x5c] sm:$0x1]  ;;  %v5485_v56 = vld [vmem:[%s7317_s1 + $0xc0] sm:$0xff] }
  0x4b   : > { %v520_v18 = vrot.slane %v519_v8, 4  ;;  %v610_v50 = vrot.slane %v608_v9, 5  ;;  %v614_v51 = vrot.slane %v612_v10, 4  ;;  %v311_v16 = vshrl.u32 %v199_v6, 16  ;;  %v217_v55 = vld [vmem:[%s5825_s11 + $0x84] sm:$0xf] }
  0x4c   : > { %v701_v20 = vpack.c.b16 %v676_v11, %v6031_v58  ;;  %v515_v21 = vsel %vm5840_vm2, %v510_v13, %v514_v60  ;;  %v605_v22 = vor.u32 %v604_v14, %v601_v3  ;;  %v620_v23 = vrot.slane %v618_v15, 5  ;;  %1395 = vmatpush.bf16.msrb.mxu2 %v5462_v17  ;;  %v5445_v0 = vld [vmem:[%s7317_s1] sm:$0xff]  ;;  %v218_v10 = vld [vmem:[%s5825_s11 + $0x88] sm:$0xf] }
  0x4d   : > { %v525_v26 = vsel %vm5840_vm2, %v520_v18, %v524_v1  ;;  %v683_v28 = vunpack.c.l.b16 %v515_v21  ;;  %v615_v29 = vor.u32 %v614_v51, %v610_v50  ;;  %v313_v32 = vrot.slane %v311_v16, 4  ;;  %1710 = vmatpush.bf16.msrb.mxu3 %v5486_v38  ;;  %2391 = vmatpush.bf16.msrb.mxu0 %v5495_v39  ;;  %v5493_v18 = vld [vmem:[%s7317_s1 + $0x100] sm:$0xff]  ;;  %v254_v16 = vld [vmem:[%s5825_s11 + $0x8c] sm:$0x1]  ;;  %v226_v39 = vld [vmem:[%s5825_s11 + $0xb8] sm:$0xf] }
  0x4e   : > { %v684_v33 = vunpack.c.l.b16 %v525_v26  ;;  %v606_v34 = vrot.slane %v605_v22, 4  ;;  %v314_v36 = vshll.u32 %v199_v6, 16  ;;  %v320_v37 = vshll.u32 %v6041_v59, 16  ;;  %1014 = vmatpush.bf16.msrb.mxu1 %v5446_v40  ;;  %v225_v22 = vld [vmem:[%s5825_s11 + $0xb4] sm:$0xf] }
  0x4f   : > { %v616_v41 = vrot.slane %v615_v29, 4  ;;  %v324_v42 = vshrl.u32 %v6041_v59, 16  ;;  %v330_v43 = vshll.u32 %v6047_v24, 16  ;;  %v431_v44 = vshrl.u32 %v209_v25, 16 }
  0x50   : > { %v705_v46 = vpack.c.b16 %v684_v33, %v683_v28  ;;  %v611_v47 = vsel %vm5840_vm2, %v606_v34, %v610_v50  ;;  %v316_v48 = vrot.slane %v314_v36, 5  ;;  %v322_v49 = vrot.slane %v320_v37, 5  ;;  %1396 = vmatpush.bf16.msrb.mxu2 %v5461_v45  ;;  %v258_v45 = vld [vmem:[%s5825_s11 + $0xbc] sm:$0x1] }
  0x51   : > { %v621_v54 = vsel %vm5840_vm2, %v616_v41, %v620_v23  ;;  %v691_v12 = vunpack.c.l.b16 %v611_v47  ;;  %v326_v19 = vrot.slane %v324_v42, 4  ;;  %v332_v31 = vrot.slane %v330_v43, 5  ;;  %1711 = vmatpush.bf16.msrb.mxu3 %v5485_v56  ;;  %2392 = vmatpush.bf16.msrb.mxu0 %v5494_v57  ;;  %v5532_v47 = vld [vmem:[%s7317_s1 + $0x1b8] sm:$0xff] }
  0x52   : > { %v692_v58 = vunpack.c.l.b16 %v621_v54  ;;  %v317_v60 = vor.u32 %v316_v48, %v313_v32  ;;  %v433_v61 = vrot.slane %v431_v44, 4  ;;  %v434_v63 = vshll.u32 %v209_v25, 16  ;;  %1015 = vmatpush.bf16.msrb.mxu1 %v5445_v0 }
  0x53   : > { %v327_v1 = vor.u32 %v326_v19, %v322_v49  ;;  %v440_v3 = vshll.u32 %v6070_v52, 16  ;;  %v444_v5 = vshrl.u32 %v6070_v52, 16  ;;  %v450_v6 = vshll.u32 %v6073_v53, 16  ;;  %813 = vmatmul.bf16.gmra.mxu1 %v701_v20  ;;  %833 = vmatmul.bf16.gmra.mxu2 %v705_v46  ;;  %v201_v46 = vld [vmem:[%s5825_s11 + $0x24] sm:$0xf] }
  0x54   : > { %v709_v7 = vpack.c.b16 %v692_v58, %v691_v12  ;;  %v318_v8 = vrot.slane %v317_v60, 4  ;;  %v436_v9 = vrot.slane %v434_v63, 5  ;;  %v527_v11 = vshrl.u32 %v217_v55, 16  ;;  %3127 = vmatpush.bf16.msra.mxu2 %v5532_v47 }
  0x55   : > { %v328_v13 = vrot.slane %v327_v1, 4  ;;  %v442_v14 = vrot.slane %v440_v3, 5  ;;  %v446_v15 = vrot.slane %v444_v5, 4  ;;  %v452_v17 = vrot.slane %v450_v6, 5  ;;  %2393 = vmatpush.bf16.msrb.mxu0 %v5493_v18  ;;  %v5540_v6 = vld [vmem:[%s7317_s1 + $0x1f8] sm:$0xff] }
  0x56   : > { %853 = vmatmul.bf16.gmra.mxu3 %v709_v7  ;;  %v323_v50 = vsel %vm5840_vm2, %v318_v8, %v322_v49  ;;  %v437_v51 = vor.u32 %v436_v9, %v433_v61  ;;  %v529_v20 = vrot.slane %v527_v11, 4  ;;  %v530_v21 = vshll.u32 %v217_v55, 16  ;;  %v6111_v61 = vld [vmem:[%s5825_s11 + $0x28] sm:$0xf]  ;;  %v5508_v7 = vld [vmem:[%s7317_s1 + $0x178] sm:$0xff] }
  0x57   : > { %v333_v23 = vsel %vm5840_vm2, %v328_v13, %v332_v31  ;;  %v667_v25 = vunpack.c.l.b16 %v323_v50  ;;  %v447_v26 = vor.u32 %v446_v15, %v442_v14  ;;  %v536_v28 = vshll.u32 %v218_v10, 16  ;;  %v5548_v8 = vld [vmem:[%s7317_s1 + $0x238] sm:$0xff]  ;;  %3809 = vmatpush.bf16.msra.mxu3 %v5540_v6  ;;  %2812 = vmatpush.bf16.msra.mxu1 %v5508_v7 }
  0x58   : > { %v668_v29 = vunpack.c.l.b16 %v333_v23  ;;  %v438_v32 = vrot.slane %v437_v51, 4  ;;  %v532_v33 = vrot.slane %v530_v21, 5  ;;  %v540_v34 = vshrl.u32 %v218_v10, 16 }
  0x59   : > { %v448_v36 = vrot.slane %v447_v26, 4  ;;  %v538_v37 = vrot.slane %v536_v28, 5  ;;  %v546_v38 = vshll.u32 %v254_v16, 16  ;;  %v623_v40 = vshrl.u32 %v225_v22, 16  ;;  %4235 = vmatpush.bf16.msra.mxu0 %v5548_v8  ;;  %v1097_v26 = vld [vmem:[%s5825_s11] sm:$0xe] }
  0x5a   : > { %v697_v41 = vpack.c.b16 %v668_v29, %v667_v25  ;;  %v443_v42 = vsel %vm5840_vm2, %v438_v32, %v442_v14  ;;  %v533_v43 = vor.u32 %v532_v33, %v529_v20  ;;  %v542_v44 = vrot.slane %v540_v34, 4  ;;  %v6125_v14 = vld [vmem:[%s5825_s11 + $0x2c] sm:$0x1] }
  0x5b   : > { %v453_v48 = vsel %vm5840_vm2, %v448_v36, %v452_v17  ;;  %v677_v49 = vunpack.c.l.b16 %v443_v42  ;;  %v548_v54 = vrot.slane %v546_v38, 5  ;;  %v625_v12 = vrot.slane %v623_v40, 4  ;;  %v4931_v38 = vld [vmem:[%s5825_s11 + $0xc] sm:$0xf] }
  0x5c   : > { %793 = vmatmul.bf16.gmra.mxu0 %v697_v41  ;;  %v678_v19 = vunpack.c.l.b16 %v453_v48  ;;  %v534_v31 = vrot.slane %v533_v43, 4  ;;  %v543_v55 = vor.u32 %v542_v44, %v538_v37  ;;  %v626_v56 = vshll.u32 %v225_v22, 16 }
  0x5d   : > { %v632_v57 = vshll.u32 %v226_v39, 16  ;;  %v636_v58 = vshrl.u32 %v226_v39, 16  ;;  %v642_v60 = vshll.u32 %v258_v45, 16  ;;  %v335_v63 = vshrl.u32 %v201_v46, 16  ;;  %v4932_v39 = vld [vmem:[%s5825_s11 + $0x10] sm:$0xf] }
  0x5e   : > { %v702_v0 = vpack.c.b16 %v678_v19, %v677_v49  ;;  %v539_v1 = vsel %vm5840_vm2, %v534_v31, %v538_v37  ;;  %v544_v3 = vrot.slane %v543_v55, 4  ;;  %v628_v5 = vrot.slane %v626_v56, 5 }
  0x5f   : > { %v685_v9 = vunpack.c.l.b16 %v539_v1  ;;  %v634_v10 = vrot.slane %v632_v57, 5  ;;  %v638_v11 = vrot.slane %v636_v58, 4  ;;  %v644_v13 = vrot.slane %v642_v60, 5  ;;  %v4933_v58 = vld [vmem:[%s5825_s11 + $0x14] sm:$0x1] }
  0x60   : > { %v549_v15 = vsel %vm5840_vm2, %v544_v3, %v548_v54  ;;  %v629_v17 = vor.u32 %v628_v5, %v625_v12  ;;  %v337_v18 = vrot.slane %v335_v63, 4  ;;  %v338_v50 = vshll.u32 %v201_v46, 16 }
  0x61   : > { %v686_v51 = vunpack.c.l.b16 %v549_v15  ;;  %v639_v16 = vor.u32 %v638_v11, %v634_v10  ;;  %v344_v20 = vshll.u32 %v6111_v61, 16  ;;  %v348_v21 = vshrl.u32 %v6111_v61, 16 }
  0x62   : > { %v630_v22 = vrot.slane %v629_v17, 4  ;;  %v340_v23 = vrot.slane %v338_v50, 5  ;;  %v354_v25 = vshll.u32 %v6125_v14, 16  ;;  %v4723_v44 = vrot.slane %v1097_v26, 9  ;;  %v4934_v50 = vld [vmem:[%s5825_s11 + $0x18] sm:$0xf] }
  0x63   : > { %v706_v28 = vpack.c.b16 %v686_v51, %v685_v9  ;;  %v640_v29 = vrot.slane %v639_v16, 4  ;;  %v346_v32 = vrot.slane %v344_v20, 5  ;;  %v350_v33 = vrot.slane %v348_v21, 4  ;;  %818 = vmatmul.bf16.gmra.mxu1 %v702_v0  ;;  %v5429_v51 = vld [vmem:[%s5825_s11] sm:$0xff]  ;;  %v4935_v16 = vld [vmem:[%s5825_s11 + $0x1c] sm:$0xf] }
  0x64   : > { %v635_v34 = vsel %vm5840_vm2, %v630_v22, %v634_v10  ;;  %v341_v36 = vor.u32 %v340_v23, %v337_v18  ;;  %v356_v37 = vrot.slane %v354_v25, 5  ;;  %v1150_v47 = vrot.slane %v5865_v62, 5  ;;  %v1098_v21 = vld [vmem:[%s5825_s11 + $0xc] sm:$0xe] }
  0x65   : > { %838 = vmatmul.bf16.gmra.mxu2 %v706_v28  ;;  %v645_v40 = vsel %vm5840_vm2, %v640_v29, %v644_v13  ;;  %v693_v41 = vunpack.c.l.b16 %v635_v34  ;;  %v351_v42 = vor.u32 %v350_v33, %v346_v32  ;;  %v1153_v48 = vrot.slane %v5872_v4, 5  ;;  %v5469_v34 = vld [vmem:[%s5825_s11 + $0xc] sm:$0xff] }
  0x66   : > { %v694_v45 = vunpack.c.l.b16 %v645_v40  ;;  %v342_v46 = vrot.slane %v341_v36, 4  ;;  %v1874_v54 = vshrl.u32 %v4931_v38, 16  ;;  %v1877_v12 = vshll.u32 %v4931_v38, 16 }
  0x67   : > { %v352_v49 = vrot.slane %v351_v42, 4  ;;  %v1883_v19 = vshll.u32 %v4932_v39, 16  ;;  %v1151_v56 = vsel %vm6140_vm5, %v4723_v44, %v1150_v47  ;;  %v1152_v57 = vrot.slane %v1150_v47, 4  ;;  %v4936_v44 = vld [vmem:[%s5825_s11 + $0x20] sm:$0x1] }
  0x68   : > { %v710_v31 = vpack.c.b16 %v694_v45, %v693_v41  ;;  %v347_v55 = vsel %vm5840_vm2, %v342_v46, %v346_v32  ;;  %v1277_v62 = vunpack.c.l.b16 %v1151_v56  ;;  %v1876_v0 = vrot.slane %v1874_v54, 4  ;;  %v5507_v56 = vld [vmem:[%s7317_s1 + $0x170] sm:$0xff] }
  0x69   : > { %v357_v60 = vsel %vm5840_vm2, %v352_v49, %v356_v37  ;;  %v669_v63 = vunpack.c.l.b16 %v347_v55  ;;  %v1154_v1 = vsel %vm6140_vm5, %v1152_v57, %v1153_v48  ;;  %v1879_v3 = vrot.slane %v1877_v12, 5  ;;  %v5531_v48 = vld [vmem:[%s7317_s1 + $0x1b0] sm:$0xff]  ;;  %2813 = vmatpush.bf16.msra.mxu1 %v5507_v56 }
  0x6a   : > { %858 = vmatmul.bf16.gmra.mxu3 %v710_v31  ;;  %v670_v4 = vunpack.c.l.b16 %v357_v60  ;;  %v1278_v5 = vunpack.c.l.b16 %v1154_v1  ;;  %v1885_v6 = vrot.slane %v1883_v19, 5  ;;  %v1887_v7 = vshrl.u32 %v4932_v39, 16  ;;  %3128 = vmatpush.bf16.msra.mxu2 %v5531_v48  ;;  %v4937_v31 = vld [vmem:[%s5825_s11 + $0x24] sm:$0xf]  ;;  %v5539_v55 = vld [vmem:[%s7317_s1 + $0x1f0] sm:$0xff] }
  0x6b   : > { %v1893_v8 = vshll.u32 %v4933_v58, 16  ;;  %v1880_v10 = vor.u32 %v1879_v3, %v1876_v0  ;;  %v1157_v22 = vrot.slane %v5944_v27, 5  ;;  %v1898_v23 = vshrl.u32 %v4934_v50, 16  ;;  %v5547_v57 = vld [vmem:[%s7317_s1 + $0x230] sm:$0xff]  ;;  %3810 = vmatpush.bf16.msra.mxu3 %v5539_v55  ;;  %v1100_v48 = vld [vmem:[%s5825_s11 + $0x24] sm:$0xe] }
  0x6c   : > { %v698_v9 = vpack.c.b16 %v670_v4, %v669_v63  ;;  %v1309_v11 = vpack.c.b16 %v1278_v5, %v1277_v62  ;;  %v1889_v13 = vrot.slane %v1887_v7, 4  ;;  %v1901_v25 = vshll.u32 %v4934_v50, 16  ;;  %v4938_v62 = vld [vmem:[%s5825_s11 + $0x28] sm:$0xf]  ;;  %v5430_v0 = vld [vmem:[%s5825_s11 + $0xc] sm:$0xff]  ;;  %4236 = vmatpush.bf16.msra.mxu0 %v5547_v57 }
  0x6d   : > { %v1881_v15 = vrot.slane %v1880_v10, 4  ;;  %v1895_v18 = vrot.slane %v1893_v8, 5  ;;  %v1907_v29 = vshll.u32 %v4935_v16, 16  ;;  %v1911_v32 = vshrl.u32 %v4935_v16, 16 }
  0x6e   : > { %798 = vmatmul.bf16.gmra.mxu0 %v698_v9  ;;  %v1890_v17 = vor.u32 %v1889_v13, %v1885_v6  ;;  %v4724_v33 = vrot.slane %v1098_v21, 9  ;;  %v1159_v38 = vrot.slane %v1157_v22, 4  ;;  %v1160_v27 = vrot.slane %v5954_v35, 5  ;;  %v4939_v21 = vld [vmem:[%s5825_s11 + $0x2c] sm:$0x1] }
  0x6f   : > { %v1886_v26 = vsel %vm5840_vm2, %v1881_v15, %v1885_v6  ;;  %v1900_v39 = vrot.slane %v1898_v23, 4  ;;  %v1903_v40 = vrot.slane %v1901_v25, 5  ;;  %v1909_v41 = vrot.slane %v1907_v29, 5  ;;  %v1099_v6 = vld [vmem:[%s5825_s11 + $0x18] sm:$0xe] }
  0x70   : > { %v1891_v20 = vrot.slane %v1890_v17, 4  ;;  %v2274_v36 = vunpack.c.l.b16 %v1886_v26  ;;  %v1913_v42 = vrot.slane %v1911_v32, 4  ;;  %v1158_v46 = vsel %vm6140_vm5, %v4724_v33, %v1157_v22 }
  0x71   : > { %v1161_v47 = vsel %vm6140_vm5, %v1159_v38, %v1160_v27  ;;  %v1904_v35 = vor.u32 %v1903_v40, %v1900_v39  ;;  %v1917_v54 = vshll.u32 %v4936_v44, 16  ;;  %v1279_v12 = vunpack.c.l.b16 %v1158_v46  ;;  %v4941_v38 = vld [vmem:[%s5825_s11 + $0x34] sm:$0xf]  ;;  %v5431_v27 = vld [vmem:[%s5825_s11 + $0x18] sm:$0xff] }
  0x72   : > { %v1896_v28 = vsel %vm5840_vm2, %v1891_v20, %v1895_v18  ;;  %v1914_v49 = vor.u32 %v1913_v42, %v1909_v41  ;;  %v1280_v19 = vunpack.c.l.b16 %v1161_v47  ;;  %v1164_v1 = vrot.slane %v6041_v59, 5  ;;  %v5470_v18 = vld [vmem:[%s5825_s11 + $0x18] sm:$0xff] }
  0x73   : > { %1016 = vmatmul.bf16.vlgmr.msrb.gmra.mxu1 %v5429_v51  ;;  %v2275_v37 = vunpack.c.l.b16 %v1896_v28  ;;  %v1905_v58 = vrot.slane %v1904_v35, 4  ;;  %v1919_v63 = vrot.slane %v1917_v54, 5  ;;  %v1922_v3 = vshrl.u32 %v4937_v31, 16 }
  0x74   : > { %v1915_v60 = vrot.slane %v1914_v49, 4  ;;  %v1310_v4 = vpack.c.b16 %v1280_v19, %v1279_v12  ;;  %v1925_v5 = vshll.u32 %v4937_v31, 16  ;;  %v1931_v7 = vshll.u32 %v4938_v62, 16  ;;  %v5471_v31 = vld [vmem:[%s5825_s11 + $0x24] sm:$0xff] }
  0x75   : > { %1397 = vmatmul.bf16.vlgmr.msrb.gmra.mxu2 %v1309_v11  ;;  %v2306_v45 = vpack.c.b16 %v2275_v37, %v2274_v36  ;;  %v1935_v8 = vshrl.u32 %v4938_v62, 16  ;;  %v1910_v9 = vsel %vm5840_vm2, %v1905_v58, %v1909_v41  ;;  %v1167_v11 = vrot.slane %v6047_v24, 5  ;;  %v4940_v37 = vld [vmem:[%s5825_s11 + $0x30] sm:$0xf] }
  0x76   : > { %v1920_v10 = vsel %vm5840_vm2, %v1915_v60, %v1919_v63  ;;  %v4725_v13 = vrot.slane %v1099_v6, 9  ;;  %v1166_v59 = vrot.slane %v1164_v1, 4  ;;  %v1924_v15 = vrot.slane %v1922_v3, 4  ;;  %v4943_v6 = vld [vmem:[%s5825_s11 + $0x3c] sm:$0xf] }
  0x77   : > { %v1927_v17 = vrot.slane %v1925_v5, 5  ;;  %v2276_v50 = vunpack.c.l.b16 %v1910_v9  ;;  %v2277_v51 = vunpack.c.l.b16 %v1920_v10  ;;  %v1933_v16 = vrot.slane %v1931_v7, 5  ;;  %v4944_v7 = vld [vmem:[%s5825_s11 + $0x40] sm:$0xf] }
  0x78   : > { %v1937_v20 = vrot.slane %v1935_v8, 4  ;;  %v1165_v22 = vsel %vm6140_vm5, %v4725_v13, %v1164_v1  ;;  %v1168_v25 = vsel %vm6140_vm5, %v1166_v59, %v1167_v11  ;;  %v1941_v28 = vshll.u32 %v4939_v21, 16  ;;  %v5530_v1 = vld [vmem:[%s7317_s1 + $0x1a8] sm:$0xff]  ;;  %v5618_v21 = vld [vmem:[%s5825_s11 + $0x34] sm:$0xf] }
  0x79   : > { %v1928_v23 = vor.u32 %v1927_v17, %v1924_v15  ;;  %v2307_v24 = vpack.c.b16 %v2277_v51, %v2276_v50  ;;  %v1281_v29 = vunpack.c.l.b16 %v1165_v22  ;;  %v1282_v32 = vunpack.c.l.b16 %v1168_v25  ;;  %3129 = vmatpush.bf16.msra.mxu2 %v5530_v1  ;;  %v5538_v11 = vld [vmem:[%s7317_s1 + $0x1e8] sm:$0xff]  ;;  %v1102_v1 = vld [vmem:[%s5825_s11 + $0x3c] sm:$0xe] }
  0x7a   : > { %1712 = vmatmul.bf16.vlgmr.msrb.gmra.mxu3 %v5469_v34  ;;  %v1938_v26 = vor.u32 %v1937_v20, %v1933_v16  ;;  %v1943_v36 = vrot.slane %v1941_v28, 5  ;;  %v1946_v41 = vshrl.u32 %v4940_v37, 16  ;;  %v1949_v42 = vshll.u32 %v4940_v37, 16  ;;  %v5506_v13 = vld [vmem:[%s7317_s1 + $0x168] sm:$0xff]  ;;  %v5619_v37 = vld [vmem:[%s5825_s11 + $0x38] sm:$0x1] }
  0x7b   : > { %v1929_v33 = vrot.slane %v1928_v23, 4  ;;  %v1311_v39 = vpack.c.b16 %v1282_v32, %v1281_v29  ;;  %v1955_v46 = vshll.u32 %v4941_v38, 16  ;;  %v1959_v47 = vshrl.u32 %v4941_v38, 16  ;;  %v5546_v59 = vld [vmem:[%s7317_s1 + $0x228] sm:$0xff]  ;;  %3811 = vmatpush.bf16.msra.mxu3 %v5538_v11  ;;  %2814 = vmatpush.bf16.msra.mxu1 %v5506_v13  ;;  %v5621_v13 = vld [vmem:[%s5825_s11 + $0x44] sm:$0x1] }
  0x7c   : > { %v1939_v34 = vrot.slane %v1938_v26, 4  ;;  %v1174_v54 = vrot.slane %v6125_v14, 5  ;;  %v1948_v12 = vrot.slane %v1946_v41, 4  ;;  %v1951_v19 = vrot.slane %v1949_v42, 5  ;;  %v5432_v15 = vld [vmem:[%s5825_s11 + $0x24] sm:$0xff]  ;;  %4237 = vmatpush.bf16.msra.mxu0 %v5546_v59 }
  0x7d   : > { %v1934_v40 = vsel %vm5840_vm2, %v1929_v33, %v1933_v16  ;;  %v4726_v55 = vrot.slane %v1100_v48, 9  ;;  %v1957_v57 = vrot.slane %v1955_v46, 5  ;;  %v1961_v58 = vrot.slane %v1959_v47, 4  ;;  %v5472_v33 = vld [vmem:[%s5825_s11 + $0x30] sm:$0xff] }
  0x7e   : > { %2394 = vmatmul.bf16.vlgmr.msrb.gmra.mxu0 %v2306_v45  ;;  %v1944_v44 = vsel %vm5840_vm2, %v1939_v34, %v1943_v36  ;;  %v1171_v45 = vrot.slane %v6111_v61, 5  ;;  %v2278_v35 = vunpack.c.l.b16 %v1934_v40  ;;  %v4942_v61 = vld [vmem:[%s5825_s11 + $0x38] sm:$0x1]  ;;  %v1952_v63 = vor.u32 %v1951_v19, %v1948_v12  ;;  %v4946_v12 = vld [vmem:[%s5825_s11 + $0x48] sm:$0xf] }
  0x7f   : > { %v2279_v49 = vunpack.c.l.b16 %v1944_v44  ;;  %v1962_v14 = vor.u32 %v1961_v58, %v1957_v57  ;;  %v1970_v17 = vshrl.u32 %v4943_v6, 16  ;;  %v1979_v51 = vshll.u32 %v4944_v7, 16  ;;  %v4947_v19 = vld [vmem:[%s5825_s11 + $0x4c] sm:$0xf] }
  0x80   : > { %v1173_v56 = vrot.slane %v1171_v45, 4  ;;  %v1172_v62 = vsel %vm6140_vm5, %v4726_v55, %v1171_v45  ;;  %v1953_v8 = vrot.slane %v1952_v63, 4  ;;  %v1178_v22 = vrot.slane %v5618_v21, 5 }
  0x81   : > { %v2308_v60 = vpack.c.b16 %v2279_v49, %v2278_v35  ;;  %v1283_v3 = vunpack.c.l.b16 %v1172_v62  ;;  %v1963_v9 = vrot.slane %v1962_v14, 4  ;;  %v1983_v23 = vshrl.u32 %v4944_v7, 16  ;;  %v5620_v62 = vld [vmem:[%s5825_s11 + $0x40] sm:$0xf] }
  0x82   : > { %v1958_v16 = vsel %vm5840_vm2, %v1953_v8, %v1957_v57  ;;  %v1972_v25 = vrot.slane %v1970_v17, 4  ;;  %v1981_v32 = vrot.slane %v1979_v51, 5  ;;  %v1180_v36 = vrot.slane %v1178_v22, 4 }
  0x83   : > { %1021 = vmatmul.bf16.gmra.mxu1 %v5430_v0  ;;  %v1175_v0 = vsel %vm6140_vm5, %v1173_v56, %v1174_v54  ;;  %v2280_v28 = vunpack.c.l.b16 %v1958_v16  ;;  %v1181_v38 = vrot.slane %v5619_v37, 5  ;;  %v1994_v58 = vshrl.u32 %v4946_v12, 16  ;;  %v4950_v37 = vld [vmem:[%s5825_s11 + $0x58] sm:$0xf] }
  0x84   : > { %v1284_v5 = vunpack.c.l.b16 %v1175_v0  ;;  %v1185_v0 = vrot.slane %v5620_v62, 5  ;;  %v2007_v14 = vshrl.u32 %v4947_v19, 16  ;;  %v1188_v59 = vrot.slane %v5621_v13, 5 }
  0x85   : > { %1402 = vmatmul.bf16.gmra.mxu2 %v1310_v4  ;;  %v1965_v4 = vshll.u32 %v4942_v61, 16  ;;  %v1182_v44 = vsel %vm6140_vm5, %v1180_v36, %v1181_v38  ;;  %v1997_v61 = vshll.u32 %v4946_v12, 16  ;;  %v5537_v38 = vld [vmem:[%s7317_s1 + $0x1e0] sm:$0xff]  ;;  %v2031_v12 = vshrl.u32 %v4950_v37, 16 }
  0x86   : > { %v1312_v50 = vpack.c.b16 %v1284_v5, %v1283_v3  ;;  %v1286_v35 = vunpack.c.l.b16 %v1182_v44  ;;  %v1187_v11 = vrot.slane %v1185_v0, 4  ;;  %3812 = vmatpush.bf16.msra.mxu3 %v5537_v38 }
  0x87   : > { %v1967_v10 = vrot.slane %v1965_v4, 5  ;;  %v1999_v7 = vrot.slane %v1997_v61, 5 }
  0x89   : > { %v1968_v20 = vsel %vm5840_vm2, %v1963_v9, %v1967_v10  ;;  %v5473_v9 = vld [vmem:[%s5825_s11 + $0x3c] sm:$0xff]  ;;  %v4728_v10 = vrot.slane %v1102_v1, 9 }
  0x8a   : > { %1717 = vmatmul.bf16.gmra.mxu3 %v5470_v18  ;;  %v1973_v18 = vshll.u32 %v4943_v6, 16  ;;  %v2281_v29 = vunpack.c.l.b16 %v1968_v20  ;;  %v1996_v6 = vrot.slane %v1994_v58, 4 }
  0x8b   : > { %v1186_v21 = vsel %vm6140_vm5, %v4728_v10, %v1185_v0 }
  0x8c   : > { %v1975_v26 = vrot.slane %v1973_v18, 5  ;;  %v2309_v41 = vpack.c.b16 %v2281_v29, %v2280_v28  ;;  %v4948_v18 = vld [vmem:[%s5825_s11 + $0x50] sm:$0x1]  ;;  %v2000_v20 = vor.u32 %v1999_v7, %v1996_v6  ;;  %v1287_v28 = vunpack.c.l.b16 %v1186_v21 }
  0x8e   : > { %2399 = vmatmul.bf16.gmra.mxu0 %v2307_v24  ;;  %v1101_v24 = vld [vmem:[%s5825_s11 + $0x30] sm:$0xe]  ;;  %v1976_v40 = vor.u32 %v1975_v26, %v1972_v25  ;;  %v5529_v25 = vld [vmem:[%s7317_s1 + $0x1a0] sm:$0xff] }
  0x8f   : > { %v4727_v34 = vrot.slane %v1101_v24, 9  ;;  %v2013_v24 = vshll.u32 %v4948_v18, 16  ;;  %3130 = vmatpush.bf16.msra.mxu2 %v5529_v25 }
  0x90   : > { %v1977_v47 = vrot.slane %v1976_v40, 4 }
  0x91   : > { %v1179_v42 = vsel %vm6140_vm5, %v4727_v34, %v1178_v22  ;;  %v1189_v22 = vsel %vm6140_vm5, %v1187_v11, %v1188_v59  ;;  %v2015_v36 = vrot.slane %v2013_v24, 5 }
  0x92   : > { %v1285_v48 = vunpack.c.l.b16 %v1179_v42  ;;  %v1982_v55 = vsel %vm5840_vm2, %v1977_v47, %v1981_v32  ;;  %v1288_v29 = vunpack.c.l.b16 %v1189_v22  ;;  %v2027_v47 = vshll.u32 %v4950_v37, 16  ;;  %v4952_v22 = vld [vmem:[%s5825_s11 + $0x60] sm:$0xf] }
  0x93   : > { %1026 = vmatmul.bf16.gmra.mxu1 %v5431_v27  ;;  %v1985_v27 = vrot.slane %v1983_v23, 4  ;;  %v2282_v3 = vunpack.c.l.b16 %v1982_v55  ;;  %v2045_v37 = vshll.u32 %v4952_v22, 16 }
  0x94   : > { %v1313_v57 = vpack.c.b16 %v1286_v35, %v1285_v48  ;;  %v5545_v48 = vld [vmem:[%s7317_s1 + $0x220] sm:$0xff] }
  0x95   : > { %1407 = vmatmul.bf16.gmra.mxu2 %v1311_v39  ;;  %v4945_v39 = vld [vmem:[%s5825_s11 + $0x44] sm:$0x1]  ;;  %v1986_v45 = vor.u32 %v1985_v27, %v1981_v32  ;;  %v2001_v32 = vrot.slane %v2000_v20, 4  ;;  %4238 = vmatpush.bf16.msra.mxu0 %v5545_v48 }
  0x96   : > { %v1989_v46 = vshll.u32 %v4945_v39, 16  ;;  %v5505_v27 = vld [vmem:[%s7317_s1 + $0x160] sm:$0xff] }
  0x97   : > { %v1987_v49 = vrot.slane %v1986_v45, 4  ;;  %2815 = vmatpush.bf16.msra.mxu1 %v5505_v27 }
  0x98   : > { %v1991_v54 = vrot.slane %v1989_v46, 5  ;;  %v1314_v46 = vpack.c.b16 %v1288_v29, %v1287_v28  ;;  %v5435_v29 = vld [vmem:[%s5825_s11 + $0x48] sm:$0xff] }
  0x9a   : > { %1722 = vmatmul.bf16.gmra.mxu3 %v5471_v31  ;;  %v5433_v31 = vld [vmem:[%s5825_s11 + $0x30] sm:$0xff]  ;;  %v1992_v63 = vsel %vm5840_vm2, %v1987_v49, %v1991_v54  ;;  %v1192_v54 = vrot.slane %v5983_v2, 5 }
  0x9b   : > { %v2283_v5 = vunpack.c.l.b16 %v1992_v63  ;;  %v5474_v63 = vld [vmem:[%s5825_s11 + $0x48] sm:$0xff] }
  0x9c   : > { %v1194_v0 = vrot.slane %v1192_v54, 4 }
  0x9d   : > { %v2310_v51 = vpack.c.b16 %v2283_v5, %v2282_v3  ;;  %v2033_v3 = vrot.slane %v2031_v12, 4  ;;  %v4951_v5 = vld [vmem:[%s5825_s11 + $0x5c] sm:$0x1] }
  0x9e   : > { %2404 = vmatmul.bf16.gmra.mxu0 %v2308_v60  ;;  %v2003_v60 = vshll.u32 %v4947_v19, 16  ;;  %v1103_v19 = vld [vmem:[%s5825_s11 + $0x48] sm:$0xe]  ;;  %v2037_v59 = vshll.u32 %v4951_v5, 16  ;;  %v5528_v5 = vld [vmem:[%s7317_s1 + $0x198] sm:$0xff] }
  0x9f   : > { %v4729_v62 = vrot.slane %v1103_v19, 9  ;;  %3131 = vmatpush.bf16.msra.mxu2 %v5528_v5 }
  0xa0   : > { %v2005_v8 = vrot.slane %v2003_v60, 5  ;;  %v2029_v60 = vrot.slane %v2027_v47, 5  ;;  %v2039_v21 = vrot.slane %v2037_v59, 5  ;;  %v4955_v59 = vld [vmem:[%s5825_s11 + $0x6c] sm:$0xf] }
  0xa1   : > { %v1193_v10 = vsel %vm6140_vm5, %v4729_v62, %v1192_v54  ;;  %v5475_v54 = vld [vmem:[%s5825_s11 + $0x54] sm:$0xff] }
  0xa2   : > { %v2006_v35 = vsel %vm5840_vm2, %v2001_v32, %v2005_v8  ;;  %v2034_v13 = vor.u32 %v2033_v3, %v2029_v60  ;;  %v1289_v18 = vunpack.c.l.b16 %v1193_v10 }
  0xa3   : > { %1031 = vmatmul.bf16.gmra.mxu1 %v5432_v15  ;;  %v2009_v15 = vrot.slane %v2007_v14, 4  ;;  %v2284_v58 = vunpack.c.l.b16 %v2006_v35  ;;  %v5622_v14 = vld [vmem:[%s5825_s11 + $0x50] sm:$0x1]  ;;  %v2047_v35 = vrot.slane %v2045_v37, 5  ;;  %v5623_v37 = vld [vmem:[%s5825_s11 + $0x64] sm:$0xf] }
  0xa4   : > { %v1195_v1 = vrot.slane %v5622_v14, 5  ;;  %v2035_v20 = vrot.slane %v2034_v13, 4 }
  0xa5   : > { %1412 = vmatmul.bf16.gmra.mxu2 %v1312_v50  ;;  %v2010_v23 = vor.u32 %v2009_v15, %v2005_v8 }
  0xa6   : > { %v1196_v11 = vsel %vm6140_vm5, %v1194_v0, %v1195_v1  ;;  %v2040_v27 = vsel %vm5840_vm2, %v2035_v20, %v2039_v21  ;;  %v5436_v20 = vld [vmem:[%s5825_s11 + $0x54] sm:$0xff]  ;;  %v4956_v21 = vld [vmem:[%s5825_s11 + $0x70] sm:$0xf] }
  0xa7   : > { %v2011_v34 = vrot.slane %v2010_v23, 4  ;;  %v4953_v23 = vld [vmem:[%s5825_s11 + $0x64] sm:$0xf]  ;;  %v2287_v47 = vunpack.c.l.b16 %v2040_v27  ;;  %v2069_v27 = vshll.u32 %v4955_v59, 16 }
  0xa8   : > { %v2051_v38 = vshll.u32 %v4953_v23, 16 }
  0xa9   : > { %v2016_v49 = vsel %vm5840_vm2, %v2011_v34, %v2015_v36  ;;  %v2042_v36 = vshrl.u32 %v4952_v22, 16 }
  0xaa   : > { %1727 = vmatmul.bf16.gmra.mxu3 %v5472_v33  ;;  %v4949_v33 = vld [vmem:[%s5825_s11 + $0x54] sm:$0xf]  ;;  %v2285_v61 = vunpack.c.l.b16 %v2016_v49  ;;  %v2053_v49 = vrot.slane %v2051_v38, 5  ;;  %v1206_v38 = vrot.slane %v5623_v37, 5 }
  0xab   : > { %v2018_v42 = vshrl.u32 %v4949_v33, 16  ;;  %v2021_v44 = vshll.u32 %v4949_v33, 16  ;;  %v2044_v48 = vrot.slane %v2042_v36, 4 }
  0xac   : > { %v2311_v8 = vpack.c.b16 %v2285_v61, %v2284_v58  ;;  %v4954_v61 = vld [vmem:[%s5825_s11 + $0x68] sm:$0x1] }
  0xad   : > { %v2023_v55 = vrot.slane %v2021_v44, 5  ;;  %v1104_v44 = vld [vmem:[%s5825_s11 + $0x54] sm:$0xe]  ;;  %v2048_v62 = vor.u32 %v2047_v35, %v2044_v48  ;;  %v2061_v3 = vshll.u32 %v4954_v61, 16  ;;  %v2071_v61 = vrot.slane %v2069_v27, 5  ;;  %v5437_v27 = vld [vmem:[%s5825_s11 + $0x60] sm:$0xff] }
  0xae   : > { %2409 = vmatmul.bf16.gmra.mxu0 %v2309_v41  ;;  %v5434_v41 = vld [vmem:[%s5825_s11 + $0x3c] sm:$0xff]  ;;  %v4730_v12 = vrot.slane %v1104_v44, 9  ;;  %v2075_v44 = vshll.u32 %v4956_v21, 16 }
  0xaf   : > { %v2049_v10 = vrot.slane %v2048_v62, 4  ;;  %v2063_v13 = vrot.slane %v2061_v3, 5 }
  0xb0   : > { %v6248_v56 = vpop.f32.mrf.mxu1 }
  0xb3   : > { %v6253_v4 = vpop.f32.mrf.mxu0  ;;  %1036 = vmatmul.bf16.gmra.mxu1 %v5433_v31  ;;  %v2020_v31 = vrot.slane %v2018_v42, 4  ;;  %v2055_v42 = vshrl.u32 %v4953_v23, 16 }
  0xb5   : > { %1417 = vmatmul.bf16.gmra.mxu2 %v1313_v57  ;;  %v2024_v7 = vor.u32 %v2023_v55, %v2020_v31  ;;  %v1202_v31 = vrot.slane %v6073_v53, 5  ;;  %v2057_v55 = vrot.slane %v2055_v42, 4  ;;  %v1105_v42 = vld [vmem:[%s5825_s11 + $0x60] sm:$0xe] }
  0xb6   : > { %v6258_v17 = vpop.f32.mrf.mxu2 }
  0xb7   : > { %v6261_v50 = vpop.f32.mrf.mxu3  ;;  %v2025_v15 = vrot.slane %v2024_v7, 4  ;;  %v2058_v1 = vor.u32 %v2057_v55, %v2053_v49 }
  0xb8   : > { %v6263_v16 = vpop.f32.mrf.mxu1 }
  0xb9   : > { %v2030_v32 = vsel %vm5840_vm2, %v2025_v15, %v2029_v60  ;;  %v5536_v15 = vld [vmem:[%s7317_s1 + $0x1d8] sm:$0xff] }
  0xba   : > { %1732 = vmatmul.bf16.gmra.mxu3 %v5473_v9 }
  0xbb   : > { %v6272_v26 = vpop.f32.mrf.mxu0  ;;  %3813 = vmatpush.bf16.msra.mxu3 %v5536_v15 }
  0xbe   : > { %2414 = vmatmul.bf16.gmra.mxu0 %v2310_v51  ;;  %v6282_v39 = vpop.f32.mrf.mxu2  ;;  %v1290_v51 = vunpack.c.l.b16 %v1196_v11  ;;  %v2059_v11 = vrot.slane %v2058_v1, 4 }
  0xbf   : > { %v6284_v40 = vpop.f32.mrf.mxu3 }
  0xc0   : > { %v6287_v45 = vpop.f32.mrf.mxu1  ;;  %v1315_v34 = vpack.c.b16 %v1290_v51, %v1289_v18  ;;  %v5504_v18 = vld [vmem:[%s7317_s1 + $0x158] sm:$0xff]  ;;  %v2064_v36 = vsel %vm5840_vm2, %v2059_v11, %v2063_v13 }
  0xc1   : > { %2816 = vmatpush.bf16.msra.mxu1 %v5504_v18  ;;  %v2289_v35 = vunpack.c.l.b16 %v2064_v36 }
  0xc3   : > { %1041 = vmatmul.bf16.gmra.mxu1 %v5434_v41  ;;  %v1199_v41 = vrot.slane %v6070_v52, 5 }
  0xc5   : > { %v6298_v57 = vpop.f32.mrf.mxu0  ;;  %1422 = vmatmul.bf16.gmra.mxu2 %v1314_v46  ;;  %v2286_v46 = vunpack.c.l.b16 %v2030_v32  ;;  %v1201_v19 = vrot.slane %v1199_v41, 4  ;;  %v1200_v14 = vsel %vm6140_vm5, %v4730_v12, %v1199_v41  ;;  %v4731_v12 = vrot.slane %v1105_v42, 9 }
  0xc6   : > { %v6302_v2 = vpop.f32.mrf.mxu2  ;;  %v1291_v7 = vunpack.c.l.b16 %v1200_v14 }
  0xc7   : > { %v6305_v6 = vpop.f32.mrf.mxu3  ;;  %v2312_v60 = vpack.c.b16 %v2287_v47, %v2286_v46  ;;  %v1203_v53 = vsel %vm6140_vm5, %v1201_v19, %v1202_v31  ;;  %v2079_v46 = vshrl.u32 %v4956_v21, 16  ;;  %v5544_v47 = vld [vmem:[%s7317_s1 + $0x218] sm:$0xff]  ;;  %v1208_v19 = vrot.slane %v1206_v38, 4  ;;  %v5624_v31 = vld [vmem:[%s5825_s11 + $0x68] sm:$0x1] }
  0xc8   : > { %v6307_v9 = vpop.f32.mrf.mxu1  ;;  %4239 = vmatpush.bf16.msra.mxu0 %v5544_v47  ;;  %v1209_v55 = vrot.slane %v5624_v31, 5  ;;  %v1207_v5 = vsel %vm6140_vm5, %v4731_v12, %v1206_v38  ;;  %v4959_v21 = vld [vmem:[%s5825_s11 + $0x7c] sm:$0xf]  ;;  %v5625_v47 = vld [vmem:[%s5825_s11 + $0x70] sm:$0xf] }
  0xc9   : > { %v2081_v62 = vrot.slane %v2079_v46, 4  ;;  %v1293_v18 = vunpack.c.l.b16 %v1207_v5  ;;  %v2099_v42 = vshll.u32 %v4959_v21, 16 }
  0xca   : > { %1737 = vmatmul.bf16.gmra.mxu3 %v5474_v63 }
  0xcd   : > { %v6315_v24 = vpop.f32.mrf.mxu0 }
  0xce   : > { %2419 = vmatmul.bf16.gmra.mxu0 %v2311_v8  ;;  %v6317_v25 = vpop.f32.mrf.mxu2  ;;  %v1292_v8 = vunpack.c.l.b16 %v1203_v53  ;;  %v4957_v53 = vld [vmem:[%s5825_s11 + $0x74] sm:$0x1] }
  0xcf   : > { %v6319_v28 = vpop.f32.mrf.mxu3  ;;  %v2085_v13 = vshll.u32 %v4957_v53, 16 }
  0xd0   : > { %v6324_v33 = vpop.f32.mrf.mxu1  ;;  %v1316_v23 = vpack.c.b16 %v1292_v8, %v1291_v7  ;;  %v1210_v7 = vsel %vm6140_vm5, %v1208_v19, %v1209_v55 }
  0xd3   : > { %1046 = vmatmul.bf16.gmra.mxu1 %v5435_v29  ;;  %v2066_v29 = vshrl.u32 %v4955_v59, 16  ;;  %v4958_v59 = vld [vmem:[%s5825_s11 + $0x78] sm:$0xf] }
  0xd4   : > { %v2090_v36 = vshrl.u32 %v4958_v59, 16  ;;  %v2093_v37 = vshll.u32 %v4958_v59, 16 }
  0xd5   : > { %1427 = vmatmul.bf16.gmra.mxu2 %v1315_v34  ;;  %v2054_v34 = vsel %vm5840_vm2, %v2049_v10, %v2053_v49  ;;  %v2068_v49 = vrot.slane %v2066_v29, 4 }
  0xd6   : > { %v6332_v58 = vpop.f32.mrf.mxu2  ;;  %v2288_v48 = vunpack.c.l.b16 %v2054_v34  ;;  %v2087_v34 = vrot.slane %v2085_v13, 5  ;;  %v2092_v55 = vrot.slane %v2090_v36, 4  ;;  %v5477_v13 = vld [vmem:[%s5825_s11 + $0x6c] sm:$0xff] }
  0xd7   : > { %v2072_v8 = vor.u32 %v2071_v61, %v2068_v49  ;;  %v2095_v61 = vrot.slane %v2093_v37, 5 }
  0xd8   : > { %v6339_v0 = vpop.f32.mrf.mxu1  ;;  %v2313_v1 = vpack.c.b16 %v2289_v35, %v2288_v48  ;;  %v1213_v48 = vrot.slane %v5625_v47, 5  ;;  %v5527_v47 = vld [vmem:[%s7317_s1 + $0x190] sm:$0xff] }
  0xd9   : > { %v6335_v52 = vpop.f32.mrf.mxu0  ;;  %v6337_v63 = vpop.f32.mrf.mxu3  ;;  %3132 = vmatpush.bf16.msra.mxu2 %v5527_v47 }
  0xda   : > { %1742 = vmatmul.bf16.gmra.mxu3 %v5475_v54  ;;  %v5476_v54 = vld [vmem:[%s5825_s11 + $0x60] sm:$0xff] }
  0xde   : > { %2424 = vmatmul.bf16.gmra.mxu0 %v2312_v60  ;;  %v6355_v51 = vpop.f32.mrf.mxu2  ;;  %v2077_v60 = vrot.slane %v2075_v44, 5  ;;  %v2103_v44 = vshrl.u32 %v4959_v21, 16 }
  0xe0   : > { %v6361_v32 = vpop.f32.mrf.mxu1  ;;  %v2082_v11 = vor.u32 %v2081_v62, %v2077_v60  ;;  %v2101_v62 = vrot.slane %v2099_v42, 5  ;;  %v2105_v53 = vrot.slane %v2103_v44, 4 }
  0xe1   : > { %v6359_v22 = vpop.f32.mrf.mxu0  ;;  %v6368_v41 = vpop.f32.mrf.mxu3 }
  0xe2   : > { %v2083_v29 = vrot.slane %v2082_v11, 4  ;;  %v4960_v11 = vld [vmem:[%s5825_s11 + $0x80] sm:$0x1]  ;;  %v2106_v21 = vor.u32 %v2105_v53, %v2101_v62  ;;  %v5503_v53 = vld [vmem:[%s7317_s1 + $0x150] sm:$0xff] }
  0xe3   : > { %1051 = vmatmul.bf16.gmra.mxu1 %v5436_v20  ;;  %v1294_v20 = vunpack.c.l.b16 %v1210_v7  ;;  %v5626_v7 = vld [vmem:[%s5825_s11 + $0x74] sm:$0x1] }
  0xe4   : > { %v2088_v31 = vsel %vm5840_vm2, %v2083_v29, %v2087_v34  ;;  %2817 = vmatpush.bf16.msra.mxu1 %v5503_v53 }
  0xe5   : > { %1432 = vmatmul.bf16.gmra.mxu2 %v1316_v23  ;;  %v2073_v23 = vrot.slane %v2072_v8, 4  ;;  %v1317_v46 = vpack.c.b16 %v1294_v20, %v1293_v18  ;;  %v1216_v8 = vrot.slane %v5626_v7, 5  ;;  %v2291_v18 = vunpack.c.l.b16 %v2088_v31  ;;  %v4961_v31 = vld [vmem:[%s5825_s11 + $0x84] sm:$0xf]  ;;  %v5438_v7 = vld [vmem:[%s5825_s11 + $0x6c] sm:$0xff] }
  0xe7   : > { %v2078_v49 = vsel %vm5840_vm2, %v2073_v23, %v2077_v60  ;;  %v1215_v60 = vrot.slane %v1213_v48, 4  ;;  %v2109_v23 = vshll.u32 %v4960_v11, 16 }
  0xe8   : > { %v6376_v14 = vpop.f32.mrf.mxu2  ;;  %v6379_v3 = vpop.f32.mrf.mxu1  ;;  %v2290_v59 = vunpack.c.l.b16 %v2078_v49 }
  0xe9   : > { %v1217_v36 = vsel %vm6140_vm5, %v1215_v60, %v1216_v8 }
  0xea   : > { %1747 = vmatmul.bf16.gmra.mxu3 %v5476_v54  ;;  %v1106_v54 = vld [vmem:[%s5825_s11 + $0x6c] sm:$0xe]  ;;  %v2314_v37 = vpack.c.b16 %v2291_v18, %v2290_v59  ;;  %v1296_v49 = vunpack.c.l.b16 %v1217_v36 }
  0xeb   : > { %v6385_v10 = vpop.f32.mrf.mxu0  ;;  %v4732_v5 = vrot.slane %v1106_v54, 9  ;;  %v2107_v54 = vrot.slane %v2106_v21, 4 }
  0xed   : > { %v6388_v15 = vpop.f32.mrf.mxu3  ;;  %v1214_v34 = vsel %vm6140_vm5, %v4732_v5, %v1213_v48  ;;  %v2111_v48 = vrot.slane %v2109_v23, 5 }
  0xee   : > { %2429 = vmatmul.bf16.gmra.mxu0 %v2313_v1 }
  0xef   : > { %v2112_v11 = vsel %vm5840_vm2, %v2107_v54, %v2111_v48 }
  0xf0   : > { %v6391_v38 = vpop.f32.mrf.mxu2  ;;  %v1017_v35 = vpop.f32.mrf.mxu1 }
  0xf1   : > { %v1018_v19 = vadd.f32 %v1017_v35, %v6253_v4  ;;  %v2096_v4 = vor.u32 %v2095_v61, %v2092_v55  ;;  %v1295_v35 = vunpack.c.l.b16 %v1214_v34  ;;  %v4962_v61 = vld [vmem:[%s5825_s11 + $0x88] sm:$0xf] }
  0xf2   : > { %v2127_v21 = vshrl.u32 %v4962_v61, 16 }
  0xf3   : > { %v6398_v12 = vpop.f32.mrf.mxu0  ;;  %1056 = vmatmul.bf16.gmra.mxu1 %v5437_v27  ;;  %v1318_v8 = vpack.c.b16 %v1296_v49, %v1295_v35 }
  0xf4   : > { %v2129_v54 = vrot.slane %v2127_v21, 4 }
  0xf5   : > { %v6403_v1 = vpop.f32.mrf.mxu3  ;;  %1437 = vmatmul.bf16.gmra.mxu2 %v1317_v46  ;;  %v2097_v46 = vrot.slane %v2096_v4, 4  ;;  %v2117_v4 = vshll.u32 %v4961_v31, 16 }
  0xf7   : > { %v2102_v5 = vsel %vm5840_vm2, %v2097_v46, %v2101_v62  ;;  %v2119_v35 = vrot.slane %v2117_v4, 5 }
  0xf8   : > { %v1398_v20 = vpop.f32.mrf.mxu2  ;;  %v1019_v27 = vpop.f32.mrf.mxu1 }
  0xf9   : > { %v1478_v29 = vadd.f32 %v1398_v20, %v1018_v19  ;;  %v1020_v44 = vadd.f32 %v1019_v27, %v6272_v26  ;;  %v5535_v26 = vld [vmem:[%s7317_s1 + $0x1d0] sm:$0xff]  ;;  %v2123_v20 = vshll.u32 %v4962_v61, 16 }
  0xfa   : > { %1752 = vmatmul.bf16.gmra.mxu3 %v5477_v13  ;;  %v2114_v13 = vshrl.u32 %v4961_v31, 16  ;;  %v5543_v27 = vld [vmem:[%s7317_s1 + $0x210] sm:$0xff] }
  0xfb   : > { %v2395_v42 = vpop.f32.mrf.mxu0  ;;  %3814 = vmatpush.bf16.msra.mxu3 %v5535_v26  ;;  %v2125_v49 = vrot.slane %v2123_v20, 5  ;;  %4240 = vmatpush.bf16.msra.mxu0 %v5543_v27  ;;  %v4963_v26 = vld [vmem:[%s5825_s11 + $0x8c] sm:$0x1] }
  0xfc   : > { %v2116_v47 = vrot.slane %v2114_v13, 4  ;;  %v2133_v4 = vshll.u32 %v4963_v26, 16  ;;  %v5629_v26 = vld [vmem:[%s5825_s11 + $0x88] sm:$0xf] }
  0xfd   : > { %v1713_v19 = vpop.f32.mrf.mxu3 }
  0xfe   : > { %2434 = vmatmul.bf16.gmra.mxu0 %v2314_v37  ;;  %v1793_v55 = vadd.f32 %v1713_v19, %v1478_v29  ;;  %v5627_v29 = vld [vmem:[%s5825_s11 + $0x7c] sm:$0xf]  ;;  %v1107_v37 = vld [vmem:[%s5825_s11 + $0x78] sm:$0xe] }
  0xff   : > { %v1220_v34 = vrot.slane %v5627_v29, 5  ;;  %v5478_v19 = vld [vmem:[%s5825_s11 + $0x78] sm:$0xff] }
 0x100   : > { %v1400_v60 = vpop.f32.mrf.mxu2  ;;  %v6429_v59 = vadd.f32 %v2395_v42, %v1793_v55  ;;  %v1022_v23 = vpop.f32.mrf.mxu1  ;;  %v2292_v42 = vunpack.c.l.b16 %v2102_v5  ;;  %v5628_v55 = vld [vmem:[%s5825_s11 + $0x80] sm:$0x1] }
 0x101   : > { %v1479_v18 = vadd.f32 %v1400_v60, %v1020_v44  ;;  %v1023_v36 = vadd.f32 %v1022_v23, %v6298_v57  ;;  %v2293_v44 = vunpack.c.l.b16 %v2112_v11  ;;  %v4733_v57 = vrot.slane %v1107_v37, 9 }
 0x102   : > { %v1222_v31 = vrot.slane %v1220_v34, 4  ;;  %v1223_v61 = vrot.slane %v5628_v55, 5  ;;  %v2120_v23 = vor.u32 %v2119_v35, %v2116_v47  ;;  %v5439_v47 = vld [vmem:[%s5825_s11 + $0x78] sm:$0xff]  ;;  %v4965_v35 = vld [vmem:[%s5825_s11 + $0x94] sm:$0xf] }
 0x103   : > { %v2397_v62 = vpop.f32.mrf.mxu0  ;;  %1061 = vmatmul.bf16.gmra.mxu1 %v5438_v7  ;;  %v2315_v60 = vpack.c.b16 %v2293_v44, %v2292_v42  ;;  %v1221_v11 = vsel %vm6140_vm5, %v4733_v57, %v1220_v34  ;;  %v2135_v44 = vrot.slane %v2133_v4, 5  ;;  %v4964_v34 = vld [vmem:[%s5825_s11 + $0x90] sm:$0xf] }
 0x104   : > { %v1224_v13 = vsel %vm6140_vm5, %v1222_v31, %v1223_v61  ;;  %v2121_v27 = vrot.slane %v2120_v23, 4  ;;  %v2138_v57 = vshrl.u32 %v4964_v34, 16  ;;  %v1108_v23 = vld [vmem:[%s5825_s11 + $0x84] sm:$0xe] }
 0x105   : > { %v1715_v46 = vpop.f32.mrf.mxu3  ;;  %1442 = vmatmul.bf16.gmra.mxu2 %v1318_v8 }
 0x106   : > { %v1794_v48 = vadd.f32 %v1715_v46, %v1479_v18  ;;  %v2130_v18 = vor.u32 %v2129_v54, %v2125_v49  ;;  %v2126_v55 = vsel %vm5840_vm2, %v2121_v27, %v2125_v49  ;;  %v2140_v49 = vrot.slane %v2138_v57, 4 }
 0x108   : > { %v1403_v53 = vpop.f32.mrf.mxu2  ;;  %v6440_v5 = vadd.f32 %v2397_v62, %v1794_v48  ;;  %v1024_v8 = vpop.f32.mrf.mxu1  ;;  %v1298_v62 = vunpack.c.l.b16 %v1224_v13  ;;  %v2131_v42 = vrot.slane %v2130_v18, 4  ;;  %v2294_v18 = vunpack.c.l.b16 %v2126_v55 }
 0x109   : > { %v1480_v7 = vadd.f32 %v1403_v53, %v1023_v36  ;;  %v1025_v21 = vadd.f32 %v1024_v8, %v6315_v24  ;;  %v1297_v36 = vunpack.c.l.b16 %v1221_v11  ;;  %v2141_v24 = vshll.u32 %v4964_v34, 16  ;;  %v4966_v34 = vld [vmem:[%s5825_s11 + $0x98] sm:$0x1] }
 0x10a   : > { %1757 = vmatmul.bf16.gmra.mxu3 %v5478_v19  ;;  %v2136_v61 = vsel %vm5840_vm2, %v2131_v42, %v2135_v44  ;;  %v1227_v53 = vrot.slane %v5629_v26, 5  ;;  %v2147_v8 = vshll.u32 %v4965_v35, 16  ;;  %v2151_v11 = vshrl.u32 %v4965_v35, 16 }
 0x10b   : > { %v2400_v20 = vpop.f32.mrf.mxu0  ;;  %v1319_v19 = vpack.c.b16 %v1298_v62, %v1297_v36  ;;  %v2295_v4 = vunpack.c.l.b16 %v2136_v61  ;;  %v4734_v36 = vrot.slane %v1108_v23, 9  ;;  %v2157_v26 = vshll.u32 %v4966_v34, 16 }
 0x10c   : > { %v1229_v62 = vrot.slane %v1227_v53, 4  ;;  %v6461_v42 = vrot.slane %v2147_v8, 5 }
 0x10d   : > { %v1718_v29 = vpop.f32.mrf.mxu3  ;;  %v2316_v35 = vpack.c.b16 %v2295_v4, %v2294_v18  ;;  %v5502_v4 = vld [vmem:[%s7317_s1 + $0x148] sm:$0xff] }
 0x10e   : > { %2439 = vmatmul.bf16.gmra.mxu0 %v2315_v60  ;;  %v1795_v37 = vadd.f32 %v1718_v29, %v1480_v7  ;;  %v5479_v29 = vld [vmem:[%s5825_s11 + $0x84] sm:$0xff]  ;;  %2818 = vmatpush.bf16.msra.mxu1 %v5502_v4 }
 0x110   : > { %v1405_v46 = vpop.f32.mrf.mxu2  ;;  %v6450_v48 = vadd.f32 %v2400_v20, %v1795_v37  ;;  %v1027_v31 = vpop.f32.mrf.mxu1  ;;  %v2143_v20 = vrot.slane %v2141_v24, 5  ;;  %v5630_v37 = vld [vmem:[%s5825_s11 + $0x8c] sm:$0x1] }
 0x111   : > { %v1481_v54 = vadd.f32 %v1405_v46, %v1025_v21  ;;  %v1028_v7 = vadd.f32 %v1027_v31, %v6335_v52  ;;  %v1230_v27 = vrot.slane %v5630_v37, 5  ;;  %v2153_v52 = vrot.slane %v2151_v11, 4 }
 0x112   : > { %v2144_v24 = vor.u32 %v2143_v20, %v2140_v49  ;;  %v2159_v20 = vrot.slane %v2157_v26, 5 }
 0x113   : > { %v2402_v60 = vpop.f32.mrf.mxu0  ;;  %1066 = vmatmul.bf16.gmra.mxu1 %v5439_v47  ;;  %v1231_v57 = vsel %vm6140_vm5, %v1229_v62, %v1230_v27  ;;  %v2154_v61 = vor.u32 %v2153_v52, %v6461_v42  ;;  %v5440_v62 = vld [vmem:[%s5825_s11 + $0x84] sm:$0xff] }
 0x114   : > { %v1300_v11 = vunpack.c.l.b16 %v1231_v57  ;;  %v2145_v18 = vrot.slane %v2144_v24, 4  ;;  %v1109_v57 = vld [vmem:[%s5825_s11 + $0x90] sm:$0xe] }
 0x115   : > { %v1720_v13 = vpop.f32.mrf.mxu3  ;;  %1447 = vmatmul.bf16.gmra.mxu2 %v1319_v19  ;;  %v2155_v49 = vrot.slane %v2154_v61, 4 }
 0x116   : > { %v1796_v21 = vadd.f32 %v1720_v13, %v1481_v54  ;;  %v1228_v54 = vsel %vm6140_vm5, %v4734_v36, %v1227_v53  ;;  %v4968_v53 = vld [vmem:[%s5825_s11 + $0xa0] sm:$0xf] }
 0x117   : > { %v1299_v8 = vunpack.c.l.b16 %v1228_v54  ;;  %v2171_v37 = vshll.u32 %v4968_v53, 16  ;;  %v2175_v27 = vshrl.u32 %v4968_v53, 16  ;;  %v2150_v54 = vsel %vm5840_vm2, %v2145_v18, %v6461_v42  ;;  %v5632_v53 = vld [vmem:[%s5825_s11 + $0x98] sm:$0x1] }
 0x118   : > { %v1408_v44 = vpop.f32.mrf.mxu2  ;;  %v6464_v47 = vadd.f32 %v2402_v60, %v1796_v21  ;;  %v1029_v19 = vpop.f32.mrf.mxu1  ;;  %v5526_v60 = vld [vmem:[%s7317_s1 + $0x188] sm:$0xff]  ;;  %v2160_v26 = vsel %vm5840_vm2, %v2155_v49, %v2159_v20  ;;  %v4735_v42 = vrot.slane %v1109_v57, 9  ;;  %v2296_v4 = vunpack.c.l.b16 %v2150_v54 }
 0x119   : > { %v1482_v46 = vadd.f32 %v1408_v44, %v1028_v7  ;;  %v1030_v55 = vadd.f32 %v1029_v19, %v6359_v22  ;;  %v4967_v7 = vld [vmem:[%s5825_s11 + $0x9c] sm:$0xf]  ;;  %3133 = vmatpush.bf16.msra.mxu2 %v5526_v60  ;;  %v5534_v22 = vld [vmem:[%s7317_s1 + $0x1c8] sm:$0xff]  ;;  %v1320_v34 = vpack.c.b16 %v1300_v11, %v1299_v8  ;;  %v2297_v49 = vunpack.c.l.b16 %v2160_v26 }
 0x11a   : > { %1762 = vmatmul.bf16.gmra.mxu3 %v5479_v29  ;;  %v2162_v21 = vshrl.u32 %v4967_v7, 16  ;;  %v2165_v29 = vshll.u32 %v4967_v7, 16  ;;  %v5542_v60 = vld [vmem:[%s7317_s1 + $0x208] sm:$0xff]  ;;  %v2173_v7 = vrot.slane %v2171_v37, 5 }
 0x11b   : > { %v2405_v31 = vpop.f32.mrf.mxu0  ;;  %3815 = vmatpush.bf16.msra.mxu3 %v5534_v22  ;;  %4241 = vmatpush.bf16.msra.mxu0 %v5542_v60  ;;  %v5480_v22 = vld [vmem:[%s5825_s11 + $0x90] sm:$0xff] }
 0x11d   : > { %v1723_v23 = vpop.f32.mrf.mxu3 }
 0x11e   : > { %2444 = vmatmul.bf16.gmra.mxu0 %v2316_v35  ;;  %v1797_v13 = vadd.f32 %v1723_v23, %v1482_v46  ;;  %v5631_v46 = vld [vmem:[%s5825_s11 + $0x94] sm:$0xf]  ;;  %v2177_v23 = vrot.slane %v2175_v27, 4 }
 0x11f   : > { %v1234_v35 = vrot.slane %v5631_v46, 5 }
 0x120   : > { %v1410_v36 = vpop.f32.mrf.mxu2  ;;  %v6484_v52 = vadd.f32 %v2405_v31, %v1797_v13  ;;  %v1032_v19 = vpop.f32.mrf.mxu1  ;;  %v2164_v31 = vrot.slane %v2162_v21, 4  ;;  %v1237_v13 = vrot.slane %v5632_v53, 5 }
 0x121   : > { %v1483_v44 = vadd.f32 %v1410_v36, %v1030_v55  ;;  %v1033_v61 = vadd.f32 %v1032_v19, %v6385_v10  ;;  %v2167_v55 = vrot.slane %v2165_v29, 5  ;;  %v1236_v11 = vrot.slane %v1234_v35, 4  ;;  %v4969_v10 = vld [vmem:[%s5825_s11 + $0xa4] sm:$0x1] }
 0x122   : > { %v2178_v29 = vor.u32 %v2177_v23, %v2173_v7  ;;  %v2181_v36 = vshll.u32 %v4969_v10, 16  ;;  %v1235_v37 = vsel %vm6140_vm5, %v4735_v42, %v1234_v35  ;;  %v4970_v35 = vld [vmem:[%s5825_s11 + $0xa8] sm:$0xf] }
 0x123   : > { %v2407_v24 = vpop.f32.mrf.mxu0  ;;  %1071 = vmatmul.bf16.gmra.mxu1 %v5440_v62  ;;  %v2168_v20 = vor.u32 %v2167_v55, %v2164_v31  ;;  %v1238_v27 = vsel %vm6140_vm5, %v1236_v11, %v1237_v13  ;;  %v1301_v26 = vunpack.c.l.b16 %v1235_v37  ;;  %v5441_v11 = vld [vmem:[%s5825_s11 + $0x90] sm:$0xff]  ;;  %v2186_v13 = vshrl.u32 %v4970_v35, 16 }
 0x124   : > { %v1302_v31 = vunpack.c.l.b16 %v1238_v27  ;;  %v2183_v55 = vrot.slane %v2181_v36, 5 }
 0x125   : > { %v1725_v8 = vpop.f32.mrf.mxu3  ;;  %1452 = vmatmul.bf16.gmra.mxu2 %v1320_v34  ;;  %v2169_v57 = vrot.slane %v2168_v20, 4 }
 0x126   : > { %v1798_v18 = vadd.f32 %v1725_v8, %v1483_v44  ;;  %v2317_v44 = vpack.c.b16 %v2297_v49, %v2296_v4  ;;  %v4971_v8 = vld [vmem:[%s5825_s11 + $0xac] sm:$0xf]  ;;  %v1321_v53 = vpack.c.b16 %v1302_v31, %v1301_v26  ;;  %v5481_v26 = vld [vmem:[%s5825_s11 + $0x9c] sm:$0xff] }
 0x127   : > { %v2195_v4 = vshll.u32 %v4971_v8, 16  ;;  %v2199_v49 = vshrl.u32 %v4971_v8, 16  ;;  %v4972_v8 = vld [vmem:[%s5825_s11 + $0xb0] sm:$0x1] }
 0x128   : > { %v1413_v21 = vpop.f32.mrf.mxu2  ;;  %v6504_v34 = vadd.f32 %v2407_v24, %v1798_v18  ;;  %v1034_v46 = vpop.f32.mrf.mxu1  ;;  %v2174_v24 = vsel %vm5840_vm2, %v2169_v57, %v2173_v7  ;;  %v1110_v7 = vld [vmem:[%s5825_s11 + $0x9c] sm:$0xe] }
 0x129   : > { %v1484_v62 = vadd.f32 %v1413_v21, %v1033_v61  ;;  %v1035_v54 = vadd.f32 %v1034_v46, %v6398_v12  ;;  %v2179_v61 = vrot.slane %v2178_v29, 4  ;;  %v5633_v21 = vld [vmem:[%s5825_s11 + $0xa0] sm:$0xf]  ;;  %v4736_v31 = vrot.slane %v1110_v7, 9 }
 0x12a   : > { %1767 = vmatmul.bf16.gmra.mxu3 %v5480_v22  ;;  %v2189_v22 = vshll.u32 %v4970_v35, 16  ;;  %v1241_v29 = vrot.slane %v5633_v21, 5 }
 0x12b   : > { %v2410_v19 = vpop.f32.mrf.mxu0  ;;  %v2184_v12 = vsel %vm5840_vm2, %v2179_v61, %v2183_v55  ;;  %v5634_v55 = vld [vmem:[%s5825_s11 + $0xa4] sm:$0x1] }
 0x12c   : > { %v2299_v37 = vunpack.c.l.b16 %v2184_v12  ;;  %v2191_v46 = vrot.slane %v2189_v22, 5  ;;  %v1243_v61 = vrot.slane %v1241_v29, 4  ;;  %v1242_v12 = vsel %vm6140_vm5, %v4736_v31, %v1241_v29 }
 0x12d   : > { %v1728_v60 = vpop.f32.mrf.mxu3 }
 0x12e   : > { %2449 = vmatmul.bf16.gmra.mxu0 %v2317_v44  ;;  %v1799_v23 = vadd.f32 %v1728_v60, %v1484_v62  ;;  %v2298_v62 = vunpack.c.l.b16 %v2174_v24  ;;  %v2188_v44 = vrot.slane %v2186_v13, 4  ;;  %v1244_v60 = vrot.slane %v5634_v55, 5  ;;  %v5442_v55 = vld [vmem:[%s5825_s11 + $0x9c] sm:$0xff] }
 0x130   : > { %v1415_v42 = vpop.f32.mrf.mxu2  ;;  %v6514_v10 = vadd.f32 %v2410_v19, %v1799_v23  ;;  %v1037_v20 = vpop.f32.mrf.mxu1  ;;  %v6518_v19 = vrot.slane %v2195_v4, 5  ;;  %v2318_v24 = vpack.c.b16 %v2299_v37, %v2298_v62  ;;  %v1245_v13 = vsel %vm6140_vm5, %v1243_v61, %v1244_v60  ;;  %v4974_v62 = vld [vmem:[%s5825_s11 + $0xb8] sm:$0xf] }
 0x131   : > { %v1485_v18 = vadd.f32 %v1415_v42, %v1035_v54  ;;  %v2201_v54 = vrot.slane %v2199_v49, 4  ;;  %v1038_v35 = vadd.f32 %v1037_v20, %v6248_v56  ;;  %v2205_v56 = vshll.u32 %v4972_v8, 16  ;;  %v5525_v49 = vld [vmem:[%s7317_s1 + $0x180] sm:$0xff]  ;;  %v4973_v20 = vld [vmem:[%s5825_s11 + $0xb4] sm:$0xf] }
 0x132   : > { %v1304_v7 = vunpack.c.l.b16 %v1245_v13  ;;  %3134 = vmatpush.bf16.msra.mxu2 %v5525_v49  ;;  %v2213_v31 = vshll.u32 %v4973_v20, 16  ;;  %v2219_v60 = vshll.u32 %v4974_v62, 16  ;;  %v5541_v49 = vld [vmem:[%s7317_s1 + $0x200] sm:$0xff] }
 0x133   : > { %v2412_v36 = vpop.f32.mrf.mxu0  ;;  %1076 = vmatmul.bf16.gmra.mxu1 %v5441_v11  ;;  %v2202_v22 = vor.u32 %v2201_v54, %v6518_v19  ;;  %4242 = vmatpush.bf16.msra.mxu0 %v5541_v49 }
 0x135   : > { %v1730_v27 = vpop.f32.mrf.mxu3  ;;  %1457 = vmatmul.bf16.gmra.mxu2 %v1321_v53 }
 0x136   : > { %v1800_v57 = vadd.f32 %v1730_v27, %v1485_v18  ;;  %v2192_v18 = vor.u32 %v2191_v46, %v2188_v44  ;;  %v2203_v27 = vrot.slane %v2202_v22, 4  ;;  %v5533_v44 = vld [vmem:[%s7317_s1 + $0x1c0] sm:$0xff] }
 0x137   : > { %v5501_v46 = vld [vmem:[%s7317_s1 + $0x140] sm:$0xff]  ;;  %3816 = vmatpush.bf16.msra.mxu3 %v5533_v44 }
 0x138   : > { %v1418_v23 = vpop.f32.mrf.mxu2  ;;  %v6524_v11 = vadd.f32 %v2412_v36, %v1800_v57  ;;  %v1039_v53 = vpop.f32.mrf.mxu1  ;;  %v1303_v36 = vunpack.c.l.b16 %v1242_v12  ;;  %v2193_v37 = vrot.slane %v2192_v18, 4  ;;  %v2207_v57 = vrot.slane %v2205_v56, 5  ;;  %2819 = vmatpush.bf16.msra.mxu1 %v5501_v46  ;;  %v1111_v18 = vld [vmem:[%s5825_s11 + $0xa8] sm:$0xe] }
 0x139   : > { %v1486_v42 = vadd.f32 %v1418_v23, %v1038_v35  ;;  %v1040_v54 = vadd.f32 %v1039_v53, %v6263_v16  ;;  %v2223_v35 = vshrl.u32 %v4974_v62, 16 }
 0x13a   : > { %1772 = vmatmul.bf16.gmra.mxu3 %v5481_v26  ;;  %v2210_v26 = vshrl.u32 %v4973_v20, 16  ;;  %v2198_v53 = vsel %vm5840_vm2, %v2193_v37, %v6518_v19  ;;  %v2208_v22 = vsel %vm5840_vm2, %v2203_v27, %v2207_v57  ;;  %v2221_v20 = vrot.slane %v2219_v60, 5  ;;  %v4975_v19 = vld [vmem:[%s5825_s11 + $0xbc] sm:$0x1]  ;;  %v5482_v27 = vld [vmem:[%s5825_s11 + $0xa8] sm:$0xff] }
 0x13b   : > { %v2415_v4 = vpop.f32.mrf.mxu0  ;;  %v2300_v46 = vunpack.c.l.b16 %v2198_v53 }
 0x13c   : > { %v2212_v56 = vrot.slane %v2210_v26, 4 }
 0x13d   : > { %v1733_v21 = vpop.f32.mrf.mxu3 }
 0x13e   : > { %2454 = vmatmul.bf16.gmra.mxu0 %v2318_v24  ;;  %v1801_v29 = vadd.f32 %v1733_v21, %v1486_v42  ;;  %v1322_v24 = vpack.c.b16 %v1304_v7, %v1303_v36  ;;  %v5635_v42 = vld [vmem:[%s5825_s11 + $0xac] sm:$0xf]  ;;  %v2225_v21 = vrot.slane %v2223_v35, 4  ;;  %v4737_v7 = vrot.slane %v1111_v18, 9 }
 0x13f   : > { %v1248_v12 = vrot.slane %v5635_v42, 5 }
 0x140   : > { %v1420_v61 = vpop.f32.mrf.mxu2  ;;  %v6544_v23 = vadd.f32 %v2415_v4, %v1801_v29  ;;  %v1042_v13 = vpop.f32.mrf.mxu1  ;;  %v2215_v4 = vrot.slane %v2213_v31, 5  ;;  %v5636_v29 = vld [vmem:[%s5825_s11 + $0xb0] sm:$0x1] }
 0x141   : > { %v1487_v8 = vadd.f32 %v1420_v61, %v1040_v54  ;;  %v1250_v62 = vrot.slane %v1248_v12, 4  ;;  %v1251_v44 = vrot.slane %v5636_v29, 5  ;;  %v2301_v54 = vunpack.c.l.b16 %v2208_v22 }
 0x142   : > { %v1043_v57 = vadd.f32 %v1042_v13, %v6287_v45  ;;  %v2216_v26 = vor.u32 %v2215_v4, %v2212_v56  ;;  %v2226_v61 = vor.u32 %v2225_v21, %v2221_v20  ;;  %v1249_v35 = vsel %vm6140_vm5, %v4737_v7, %v1248_v12  ;;  %v4976_v21 = vld [vmem:[%s5825_s11 + $0xc0] sm:$0xf]  ;;  %v5637_v7 = vld [vmem:[%s5825_s11 + $0x10] sm:$0xf] }
 0x143   : > { %v2417_v16 = vpop.f32.mrf.mxu0  ;;  %1081 = vmatmul.bf16.gmra.mxu1 %v5442_v55  ;;  %v2229_v55 = vshll.u32 %v4975_v19, 16  ;;  %v2319_v42 = vpack.c.b16 %v2301_v54, %v2300_v46  ;;  %v1305_v53 = vunpack.c.l.b16 %v1249_v35  ;;  %v5639_v35 = vld [vmem:[%s5825_s11 + $0x14] sm:$0x1] }
 0x144   : > { %v2217_v13 = vrot.slane %v2216_v26, 4  ;;  %v2227_v56 = vrot.slane %v2226_v61, 4  ;;  %v2237_v26 = vshll.u32 %v4976_v21, 16 }
 0x145   : > { %v1735_v36 = vpop.f32.mrf.mxu3  ;;  %1462 = vmatmul.bf16.gmra.mxu2 %v1322_v24  ;;  %v1252_v24 = vsel %vm6140_vm5, %v1250_v62, %v1251_v44  ;;  %v2231_v4 = vrot.slane %v2229_v55, 5  ;;  %v2573_v62 = vrot.slane %v5637_v7, 5  ;;  %v5443_v44 = vld [vmem:[%s5825_s11 + $0xa8] sm:$0xff]  ;;  %v5638_v55 = vld [vmem:[%s5825_s11 + $0xb8] sm:$0xf] }
 0x146   : > { %v1802_v37 = vadd.f32 %v1735_v36, %v1487_v8  ;;  %v1306_v22 = vunpack.c.l.b16 %v1252_v24  ;;  %v4977_v36 = vld [vmem:[%s5825_s11 + $0xc4] sm:$0xf]  ;;  %v2576_v24 = vrot.slane %v5639_v35, 5  ;;  %v5483_v7 = vld [vmem:[%s5825_s11 + $0xb4] sm:$0xff] }
 0x148   : > { %v1423_v31 = vpop.f32.mrf.mxu2  ;;  %v6564_v8 = vadd.f32 %v2417_v16, %v1802_v37  ;;  %v1044_v18 = vpop.f32.mrf.mxu1  ;;  %v1323_v19 = vpack.c.b16 %v1306_v22, %v1305_v53  ;;  %v2222_v37 = vsel %vm5840_vm2, %v2217_v13, %v2221_v20  ;;  %v2247_v20 = vshrl.u32 %v4977_v36, 16  ;;  %v5027_v53 = vld [vmem:[%s5825_s11 + $0xc] sm:$0xe] }
 0x149   : > { %v1488_v60 = vadd.f32 %v1423_v31, %v1043_v57  ;;  %v1045_v16 = vadd.f32 %v1044_v18, %v6307_v9  ;;  %v2234_v57 = vshrl.u32 %v4976_v21, 16  ;;  %v2243_v31 = vshll.u32 %v4977_v36, 16  ;;  %v1112_v18 = vld [vmem:[%s5825_s11 + $0xb4] sm:$0xe] }
 0x14a   : > { %1777 = vmatmul.bf16.gmra.mxu3 %v5482_v27  ;;  %v2232_v27 = vsel %vm5840_vm2, %v2227_v56, %v2231_v4  ;;  %v1255_v9 = vrot.slane %v5638_v55, 5  ;;  %v2302_v13 = vunpack.c.l.b16 %v2222_v37  ;;  %v2239_v4 = vrot.slane %v2237_v26, 5  ;;  %v5640_v55 = vld [vmem:[%s5825_s11 + $0xbc] sm:$0x1] }
 0x14b   : > { %v2420_v45 = vpop.f32.mrf.mxu0  ;;  %v2236_v56 = vrot.slane %v2234_v57, 4  ;;  %v1258_v35 = vrot.slane %v5640_v55, 5  ;;  %v4978_v57 = vld [vmem:[%s5825_s11 + $0xc8] sm:$0x1] }
 0x14d   : > { %v1738_v49 = vpop.f32.mrf.mxu3 }
 0x14e   : > { %2459 = vmatmul.bf16.gmra.mxu0 %v2319_v42  ;;  %v1803_v12 = vadd.f32 %v1738_v49, %v1488_v60  ;;  %v2575_v60 = vrot.slane %v2573_v62, 4  ;;  %v6581_v49 = vrot.slane %v2243_v31, 5 }
 0x150   : > { %v1425_v29 = vpop.f32.mrf.mxu2  ;;  %v6575_v46 = vadd.f32 %v2420_v45, %v1803_v12  ;;  %v1047_v61 = vpop.f32.mrf.mxu1  ;;  %v2303_v45 = vunpack.c.l.b16 %v2232_v27  ;;  %v5043_v12 = vrot.slane %v5027_v53, 9  ;;  %v2577_v37 = vsel %vm6140_vm5, %v2575_v60, %v2576_v24 }
 0x151   : > { %v1489_v54 = vadd.f32 %v1425_v29, %v1045_v16  ;;  %v4738_v16 = vrot.slane %v1112_v18, 9  ;;  %v1257_v29 = vrot.slane %v1255_v9, 4  ;;  %v1048_v36 = vadd.f32 %v1047_v61, %v6324_v33  ;;  %v5251_v18 = vld [vmem:[%s5825_s11 + $0x18] sm:$0xf] }
 0x152   : > { %7327 = vst [vmem:[#allocation5_spill] sm:$0xff] %v6575_v46  ;;  %v2320_v31 = vpack.c.b16 %v2303_v45, %v2302_v13  ;;  %v2253_v45 = vshll.u32 %v4978_v57, 16  ;;  %v3300_v55 = vshll.u32 %v5251_v18, 16 }
 0x153   : > { %v2422_v42 = vpop.f32.mrf.mxu0  ;;  %1086 = vmatmul.bf16.gmra.mxu1 %v5443_v44  ;;  %v2249_v44 = vrot.slane %v2247_v20, 4  ;;  %v1256_v33 = vsel %vm6140_vm5, %v4738_v16, %v1255_v9  ;;  %v1259_v61 = vsel %vm6140_vm5, %v1257_v29, %v1258_v35 }
 0x154   : > { %v1308_v9 = vunpack.c.l.b16 %v1259_v61  ;;  %v3302_v57 = vrot.slane %v3300_v55, 5 }
 0x155   : > { %v1740_v22 = vpop.f32.mrf.mxu3  ;;  %1467 = vmatmul.bf16.gmra.mxu2 %v1323_v19  ;;  %v2574_v19 = vsel %vm6140_vm5, %v5043_v12, %v2573_v62  ;;  %v6599_v62 = vld [vmem:[%s5825_s11 + $0x1c] sm:$0xf]  ;;  %v2240_v12 = vor.u32 %v2239_v4, %v2236_v56  ;;  %v2250_v13 = vor.u32 %v2249_v44, %v6581_v49  ;;  %v2255_v4 = vrot.slane %v2253_v45, 5 }
 0x156   : > { %v1804_v21 = vadd.f32 %v1740_v22, %v1489_v54  ;;  %v2700_v26 = vunpack.c.l.b16 %v2574_v19  ;;  %v2701_v54 = vunpack.c.l.b16 %v2577_v37  ;;  %v1307_v19 = vunpack.c.l.b16 %v1256_v33  ;;  %v5444_v37 = vld [vmem:[%s5825_s11 + $0xb4] sm:$0xff] }
 0x157   : > { %v3306_v16 = vshll.u32 %v6599_v62, 16  ;;  %v3310_v29 = vshrl.u32 %v6599_v62, 16  ;;  %v2251_v56 = vrot.slane %v2250_v13, 4 }
 0x158   : > { %v1428_v27 = vpop.f32.mrf.mxu2  ;;  %v1049_v22 = vpop.f32.mrf.mxu1  ;;  %v6596_v20 = vpack.c.b16 %v2701_v54, %v2700_v26  ;;  %v6601_v60 = vadd.f32 %v2422_v42, %v1804_v21  ;;  %v2241_v21 = vrot.slane %v2240_v12, 4 }
 0x159   : > { %v1490_v53 = vadd.f32 %v1428_v27, %v1048_v36  ;;  %v1050_v42 = vadd.f32 %v1049_v22, %v6339_v0  ;;  %v3308_v33 = vrot.slane %v3306_v16, 5  ;;  %v3312_v61 = vrot.slane %v3310_v29, 4 }
 0x15a   : > { %1782 = vmatmul.bf16.gmra.mxu3 %v5483_v7  ;;  %7328 = vst [vmem:[#allocation6_spill] sm:$0xff] %v6601_v60  ;;  %v3297_v7 = vshrl.u32 %v5251_v18, 16  ;;  %v1324_v18 = vpack.c.b16 %v1308_v9, %v1307_v19  ;;  %v2246_v0 = vsel %vm5840_vm2, %v2241_v21, %v6581_v49  ;;  %v3996_v21 = vrot.slane %v6599_v62, 5 }
 0x15b   : > { %v2425_v24 = vpop.f32.mrf.mxu0  ;;  %v3313_v12 = vor.u32 %v3312_v61, %v3308_v33  ;;  %v2304_v55 = vunpack.c.l.b16 %v2246_v0 }
 0x15c   : > { %v3299_v27 = vrot.slane %v3297_v7, 4  ;;  %v5484_v7 = vld [vmem:[%s5825_s11 + $0xc0] sm:$0xff]  ;;  %v3998_v62 = vrot.slane %v3996_v21, 4 }
 0x15d   : > { %v1743_v36 = vpop.f32.mrf.mxu3  ;;  %v3314_v29 = vrot.slane %v3313_v12, 4 }
 0x15e   : > { %2464 = vmatmul.bf16.gmra.mxu0 %v2320_v31  ;;  %v1805_v35 = vadd.f32 %v1743_v36, %v1490_v53  ;;  %v5253_v31 = vld [vmem:[%s5825_s11 + $0x20] sm:$0x1]  ;;  %v2256_v53 = vsel %vm5840_vm2, %v2251_v56, %v2255_v4  ;;  %v3303_v22 = vor.u32 %v3302_v57, %v3299_v27  ;;  %v6624_v57 = vld [vmem:[%s5825_s11 + $0x28] sm:$0xf] }
 0x15f   : > { %v3316_v13 = vshll.u32 %v5253_v31, 16  ;;  %v2305_v36 = vunpack.c.l.b16 %v2256_v53  ;;  %v3999_v53 = vrot.slane %v5253_v31, 5 }
 0x160   : > { %v1430_v44 = vpop.f32.mrf.mxu2  ;;  %v6608_v26 = vadd.f32 %v2425_v24, %v1805_v35  ;;  %v1052_v60 = vpop.f32.mrf.mxu1  ;;  %v3304_v49 = vrot.slane %v3303_v22, 4  ;;  %v3330_v22 = vshll.u32 %v6624_v57, 16 }
 0x161   : > { %v1491_v54 = vadd.f32 %v1430_v44, %v1050_v42  ;;  %v1053_v19 = vadd.f32 %v1052_v60, %v6361_v32  ;;  %v3318_v35 = vrot.slane %v3316_v13, 5  ;;  %v5347_v42 = vld [vmem:[%s5825_s11 + $0x18] sm:$0xe]  ;;  %v2321_v56 = vpack.c.b16 %v2305_v36, %v2304_v55  ;;  %v5254_v44 = vld [vmem:[%s5825_s11 + $0x24] sm:$0xf] }
 0x162   : > { %v3309_v32 = vsel %vm5840_vm2, %v3304_v49, %v3308_v33  ;;  %v5363_v60 = vrot.slane %v5347_v42, 9  ;;  %v3321_v61 = vshrl.u32 %v5254_v44, 16  ;;  %v3324_v0 = vshll.u32 %v5254_v44, 16  ;;  %v5028_v49 = vld [vmem:[%s5825_s11 + $0x18] sm:$0xe] }
 0x163   : > { %v2427_v46 = vpop.f32.mrf.mxu0  ;;  %1091 = vmatmul.bf16.gmra.mxu1 %v5444_v37  ;;  %v3697_v13 = vunpack.c.l.b16 %v3309_v32  ;;  %v6642_v42 = vrot.slane %v3330_v22, 5  ;;  %v6645_v44 = vld [vmem:[%s5825_s11 + $0x2c] sm:$0x1] }
 0x164   : > { %v3326_v31 = vrot.slane %v3324_v0, 5  ;;  %v3340_v22 = vshll.u32 %v6645_v44, 16 }
 0x165   : > { %v1745_v24 = vpop.f32.mrf.mxu3  ;;  %1472 = vmatmul.bf16.gmra.mxu2 %v1324_v18  ;;  %v3319_v18 = vsel %vm5840_vm2, %v3314_v29, %v3318_v35  ;;  %v3997_v35 = vsel %vm6140_vm5, %v5363_v60, %v3996_v21 }
 0x166   : > { %v1806_v45 = vadd.f32 %v1745_v24, %v1491_v54  ;;  %v3334_v24 = vshrl.u32 %v6624_v57, 16  ;;  %v4123_v21 = vunpack.c.l.b16 %v3997_v35 }
 0x168   : > { %v1433_v9 = vpop.f32.mrf.mxu2  ;;  %v1054_v4 = vpop.f32.mrf.mxu1  ;;  %v6621_v37 = vadd.f32 %v2427_v46, %v1806_v45  ;;  %v5641_v45 = vld [vmem:[%s5825_s11 + $0x1c] sm:$0xf] }
 0x169   : > { %v1492_v16 = vadd.f32 %v1433_v9, %v1053_v19  ;;  %v1055_v12 = vadd.f32 %v1054_v4, %v6379_v3  ;;  %v5509_v19 = vld [vmem:[%s5825_s11 + $0x18] sm:$0xff]  ;;  %v3698_v9 = vunpack.c.l.b16 %v3319_v18  ;;  %v4000_v3 = vsel %vm6140_vm5, %v3998_v62, %v3999_v53 }
 0x16a   : > { %1787 = vmatmul.bf16.gmra.mxu3 %v5484_v7  ;;  %v2580_v7 = vrot.slane %v5641_v45, 5  ;;  %v4124_v60 = vunpack.c.l.b16 %v4000_v3  ;;  %v5257_v45 = vld [vmem:[%s5825_s11 + $0x30] sm:$0xf] }
 0x16b   : > { %v2430_v27 = vpop.f32.mrf.mxu0 }
 0x16c   : > { %v2582_v32 = vrot.slane %v2580_v7, 4 }
 0x16d   : > { %v1748_v54 = vpop.f32.mrf.mxu3 }
 0x16e   : > { %2469 = vmatmul.bf16.gmra.mxu0 %v2321_v56  ;;  %v1807_v46 = vadd.f32 %v1748_v54, %v1492_v16  ;;  %v3323_v16 = vrot.slane %v3321_v61, 4  ;;  %v3336_v56 = vrot.slane %v3334_v24, 4  ;;  %v5642_v54 = vld [vmem:[%s5825_s11 + $0x20] sm:$0x1] }
 0x16f   : > { %v2583_v18 = vrot.slane %v5642_v54, 5 }
 0x170   : > { %v1435_v33 = vpop.f32.mrf.mxu2  ;;  %v6634_v55 = vadd.f32 %v2430_v27, %v1807_v46  ;;  %v1057_v29 = vpop.f32.mrf.mxu1  ;;  %v5044_v27 = vrot.slane %v5028_v49, 9  ;;  %v3327_v0 = vor.u32 %v3326_v31, %v3323_v16  ;;  %v3729_v46 = vpack.c.b16 %v3698_v9, %v3697_v13 }
 0x171   : > { %v1493_v36 = vadd.f32 %v1435_v33, %v1055_v12  ;;  %v3337_v53 = vor.u32 %v3336_v56, %v6642_v42  ;;  %v1058_v24 = vadd.f32 %v1057_v29, %v6258_v17  ;;  %v2584_v33 = vsel %vm6140_vm5, %v2582_v32, %v2583_v18  ;;  %v5348_v56 = vld [vmem:[%s5825_s11 + $0x24] sm:$0xe] }
 0x172   : > { %v2581_v12 = vsel %vm6140_vm5, %v5044_v27, %v2580_v7  ;;  %v3328_v16 = vrot.slane %v3327_v0, 4  ;;  %v3342_v31 = vrot.slane %v3340_v22, 5  ;;  %v4003_v17 = vrot.slane %v6624_v57, 5 }
 0x173   : > { %v2432_v4 = vpop.f32.mrf.mxu0  ;;  %2820 = vmatmul.bf16.vlgmr.msra.gmra.mxu1 %v6596_v20  ;;  %v3338_v9 = vrot.slane %v3337_v53, 4  ;;  %v2702_v7 = vunpack.c.l.b16 %v2581_v12  ;;  %v2703_v3 = vunpack.c.l.b16 %v2584_v33  ;;  %v3345_v27 = vshrl.u32 %v5257_v45, 16 }
 0x174   : > { %v3348_v32 = vshll.u32 %v5257_v45, 16  ;;  %v4005_v0 = vrot.slane %v4003_v17, 4  ;;  %v4006_v53 = vrot.slane %v6645_v44, 5 }
 0x175   : > { %v1750_v61 = vpop.f32.mrf.mxu3  ;;  %3135 = vmatmul.bf16.vlgmr.msra.gmra.mxu2 %v5509_v19  ;;  %v4155_v19 = vpack.c.b16 %v4124_v60, %v4123_v21  ;;  %v3333_v21 = vsel %vm5840_vm2, %v3328_v16, %v6642_v42  ;;  %v5364_v60 = vrot.slane %v5348_v56, 9  ;;  %v3347_v22 = vrot.slane %v3345_v27, 4 }
 0x176   : > { %v1808_v62 = vadd.f32 %v1750_v61, %v1493_v36  ;;  %v6658_v36 = vld [vmem:[%s5825_s11 + $0x34] sm:$0xf]  ;;  %v4007_v56 = vsel %vm6140_vm5, %v4005_v0, %v4006_v53 }
 0x177   : > { %v3354_v54 = vshll.u32 %v6658_v36, 16  ;;  %v3358_v18 = vshrl.u32 %v6658_v36, 16 }
 0x178   : > { %v1438_v20 = vpop.f32.mrf.mxu2  ;;  %v1059_v13 = vpop.f32.mrf.mxu1  ;;  %v6661_v29 = vadd.f32 %v2432_v4, %v1808_v62  ;;  %v3343_v4 = vsel %vm5840_vm2, %v3338_v9, %v3342_v31  ;;  %v6680_v9 = vld [vmem:[%s5825_s11 + $0x38] sm:$0x1] }
 0x179   : > { %v1494_v49 = vadd.f32 %v1438_v20, %v1058_v24  ;;  %v1060_v62 = vadd.f32 %v1059_v13, %v6282_v39  ;;  %v3350_v20 = vrot.slane %v3348_v32, 5  ;;  %v6673_v42 = vrot.slane %v3354_v54, 5 }
 0x17a   : > { %3817 = vmatmul.bf16.vlgmr.msra.gmra.mxu3 %v3729_v46  ;;  %v2733_v46 = vpack.c.b16 %v2703_v3, %v2702_v7  ;;  %v3360_v12 = vrot.slane %v3358_v18, 4  ;;  %v3699_v13 = vunpack.c.l.b16 %v3333_v21  ;;  %v3700_v31 = vunpack.c.l.b16 %v3343_v4  ;;  %v5029_v7 = vld [vmem:[%s5825_s11 + $0x24] sm:$0xe]  ;;  %v5644_v21 = vld [vmem:[%s5825_s11 + $0x2c] sm:$0x1] }
 0x17b   : > { %v2435_v35 = vpop.f32.mrf.mxu0  ;;  %v4004_v3 = vsel %vm6140_vm5, %v5364_v60, %v4003_v17  ;;  %v3364_v32 = vshll.u32 %v6680_v9, 16  ;;  %v5045_v18 = vrot.slane %v5029_v7, 9  ;;  %v4126_v60 = vunpack.c.l.b16 %v4007_v56  ;;  %v5260_v7 = vld [vmem:[%s5825_s11 + $0x3c] sm:$0xf] }
 0x17c   : > { %v3361_v27 = vor.u32 %v3360_v12, %v6673_v42  ;;  %v4125_v17 = vunpack.c.l.b16 %v4004_v3  ;;  %v6701_v3 = vld [vmem:[%s5825_s11 + $0x40] sm:$0xf] }
 0x17d   : > { %v1753_v61 = vpop.f32.mrf.mxu3 }
 0x17e   : > { %4243 = vmatmul.bf16.vlgmr.msra.gmra.mxu0 %v4155_v19  ;;  %v1809_v57 = vadd.f32 %v1753_v61, %v1494_v49  ;;  %v5510_v19 = vld [vmem:[%s5825_s11 + $0x24] sm:$0xff] }
 0x17f   : > { %v5643_v49 = vld [vmem:[%s5825_s11 + $0x28] sm:$0xf] }
 0x180   : > { %v1440_v24 = vpop.f32.mrf.mxu2  ;;  %v6675_v33 = vadd.f32 %v2435_v35, %v1809_v57  ;;  %v2587_v16 = vrot.slane %v5643_v49, 5  ;;  %v1062_v39 = vpop.f32.mrf.mxu1  ;;  %v3351_v35 = vor.u32 %v3350_v20, %v3347_v22  ;;  %v2590_v57 = vrot.slane %v5644_v21, 5  ;;  %v5349_v49 = vld [vmem:[%s5825_s11 + $0x30] sm:$0xe] }
 0x181   : > { %v1495_v45 = vadd.f32 %v1440_v24, %v1060_v62  ;;  %v3730_v62 = vpack.c.b16 %v3700_v31, %v3699_v13  ;;  %v1063_v0 = vadd.f32 %v1062_v39, %v6302_v2  ;;  %v3362_v22 = vrot.slane %v3361_v27, 4 }
 0x182   : > { %v2589_v61 = vrot.slane %v2587_v16, 4  ;;  %v3352_v53 = vrot.slane %v3351_v35, 4  ;;  %v3366_v24 = vrot.slane %v3364_v32, 5  ;;  %v2588_v12 = vsel %vm6140_vm5, %v5045_v18, %v2587_v16 }
 0x183   : > { %v2437_v44 = vpop.f32.mrf.mxu0  ;;  %2825 = vmatmul.bf16.gmra.mxu1 %v2733_v46  ;;  %v4156_v13 = vpack.c.b16 %v4126_v60, %v4125_v17  ;;  %v2704_v56 = vunpack.c.l.b16 %v2588_v12  ;;  %v5365_v27 = vrot.slane %v5349_v49, 9  ;;  %v3369_v18 = vshrl.u32 %v5260_v7, 16  ;;  %v5030_v12 = vld [vmem:[%s5825_s11 + $0x30] sm:$0xe] }
 0x184   : > { %v3357_v16 = vsel %vm5840_vm2, %v3352_v53, %v6673_v42  ;;  %v4013_v21 = vrot.slane %v6680_v9, 5 }
 0x185   : > { %v1755_v54 = vpop.f32.mrf.mxu3  ;;  %3140 = vmatmul.bf16.gmra.mxu2 %v5510_v19  ;;  %v2591_v19 = vsel %vm6140_vm5, %v2589_v61, %v2590_v57  ;;  %v3378_v57 = vshll.u32 %v6701_v3, 16  ;;  %v3701_v60 = vunpack.c.l.b16 %v3357_v16  ;;  %v3371_v9 = vrot.slane %v3369_v18, 4 }
 0x186   : > { %v1810_v4 = vadd.f32 %v1755_v54, %v1495_v45  ;;  %v4010_v45 = vrot.slane %v6658_v36, 5  ;;  %v2705_v35 = vunpack.c.l.b16 %v2591_v19  ;;  %v3367_v36 = vsel %vm5840_vm2, %v3362_v22, %v3366_v24  ;;  %v5511_v24 = vld [vmem:[%s5825_s11 + $0x30] sm:$0xff] }
 0x188   : > { %v1443_v46 = vpop.f32.mrf.mxu2  ;;  %v1064_v31 = vpop.f32.mrf.mxu1  ;;  %v6698_v2 = vadd.f32 %v2437_v44, %v1810_v4  ;;  %v4012_v54 = vrot.slane %v4010_v45, 4  ;;  %v3372_v44 = vshll.u32 %v5260_v7, 16  ;;  %v3382_v4 = vshrl.u32 %v6701_v3, 16 }
 0x189   : > { %v1496_v20 = vadd.f32 %v1443_v46, %v1063_v0  ;;  %v1065_v42 = vadd.f32 %v1064_v31, %v6317_v25  ;;  %v2734_v17 = vpack.c.b16 %v2705_v35, %v2704_v56  ;;  %v5645_v0 = vld [vmem:[%s5825_s11 + $0x34] sm:$0xf]  ;;  %v6721_v31 = vrot.slane %v3378_v57, 5 }
 0x18a   : > { %3822 = vmatmul.bf16.gmra.mxu3 %v3730_v62  ;;  %v2594_v46 = vrot.slane %v5645_v0, 5  ;;  %v3374_v19 = vrot.slane %v3372_v44, 5  ;;  %v4014_v25 = vsel %vm6140_vm5, %v4012_v54, %v4013_v21  ;;  %v3384_v7 = vrot.slane %v3382_v4, 4  ;;  %v5263_v0 = vld [vmem:[%s5825_s11 + $0x48] sm:$0xf] }
 0x18b   : > { %v2440_v39 = vpop.f32.mrf.mxu0  ;;  %v5046_v35 = vrot.slane %v5030_v12, 9 }
 0x18c   : > { %v2596_v16 = vrot.slane %v2594_v46, 4  ;;  %v3385_v21 = vor.u32 %v3384_v7, %v6721_v31  ;;  %v5350_v7 = vld [vmem:[%s5825_s11 + $0x3c] sm:$0xe] }
 0x18d   : > { %v1758_v32 = vpop.f32.mrf.mxu3 }
 0x18e   : > { %4248 = vmatmul.bf16.gmra.mxu0 %v4156_v13  ;;  %v1811_v61 = vadd.f32 %v1758_v32, %v1496_v20  ;;  %v3702_v20 = vunpack.c.l.b16 %v3367_v36  ;;  %v4011_v13 = vsel %vm6140_vm5, %v5365_v27, %v4010_v45  ;;  %v5646_v32 = vld [vmem:[%s5825_s11 + $0x38] sm:$0x1]  ;;  %v4128_v45 = vunpack.c.l.b16 %v4014_v25 }
 0x18f   : > { %v2597_v36 = vrot.slane %v5646_v32, 5  ;;  %v4127_v44 = vunpack.c.l.b16 %v4011_v13  ;;  %v3375_v27 = vor.u32 %v3374_v19, %v3371_v9 }
 0x190   : > { %v1445_v62 = vpop.f32.mrf.mxu2  ;;  %v6713_v53 = vadd.f32 %v2440_v39, %v1811_v61  ;;  %v1067_v49 = vpop.f32.mrf.mxu1  ;;  %v6724_v39 = vld [vmem:[%s5825_s11 + $0x44] sm:$0x1]  ;;  %v3731_v54 = vpack.c.b16 %v3702_v20, %v3701_v60  ;;  %v3386_v20 = vrot.slane %v3385_v21, 4 }
 0x191   : > { %v1497_v22 = vadd.f32 %v1445_v62, %v1065_v42  ;;  %v3388_v57 = vshll.u32 %v6724_v39, 16  ;;  %v1068_v4 = vadd.f32 %v1067_v49, %v6332_v58  ;;  %v2595_v62 = vsel %vm6140_vm5, %v5046_v35, %v2594_v46 }
 0x192   : > { %v3376_v9 = vrot.slane %v3375_v27, 4  ;;  %v4017_v58 = vrot.slane %v6701_v3, 5  ;;  %v2706_v46 = vunpack.c.l.b16 %v2595_v62  ;;  %v3393_v35 = vshrl.u32 %v5263_v0, 16 }
 0x193   : > { %v2442_v56 = vpop.f32.mrf.mxu0  ;;  %2830 = vmatmul.bf16.gmra.mxu1 %v2734_v17  ;;  %v2598_v17 = vsel %vm6140_vm5, %v2596_v16, %v2597_v36  ;;  %v3390_v19 = vrot.slane %v3388_v57, 5  ;;  %v3396_v16 = vshll.u32 %v5263_v0, 16  ;;  %v4020_v21 = vrot.slane %v6724_v39, 5 }
 0x194   : > { %v2707_v25 = vunpack.c.l.b16 %v2598_v17  ;;  %v4019_v27 = vrot.slane %v4017_v58, 4  ;;  %v3395_v57 = vrot.slane %v3393_v35, 4 }
 0x195   : > { %v1760_v18 = vpop.f32.mrf.mxu3  ;;  %3145 = vmatmul.bf16.gmra.mxu2 %v5511_v24  ;;  %v4157_v24 = vpack.c.b16 %v4128_v45, %v4127_v44  ;;  %v3381_v44 = vsel %vm5840_vm2, %v3376_v9, %v6721_v31  ;;  %v5366_v45 = vrot.slane %v5350_v7, 9 }
 0x196   : > { %v1812_v61 = vadd.f32 %v1760_v18, %v1497_v22  ;;  %v6736_v22 = vld [vmem:[%s5825_s11 + $0x4c] sm:$0xf]  ;;  %v4021_v7 = vsel %vm6140_vm5, %v4019_v27, %v4020_v21 }
 0x197   : > { %v3402_v32 = vshll.u32 %v6736_v22, 16  ;;  %v3406_v36 = vshrl.u32 %v6736_v22, 16 }
 0x198   : > { %v1448_v42 = vpop.f32.mrf.mxu2  ;;  %v1069_v60 = vpop.f32.mrf.mxu1  ;;  %v6739_v49 = vadd.f32 %v2442_v56, %v1812_v61  ;;  %v3391_v56 = vsel %vm5840_vm2, %v3386_v20, %v3390_v19  ;;  %v6758_v20 = vld [vmem:[%s5825_s11 + $0x50] sm:$0x1] }
 0x199   : > { %v1498_v12 = vadd.f32 %v1448_v42, %v1068_v4  ;;  %v1070_v61 = vadd.f32 %v1069_v60, %v6355_v51  ;;  %v3398_v42 = vrot.slane %v3396_v16, 5  ;;  %v6751_v31 = vrot.slane %v3402_v32, 5 }
 0x19a   : > { %3827 = vmatmul.bf16.gmra.mxu3 %v3731_v54  ;;  %v2735_v54 = vpack.c.b16 %v2707_v25, %v2706_v46  ;;  %v3408_v62 = vrot.slane %v3406_v36, 4  ;;  %v3703_v60 = vunpack.c.l.b16 %v3381_v44  ;;  %v3704_v19 = vunpack.c.l.b16 %v3391_v56  ;;  %v5031_v46 = vld [vmem:[%s5825_s11 + $0x3c] sm:$0xe]  ;;  %v5648_v44 = vld [vmem:[%s5825_s11 + $0x44] sm:$0x1] }
 0x19b   : > { %v2445_v13 = vpop.f32.mrf.mxu0  ;;  %v4018_v25 = vsel %vm6140_vm5, %v5366_v45, %v4017_v58  ;;  %v3412_v16 = vshll.u32 %v6758_v20, 16  ;;  %v5047_v36 = vrot.slane %v5031_v46, 9  ;;  %v4130_v45 = vunpack.c.l.b16 %v4021_v7  ;;  %v5266_v46 = vld [vmem:[%s5825_s11 + $0x54] sm:$0xf] }
 0x19c   : > { %v3409_v35 = vor.u32 %v3408_v62, %v6751_v31  ;;  %v4129_v58 = vunpack.c.l.b16 %v4018_v25  ;;  %v6779_v25 = vld [vmem:[%s5825_s11 + $0x58] sm:$0xf] }
 0x19d   : > { %v1763_v18 = vpop.f32.mrf.mxu3 }
 0x19e   : > { %4253 = vmatmul.bf16.gmra.mxu0 %v4157_v24  ;;  %v1813_v3 = vadd.f32 %v1763_v18, %v1498_v12  ;;  %v5512_v24 = vld [vmem:[%s5825_s11 + $0x3c] sm:$0xff] }
 0x19f   : > { %v5647_v12 = vld [vmem:[%s5825_s11 + $0x40] sm:$0xf] }
 0x1a0   : > { %v1450_v4 = vpop.f32.mrf.mxu2  ;;  %v6753_v17 = vadd.f32 %v2445_v13, %v1813_v3  ;;  %v2601_v9 = vrot.slane %v5647_v12, 5  ;;  %v1072_v51 = vpop.f32.mrf.mxu1  ;;  %v3399_v13 = vor.u32 %v3398_v42, %v3395_v57  ;;  %v2604_v3 = vrot.slane %v5648_v44, 5  ;;  %v5351_v12 = vld [vmem:[%s5825_s11 + $0x48] sm:$0xe] }
 0x1a1   : > { %v1499_v0 = vadd.f32 %v1450_v4, %v1070_v61  ;;  %v3732_v61 = vpack.c.b16 %v3704_v19, %v3703_v60  ;;  %v1073_v27 = vadd.f32 %v1072_v51, %v6376_v14  ;;  %v3410_v57 = vrot.slane %v3409_v35, 4 }
 0x1a2   : > { %v2603_v18 = vrot.slane %v2601_v9, 4  ;;  %v3400_v21 = vrot.slane %v3399_v13, 4  ;;  %v3414_v4 = vrot.slane %v3412_v16, 5  ;;  %v2602_v62 = vsel %vm6140_vm5, %v5047_v36, %v2601_v9 }
 0x1a3   : > { %v2447_v39 = vpop.f32.mrf.mxu0  ;;  %2835 = vmatmul.bf16.gmra.mxu1 %v2735_v54  ;;  %v4158_v60 = vpack.c.b16 %v4130_v45, %v4129_v58  ;;  %v2708_v7 = vunpack.c.l.b16 %v2602_v62  ;;  %v5367_v35 = vrot.slane %v5351_v12, 9  ;;  %v3417_v36 = vshrl.u32 %v5266_v46, 16  ;;  %v5032_v62 = vld [vmem:[%s5825_s11 + $0x48] sm:$0xe] }
 0x1a4   : > { %v3405_v9 = vsel %vm5840_vm2, %v3400_v21, %v6751_v31  ;;  %v4027_v44 = vrot.slane %v6758_v20, 5 }
 0x1a5   : > { %v1765_v32 = vpop.f32.mrf.mxu3  ;;  %3150 = vmatmul.bf16.gmra.mxu2 %v5512_v24  ;;  %v2605_v24 = vsel %vm6140_vm5, %v2603_v18, %v2604_v3  ;;  %v3426_v3 = vshll.u32 %v6779_v25, 16  ;;  %v3705_v45 = vunpack.c.l.b16 %v3405_v9  ;;  %v3419_v20 = vrot.slane %v3417_v36, 4 }
 0x1a6   : > { %v1814_v56 = vadd.f32 %v1765_v32, %v1499_v0  ;;  %v4024_v0 = vrot.slane %v6736_v22, 5  ;;  %v2709_v13 = vunpack.c.l.b16 %v2605_v24  ;;  %v3415_v22 = vsel %vm5840_vm2, %v3410_v57, %v3414_v4  ;;  %v5513_v4 = vld [vmem:[%s5825_s11 + $0x48] sm:$0xff] }
 0x1a8   : > { %v1453_v54 = vpop.f32.mrf.mxu2  ;;  %v1074_v19 = vpop.f32.mrf.mxu1  ;;  %v6776_v14 = vadd.f32 %v2447_v39, %v1814_v56  ;;  %v4026_v32 = vrot.slane %v4024_v0, 4  ;;  %v3420_v39 = vshll.u32 %v5266_v46, 16  ;;  %v3430_v56 = vshrl.u32 %v6779_v25, 16 }
 0x1a9   : > { %v1500_v42 = vadd.f32 %v1453_v54, %v1073_v27  ;;  %v1075_v31 = vadd.f32 %v1074_v19, %v6391_v38  ;;  %v2736_v58 = vpack.c.b16 %v2709_v13, %v2708_v7  ;;  %v5649_v27 = vld [vmem:[%s5825_s11 + $0x4c] sm:$0xf]  ;;  %v6799_v19 = vrot.slane %v3426_v3, 5 }
 0x1aa   : > { %3832 = vmatmul.bf16.gmra.mxu3 %v3732_v61  ;;  %v2608_v54 = vrot.slane %v5649_v27, 5  ;;  %v3422_v24 = vrot.slane %v3420_v39, 5  ;;  %v4028_v38 = vsel %vm6140_vm5, %v4026_v32, %v4027_v44  ;;  %v3432_v46 = vrot.slane %v3430_v56, 4  ;;  %v5269_v27 = vld [vmem:[%s5825_s11 + $0x60] sm:$0xf] }
 0x1ab   : > { %v2450_v51 = vpop.f32.mrf.mxu0  ;;  %v5048_v13 = vrot.slane %v5032_v62, 9 }
 0x1ac   : > { %v2610_v9 = vrot.slane %v2608_v54, 4  ;;  %v3433_v44 = vor.u32 %v3432_v46, %v6799_v19  ;;  %v5352_v46 = vld [vmem:[%s5825_s11 + $0x54] sm:$0xe] }
 0x1ad   : > { %v1768_v16 = vpop.f32.mrf.mxu3 }
 0x1ae   : > { %4258 = vmatmul.bf16.gmra.mxu0 %v4158_v60  ;;  %v1815_v18 = vadd.f32 %v1768_v16, %v1500_v42  ;;  %v3706_v42 = vunpack.c.l.b16 %v3415_v22  ;;  %v4025_v60 = vsel %vm6140_vm5, %v5367_v35, %v4024_v0  ;;  %v5650_v16 = vld [vmem:[%s5825_s11 + $0x50] sm:$0x1]  ;;  %v4132_v0 = vunpack.c.l.b16 %v4028_v38 }
 0x1af   : > { %v2611_v22 = vrot.slane %v5650_v16, 5  ;;  %v4131_v39 = vunpack.c.l.b16 %v4025_v60  ;;  %v3423_v35 = vor.u32 %v3422_v24, %v3419_v20 }
 0x1b0   : > { %v1455_v61 = vpop.f32.mrf.mxu2  ;;  %v6791_v21 = vadd.f32 %v2450_v51, %v1815_v18  ;;  %v1077_v12 = vpop.f32.mrf.mxu1  ;;  %v6802_v51 = vld [vmem:[%s5825_s11 + $0x5c] sm:$0x1]  ;;  %v3733_v32 = vpack.c.b16 %v3706_v42, %v3705_v45  ;;  %v3434_v42 = vrot.slane %v3433_v44, 4 }
 0x1b1   : > { %v1501_v57 = vadd.f32 %v1455_v61, %v1075_v31  ;;  %v3436_v3 = vshll.u32 %v6802_v51, 16  ;;  %v1078_v56 = vadd.f32 %v1077_v12, %v6261_v50  ;;  %v2609_v61 = vsel %vm6140_vm5, %v5048_v13, %v2608_v54 }
 0x1b2   : > { %v3424_v20 = vrot.slane %v3423_v35, 4  ;;  %v4031_v50 = vrot.slane %v6779_v25, 5  ;;  %v2710_v54 = vunpack.c.l.b16 %v2609_v61  ;;  %v3441_v13 = vshrl.u32 %v5269_v27, 16 }
 0x1b3   : > { %v2452_v7 = vpop.f32.mrf.mxu0  ;;  %2840 = vmatmul.bf16.gmra.mxu1 %v2736_v58  ;;  %v2612_v58 = vsel %vm6140_vm5, %v2610_v9, %v2611_v22  ;;  %v3438_v24 = vrot.slane %v3436_v3, 5  ;;  %v3444_v9 = vshll.u32 %v5269_v27, 16  ;;  %v4034_v44 = vrot.slane %v6802_v51, 5 }
 0x1b4   : > { %v2711_v38 = vunpack.c.l.b16 %v2612_v58  ;;  %v4033_v35 = vrot.slane %v4031_v50, 4  ;;  %v3443_v3 = vrot.slane %v3441_v13, 4 }
 0x1b5   : > { %v1770_v36 = vpop.f32.mrf.mxu3  ;;  %3155 = vmatmul.bf16.gmra.mxu2 %v5513_v4  ;;  %v4159_v4 = vpack.c.b16 %v4132_v0, %v4131_v39  ;;  %v3429_v39 = vsel %vm5840_vm2, %v3424_v20, %v6799_v19  ;;  %v5368_v0 = vrot.slane %v5352_v46, 9 }
 0x1b6   : > { %v1816_v18 = vadd.f32 %v1770_v36, %v1501_v57  ;;  %v6814_v57 = vld [vmem:[%s5825_s11 + $0x64] sm:$0xf]  ;;  %v4035_v46 = vsel %vm6140_vm5, %v4033_v35, %v4034_v44 }
 0x1b7   : > { %v3450_v16 = vshll.u32 %v6814_v57, 16  ;;  %v3454_v22 = vshrl.u32 %v6814_v57, 16 }
 0x1b8   : > { %v1458_v31 = vpop.f32.mrf.mxu2  ;;  %v1079_v45 = vpop.f32.mrf.mxu1  ;;  %v6817_v12 = vadd.f32 %v2452_v7, %v1816_v18  ;;  %v3439_v7 = vsel %vm5840_vm2, %v3434_v42, %v3438_v24  ;;  %v6836_v42 = vld [vmem:[%s5825_s11 + $0x68] sm:$0x1] }
 0x1b9   : > { %v1502_v62 = vadd.f32 %v1458_v31, %v1078_v56  ;;  %v1080_v18 = vadd.f32 %v1079_v45, %v6284_v40  ;;  %v3446_v31 = vrot.slane %v3444_v9, 5  ;;  %v6829_v19 = vrot.slane %v3450_v16, 5 }
 0x1ba   : > { %3837 = vmatmul.bf16.gmra.mxu3 %v3733_v32  ;;  %v2737_v32 = vpack.c.b16 %v2711_v38, %v2710_v54  ;;  %v3456_v61 = vrot.slane %v3454_v22, 4  ;;  %v3707_v45 = vunpack.c.l.b16 %v3429_v39  ;;  %v3708_v24 = vunpack.c.l.b16 %v3439_v7  ;;  %v5033_v54 = vld [vmem:[%s5825_s11 + $0x54] sm:$0xe]  ;;  %v5652_v39 = vld [vmem:[%s5825_s11 + $0x5c] sm:$0x1] }
 0x1bb   : > { %v2455_v60 = vpop.f32.mrf.mxu0  ;;  %v4032_v38 = vsel %vm6140_vm5, %v5368_v0, %v4031_v50  ;;  %v3460_v9 = vshll.u32 %v6836_v42, 16  ;;  %v5049_v22 = vrot.slane %v5033_v54, 9  ;;  %v4134_v0 = vunpack.c.l.b16 %v4035_v46  ;;  %v5272_v54 = vld [vmem:[%s5825_s11 + $0x6c] sm:$0xf] }
 0x1bc   : > { %v3457_v13 = vor.u32 %v3456_v61, %v6829_v19  ;;  %v4133_v50 = vunpack.c.l.b16 %v4032_v38  ;;  %v6857_v38 = vld [vmem:[%s5825_s11 + $0x70] sm:$0xf] }
 0x1bd   : > { %v1773_v36 = vpop.f32.mrf.mxu3 }
 0x1be   : > { %4263 = vmatmul.bf16.gmra.mxu0 %v4159_v4  ;;  %v1817_v25 = vadd.f32 %v1773_v36, %v1502_v62  ;;  %v5514_v4 = vld [vmem:[%s5825_s11 + $0x54] sm:$0xff] }
 0x1bf   : > { %v5651_v62 = vld [vmem:[%s5825_s11 + $0x58] sm:$0xf] }
 0x1c0   : > { %v1460_v56 = vpop.f32.mrf.mxu2  ;;  %v6831_v58 = vadd.f32 %v2455_v60, %v1817_v25  ;;  %v2615_v20 = vrot.slane %v5651_v62, 5  ;;  %v1082_v40 = vpop.f32.mrf.mxu1  ;;  %v3447_v60 = vor.u32 %v3446_v31, %v3443_v3  ;;  %v2618_v25 = vrot.slane %v5652_v39, 5  ;;  %v5353_v62 = vld [vmem:[%s5825_s11 + $0x60] sm:$0xe] }
 0x1c1   : > { %v1503_v27 = vadd.f32 %v1460_v56, %v1080_v18  ;;  %v3734_v18 = vpack.c.b16 %v3708_v24, %v3707_v45  ;;  %v1083_v35 = vadd.f32 %v1082_v40, %v6305_v6  ;;  %v3458_v3 = vrot.slane %v3457_v13, 4 }
 0x1c2   : > { %v2617_v36 = vrot.slane %v2615_v20, 4  ;;  %v3448_v44 = vrot.slane %v3447_v60, 4  ;;  %v3462_v56 = vrot.slane %v3460_v9, 5  ;;  %v2616_v61 = vsel %vm6140_vm5, %v5049_v22, %v2615_v20 }
 0x1c3   : > { %v2457_v51 = vpop.f32.mrf.mxu0  ;;  %2845 = vmatmul.bf16.gmra.mxu1 %v2737_v32  ;;  %v4160_v45 = vpack.c.b16 %v4134_v0, %v4133_v50  ;;  %v2712_v46 = vunpack.c.l.b16 %v2616_v61  ;;  %v5369_v13 = vrot.slane %v5353_v62, 9  ;;  %v3465_v22 = vshrl.u32 %v5272_v54, 16  ;;  %v5034_v61 = vld [vmem:[%s5825_s11 + $0x60] sm:$0xe] }
 0x1c4   : > { %v3453_v20 = vsel %vm5840_vm2, %v3448_v44, %v6829_v19  ;;  %v4041_v39 = vrot.slane %v6836_v42, 5 }
 0x1c5   : > { %v1775_v16 = vpop.f32.mrf.mxu3  ;;  %3160 = vmatmul.bf16.gmra.mxu2 %v5514_v4  ;;  %v2619_v4 = vsel %vm6140_vm5, %v2617_v36, %v2618_v25  ;;  %v3474_v25 = vshll.u32 %v6857_v38, 16  ;;  %v3709_v0 = vunpack.c.l.b16 %v3453_v20  ;;  %v3467_v42 = vrot.slane %v3465_v22, 4 }
 0x1c6   : > { %v1818_v7 = vadd.f32 %v1775_v16, %v1503_v27  ;;  %v4038_v27 = vrot.slane %v6814_v57, 5  ;;  %v2713_v60 = vunpack.c.l.b16 %v2619_v4  ;;  %v3463_v57 = vsel %vm5840_vm2, %v3458_v3, %v3462_v56  ;;  %v5515_v56 = vld [vmem:[%s5825_s11 + $0x60] sm:$0xff] }
 0x1c8   : > { %v1463_v32 = vpop.f32.mrf.mxu2  ;;  %v1084_v24 = vpop.f32.mrf.mxu1  ;;  %v6854_v6 = vadd.f32 %v2457_v51, %v1818_v7  ;;  %v4040_v16 = vrot.slane %v4038_v27, 4  ;;  %v3468_v51 = vshll.u32 %v5272_v54, 16  ;;  %v3478_v7 = vshrl.u32 %v6857_v38, 16 }
 0x1c9   : > { %v1504_v31 = vadd.f32 %v1463_v32, %v1083_v35  ;;  %v1085_v19 = vadd.f32 %v1084_v24, %v6319_v28  ;;  %v2738_v50 = vpack.c.b16 %v2713_v60, %v2712_v46  ;;  %v5653_v35 = vld [vmem:[%s5825_s11 + $0x64] sm:$0xf]  ;;  %v6877_v24 = vrot.slane %v3474_v25, 5 }
 0x1ca   : > { %3842 = vmatmul.bf16.gmra.mxu3 %v3734_v18  ;;  %v2622_v32 = vrot.slane %v5653_v35, 5  ;;  %v3470_v4 = vrot.slane %v3468_v51, 5  ;;  %v4042_v28 = vsel %vm6140_vm5, %v4040_v16, %v4041_v39  ;;  %v3480_v54 = vrot.slane %v3478_v7, 4  ;;  %v5275_v35 = vld [vmem:[%s5825_s11 + $0x78] sm:$0xf] }
 0x1cb   : > { %v2460_v40 = vpop.f32.mrf.mxu0  ;;  %v5050_v60 = vrot.slane %v5034_v61, 9 }
 0x1cc   : > { %v2624_v20 = vrot.slane %v2622_v32, 4  ;;  %v3481_v39 = vor.u32 %v3480_v54, %v6877_v24  ;;  %v5354_v54 = vld [vmem:[%s5825_s11 + $0x6c] sm:$0xe] }
 0x1cd   : > { %v1778_v9 = vpop.f32.mrf.mxu3 }
 0x1ce   : > { %4268 = vmatmul.bf16.gmra.mxu0 %v4160_v45  ;;  %v1819_v36 = vadd.f32 %v1778_v9, %v1504_v31  ;;  %v3710_v31 = vunpack.c.l.b16 %v3463_v57  ;;  %v4039_v45 = vsel %vm6140_vm5, %v5369_v13, %v4038_v27  ;;  %v5654_v9 = vld [vmem:[%s5825_s11 + $0x68] sm:$0x1]  ;;  %v4136_v27 = vunpack.c.l.b16 %v4042_v28 }
 0x1cf   : > { %v2625_v57 = vrot.slane %v5654_v9, 5  ;;  %v4135_v51 = vunpack.c.l.b16 %v4039_v45  ;;  %v3471_v13 = vor.u32 %v3470_v4, %v3467_v42 }
 0x1d0   : > { %v1465_v18 = vpop.f32.mrf.mxu2  ;;  %v6869_v44 = vadd.f32 %v2460_v40, %v1819_v36  ;;  %v1087_v62 = vpop.f32.mrf.mxu1  ;;  %v6880_v40 = vld [vmem:[%s5825_s11 + $0x74] sm:$0x1]  ;;  %v3735_v16 = vpack.c.b16 %v3710_v31, %v3709_v0  ;;  %v3482_v31 = vrot.slane %v3481_v39, 4 }
 0x1d1   : > { %v1505_v3 = vadd.f32 %v1465_v18, %v1085_v19  ;;  %v3484_v25 = vshll.u32 %v6880_v40, 16  ;;  %v1088_v7 = vadd.f32 %v1087_v62, %v6337_v63  ;;  %v2623_v18 = vsel %vm6140_vm5, %v5050_v60, %v2622_v32 }
 0x1d2   : > { %v3472_v42 = vrot.slane %v3471_v13, 4  ;;  %v4045_v63 = vrot.slane %v6857_v38, 5  ;;  %v2714_v32 = vunpack.c.l.b16 %v2623_v18  ;;  %v3489_v60 = vshrl.u32 %v5275_v35, 16 }
 0x1d3   : > { %v2462_v46 = vpop.f32.mrf.mxu0  ;;  %2850 = vmatmul.bf16.gmra.mxu1 %v2738_v50  ;;  %v2626_v50 = vsel %vm6140_vm5, %v2624_v20, %v2625_v57  ;;  %v3486_v4 = vrot.slane %v3484_v25, 5  ;;  %v3492_v20 = vshll.u32 %v5275_v35, 16  ;;  %v4048_v39 = vrot.slane %v6880_v40, 5 }
 0x1d4   : > { %v2715_v28 = vunpack.c.l.b16 %v2626_v50  ;;  %v4047_v13 = vrot.slane %v4045_v63, 4  ;;  %v3491_v25 = vrot.slane %v3489_v60, 4 }
 0x1d5   : > { %v1780_v22 = vpop.f32.mrf.mxu3  ;;  %3165 = vmatmul.bf16.gmra.mxu2 %v5515_v56  ;;  %v4161_v56 = vpack.c.b16 %v4136_v27, %v4135_v51  ;;  %v3477_v51 = vsel %vm5840_vm2, %v3472_v42, %v6877_v24  ;;  %v5370_v27 = vrot.slane %v5354_v54, 9 }
 0x1d6   : > { %v1820_v36 = vadd.f32 %v1780_v22, %v1505_v3  ;;  %v6892_v3 = vld [vmem:[%s5825_s11 + $0x7c] sm:$0xf]  ;;  %v4049_v54 = vsel %vm6140_vm5, %v4047_v13, %v4048_v39 }
 0x1d7   : > { %v3498_v9 = vshll.u32 %v6892_v3, 16  ;;  %v3502_v57 = vshrl.u32 %v6892_v3, 16 }
 0x1d8   : > { %v1468_v19 = vpop.f32.mrf.mxu2  ;;  %v1089_v0 = vpop.f32.mrf.mxu1  ;;  %v6895_v62 = vadd.f32 %v2462_v46, %v1820_v36  ;;  %v3487_v46 = vsel %vm5840_vm2, %v3482_v31, %v3486_v4  ;;  %v6914_v31 = vld [vmem:[%s5825_s11 + $0x80] sm:$0x1] }
 0x1d9   : > { %v1506_v61 = vadd.f32 %v1468_v19, %v1088_v7  ;;  %v1090_v36 = vadd.f32 %v1089_v0, %v6368_v41  ;;  %v3494_v19 = vrot.slane %v3492_v20, 5  ;;  %v6907_v24 = vrot.slane %v3498_v9, 5 }
 0x1da   : > { %3847 = vmatmul.bf16.gmra.mxu3 %v3735_v16  ;;  %v2739_v16 = vpack.c.b16 %v2715_v28, %v2714_v32  ;;  %v3504_v18 = vrot.slane %v3502_v57, 4  ;;  %v3711_v0 = vunpack.c.l.b16 %v3477_v51  ;;  %v3712_v4 = vunpack.c.l.b16 %v3487_v46  ;;  %v5035_v32 = vld [vmem:[%s5825_s11 + $0x6c] sm:$0xe]  ;;  %v5656_v51 = vld [vmem:[%s5825_s11 + $0x74] sm:$0x1] }
 0x1db   : > { %v2465_v45 = vpop.f32.mrf.mxu0  ;;  %v4046_v28 = vsel %vm6140_vm5, %v5370_v27, %v4045_v63  ;;  %v3508_v20 = vshll.u32 %v6914_v31, 16  ;;  %v5051_v57 = vrot.slane %v5035_v32, 9  ;;  %v4138_v27 = vunpack.c.l.b16 %v4049_v54  ;;  %v5278_v32 = vld [vmem:[%s5825_s11 + $0x84] sm:$0xf] }
 0x1dc   : > { %v3505_v60 = vor.u32 %v3504_v18, %v6907_v24  ;;  %v4137_v63 = vunpack.c.l.b16 %v4046_v28  ;;  %v6935_v28 = vld [vmem:[%s5825_s11 + $0x88] sm:$0xf] }
 0x1dd   : > { %v1783_v22 = vpop.f32.mrf.mxu3 }
 0x1de   : > { %4273 = vmatmul.bf16.gmra.mxu0 %v4161_v56  ;;  %v1821_v38 = vadd.f32 %v1783_v22, %v1506_v61  ;;  %v5516_v56 = vld [vmem:[%s5825_s11 + $0x6c] sm:$0xff] }
 0x1df   : > { %v5655_v61 = vld [vmem:[%s5825_s11 + $0x70] sm:$0xf] }
 0x1e0   : > { %v1470_v7 = vpop.f32.mrf.mxu2  ;;  %v6909_v50 = vadd.f32 %v2465_v45, %v1821_v38  ;;  %v2629_v42 = vrot.slane %v5655_v61, 5  ;;  %v1092_v41 = vpop.f32.mrf.mxu1  ;;  %v3495_v45 = vor.u32 %v3494_v19, %v3491_v25  ;;  %v2632_v38 = vrot.slane %v5656_v51, 5  ;;  %v5355_v61 = vld [vmem:[%s5825_s11 + $0x78] sm:$0xe] }
 0x1e1   : > { %v1507_v35 = vadd.f32 %v1470_v7, %v1090_v36  ;;  %v3736_v36 = vpack.c.b16 %v3712_v4, %v3711_v0  ;;  %v1093_v13 = vadd.f32 %v1092_v41, %v6388_v15  ;;  %v3506_v25 = vrot.slane %v3505_v60, 4 }
 0x1e2   : > { %v2631_v22 = vrot.slane %v2629_v42, 4  ;;  %v3496_v39 = vrot.slane %v3495_v45, 4  ;;  %v3510_v7 = vrot.slane %v3508_v20, 5  ;;  %v2630_v18 = vsel %vm6140_vm5, %v5051_v57, %v2629_v42 }
 0x1e3   : > { %v2467_v40 = vpop.f32.mrf.mxu0  ;;  %2855 = vmatmul.bf16.gmra.mxu1 %v2739_v16  ;;  %v4162_v0 = vpack.c.b16 %v4138_v27, %v4137_v63  ;;  %v2716_v54 = vunpack.c.l.b16 %v2630_v18  ;;  %v5371_v60 = vrot.slane %v5355_v61, 9  ;;  %v3513_v57 = vshrl.u32 %v5278_v32, 16  ;;  %v5036_v18 = vld [vmem:[%s5825_s11 + $0x78] sm:$0xe] }
 0x1e4   : > { %v3501_v42 = vsel %vm5840_vm2, %v3496_v39, %v6907_v24  ;;  %v4055_v51 = vrot.slane %v6914_v31, 5 }
 0x1e5   : > { %v1785_v9 = vpop.f32.mrf.mxu3  ;;  %3170 = vmatmul.bf16.gmra.mxu2 %v5516_v56  ;;  %v2633_v56 = vsel %vm6140_vm5, %v2631_v22, %v2632_v38  ;;  %v3522_v38 = vshll.u32 %v6935_v28, 16  ;;  %v3713_v27 = vunpack.c.l.b16 %v3501_v42  ;;  %v3515_v31 = vrot.slane %v3513_v57, 4 }
 0x1e6   : > { %v1822_v46 = vadd.f32 %v1785_v9, %v1507_v35  ;;  %v4052_v35 = vrot.slane %v6892_v3, 5  ;;  %v2717_v45 = vunpack.c.l.b16 %v2633_v56  ;;  %v3511_v3 = vsel %vm5840_vm2, %v3506_v25, %v3510_v7  ;;  %v5517_v7 = vld [vmem:[%s5825_s11 + $0x78] sm:$0xff] }
 0x1e7   : > { %v5052_v42 = vrot.slane %v5036_v18, 9 }
 0x1e8   : > { %v1473_v16 = vpop.f32.mrf.mxu2  ;;  %v1094_v4 = vpop.f32.mrf.mxu1  ;;  %v6932_v15 = vadd.f32 %v2467_v40, %v1822_v46  ;;  %v4054_v9 = vrot.slane %v4052_v35, 4  ;;  %v3516_v40 = vshll.u32 %v5278_v32, 16  ;;  %v3526_v46 = vshrl.u32 %v6935_v28, 16 }
 0x1e9   : > { %v1508_v19 = vadd.f32 %v1473_v16, %v1093_v13  ;;  %v1095_v24 = vadd.f32 %v1094_v4, %v6403_v1  ;;  %v2740_v63 = vpack.c.b16 %v2717_v45, %v2716_v54  ;;  %v5657_v13 = vld [vmem:[%s5825_s11 + $0x7c] sm:$0xf]  ;;  %v6955_v4 = vrot.slane %v3522_v38, 5  ;;  %v6959_v45 = vld [vmem:[%s5825_s11 + $0x8c] sm:$0x1] }
 0x1ea   : > { %3852 = vmatmul.bf16.gmra.mxu3 %v3736_v36  ;;  %v2636_v16 = vrot.slane %v5657_v13, 5  ;;  %v3518_v56 = vrot.slane %v3516_v40, 5  ;;  %v4056_v1 = vsel %vm6140_vm5, %v4054_v9, %v4055_v51  ;;  %v3528_v32 = vrot.slane %v3526_v46, 4 }
 0x1eb   : > { %v2470_v41 = vpop.f32.mrf.mxu0 }
 0x1ec   : > { %v3519_v9 = vor.u32 %v3518_v56, %v3515_v31  ;;  %v3529_v38 = vor.u32 %v3528_v32, %v6955_v4  ;;  %v4059_v31 = vrot.slane %v6935_v28, 5 }
 0x1ed   : > { %v1788_v20 = vpop.f32.mrf.mxu3 }
 0x1ee   : > { %4278 = vmatmul.bf16.gmra.mxu0 %v4162_v0  ;;  %v1823_v22 = vadd.f32 %v1788_v20, %v1508_v19  ;;  %v3714_v19 = vunpack.c.l.b16 %v3511_v3  ;;  %v4053_v0 = vsel %vm6140_vm5, %v5371_v60, %v4052_v35  ;;  %v2638_v20 = vrot.slane %v2636_v16, 4  ;;  %v5658_v3 = vld [vmem:[%s5825_s11 + $0x80] sm:$0x1] }
 0x1ef   : > { %v2639_v57 = vrot.slane %v5658_v3, 5  ;;  %v4139_v35 = vunpack.c.l.b16 %v4053_v0  ;;  %v4140_v60 = vunpack.c.l.b16 %v4056_v1  ;;  %v3520_v18 = vrot.slane %v3519_v9, 4 }
 0x1f0   : > { %v1475_v36 = vpop.f32.mrf.mxu2  ;;  %v6947_v39 = vadd.f32 %v2470_v41, %v1823_v22  ;;  %v2821_v61 = vpop.f32.mrf.mxu1  ;;  %v3737_v51 = vpack.c.b16 %v3714_v19, %v3713_v27  ;;  %v4061_v9 = vrot.slane %v4059_v31, 4 }
 0x1f1   : > { %v1509_v25 = vadd.f32 %v1475_v36, %v1095_v24  ;;  %v2901_v41 = vadd.f32 %v2821_v61, %v6429_v59  ;;  %v3532_v59 = vshll.u32 %v6959_v45, 16  ;;  %v2637_v24 = vsel %vm6140_vm5, %v5052_v42, %v2636_v16  ;;  %v6970_v61 = vld [vmem:[%s5825_s11 + $0x94] sm:$0xf]  ;;  %v5356_v42 = vld [vmem:[%s5825_s11 + $0x84] sm:$0xe] }
 0x1f2   : > { %v2640_v36 = vsel %vm6140_vm5, %v2638_v20, %v2639_v57  ;;  %v4163_v13 = vpack.c.b16 %v4140_v60, %v4139_v35  ;;  %v2718_v1 = vunpack.c.l.b16 %v2637_v24  ;;  %v3550_v57 = vshrl.u32 %v6970_v61, 16 }
 0x1f3   : > { %v2472_v54 = vpop.f32.mrf.mxu0  ;;  %2860 = vmatmul.bf16.gmra.mxu1 %v2740_v63  ;;  %v5281_v63 = vld [vmem:[%s5825_s11 + $0x90] sm:$0xf]  ;;  %v3534_v19 = vrot.slane %v3532_v59, 5  ;;  %v2719_v32 = vunpack.c.l.b16 %v2640_v36  ;;  %v3525_v28 = vsel %vm5840_vm2, %v3520_v18, %v6955_v4  ;;  %v5659_v4 = vld [vmem:[%s5825_s11 + $0x88] sm:$0xf] }
 0x1f4   : > { %v3537_v20 = vshrl.u32 %v5281_v63, 16  ;;  %v3540_v3 = vshll.u32 %v5281_v63, 16  ;;  %v3552_v36 = vrot.slane %v3550_v57, 4  ;;  %v6990_v18 = vld [vmem:[%s5825_s11 + $0x98] sm:$0x1] }
 0x1f5   : > { %v1790_v40 = vpop.f32.mrf.mxu3  ;;  %3175 = vmatmul.bf16.gmra.mxu2 %v5517_v7  ;;  %v2741_v60 = vpack.c.b16 %v2719_v32, %v2718_v1  ;;  %v5037_v1 = vld [vmem:[%s5825_s11 + $0x84] sm:$0xe] }
 0x1f6   : > { %v1824_v22 = vadd.f32 %v1790_v40, %v1509_v25  ;;  %v3530_v25 = vrot.slane %v3529_v38, 4 }
 0x1f8   : > { %v3136_v46 = vpop.f32.mrf.mxu2  ;;  %v2823_v27 = vpop.f32.mrf.mxu1  ;;  %v6973_v56 = vadd.f32 %v2472_v54, %v1824_v22  ;;  %v5372_v54 = vrot.slane %v5356_v42, 9  ;;  %v4062_v22 = vrot.slane %v6959_v45, 5 }
 0x1f9   : > { %v3216_v7 = vadd.f32 %v3136_v46, %v2901_v41  ;;  %v2902_v16 = vadd.f32 %v2823_v27, %v6440_v5  ;;  %v3546_v41 = vshll.u32 %v6970_v61, 16  ;;  %v3535_v5 = vsel %vm5840_vm2, %v3530_v25, %v3534_v19  ;;  %v6995_v27 = vld [vmem:[%s7318_s2] ss:$0 sm:$0xff] }
 0x1fa   : > { %3857 = vmatmul.bf16.gmra.mxu3 %v3737_v51  ;;  %v3539_v51 = vrot.slane %v3537_v20, 4  ;;  %v3542_v46 = vrot.slane %v3540_v3, 5  ;;  %v3715_v25 = vunpack.c.l.b16 %v3525_v28  ;;  %v3716_v19 = vunpack.c.l.b16 %v3535_v5 }
 0x1fb   : > { %v4244_v0 = vpop.f32.mrf.mxu0  ;;  %v6985_v24 = vrot.slane %v3546_v41, 5  ;;  %v4063_v42 = vsel %vm6140_vm5, %v4061_v9, %v4062_v22  ;;  %v3556_v41 = vshll.u32 %v6990_v18, 16 }
 0x1fc   : > { %v3543_v20 = vor.u32 %v3542_v46, %v3539_v51  ;;  %v3738_v9 = vpack.c.b16 %v3716_v19, %v3715_v25  ;;  %v4142_v22 = vunpack.c.l.b16 %v4063_v42  ;;  %v5357_v42 = vld [vmem:[%s5825_s11 + $0x90] sm:$0xe] }
 0x1fd   : > { %v3818_v40 = vpop.f32.mrf.mxu3  ;;  %v3553_v3 = vor.u32 %v3552_v36, %v6985_v24 }
 0x1fe   : > { %4283 = vmatmul.bf16.gmra.mxu0 %v4163_v13  ;;  %v3898_v35 = vadd.f32 %v3818_v40, %v3216_v7  ;;  %v5518_v13 = vld [vmem:[%s5825_s11 + $0x84] sm:$0xff]  ;;  %v2643_v7 = vrot.slane %v5659_v4, 5  ;;  %v3544_v46 = vrot.slane %v3543_v20, 4  ;;  %v5284_v4 = vld [vmem:[%s5825_s11 + $0x9c] sm:$0xf] }
 0x1ff   : > { %v3554_v36 = vrot.slane %v3553_v3, 4  ;;  %v3561_v3 = vshrl.u32 %v5284_v4, 16 }
 0x200   : > { %v4324_v38 = vadd.f32 %v4244_v0, %v3898_v35  ;;  %v3138_v59 = vpop.f32.mrf.mxu2  ;;  %v2826_v45 = vpop.f32.mrf.mxu1  ;;  %v4060_v0 = vsel %vm6140_vm5, %v5372_v54, %v4059_v31  ;;  %v5053_v35 = vrot.slane %v5037_v1, 9  ;;  %v2645_v28 = vrot.slane %v2643_v7, 4  ;;  %v5660_v31 = vld [vmem:[%s5825_s11 + $0x8c] sm:$0x1] }
 0x201   : > { %v3217_v63 = vadd.f32 %v3138_v59, %v2902_v16  ;;  %v2903_v16 = vadd.f32 %v2826_v45, %v6450_v48  ;;  %v4141_v40 = vunpack.c.l.b16 %v4060_v0  ;;  %v2646_v5 = vrot.slane %v5660_v31, 5  ;;  %v7010_v48 = vld [vmem:[%s7319_s3] ss:$0 sm:$0xff] }
 0x202   : > { %v4360_v54 = vmul.f32 %v6995_v27, %v4324_v38  ;;  %v2644_v0 = vsel %vm6140_vm5, %v5053_v35, %v2643_v7  ;;  %v4066_v1 = vrot.slane %v6970_v61, 5  ;;  %v3549_v31 = vsel %vm5840_vm2, %v3544_v46, %v6985_v24 }
 0x203   : > { %v4246_v32 = vpop.f32.mrf.mxu0  ;;  %2865 = vmatmul.bf16.gmra.mxu1 %v2741_v60  ;;  %v2647_v38 = vsel %vm6140_vm5, %v2645_v28, %v2646_v5  ;;  %v4164_v19 = vpack.c.b16 %v4142_v22, %v4141_v40  ;;  %v7024_v28 = vld [vmem:[%s5825_s11 + $0xa0] sm:$0xf]  ;;  %v5373_v5 = vrot.slane %v5357_v42, 9  ;;  %v4069_v22 = vrot.slane %v6990_v18, 5 }
 0x204   : > { %v2721_v35 = vunpack.c.l.b16 %v2647_v38  ;;  %v3574_v24 = vshrl.u32 %v7024_v28, 16 }
 0x205   : > { %v3820_v57 = vpop.f32.mrf.mxu3  ;;  %3180 = vmatmul.bf16.gmra.mxu2 %v5518_v13  ;;  %v3558_v13 = vrot.slane %v3556_v41, 5  ;;  %v3564_v41 = vshll.u32 %v5284_v4, 16  ;;  %v3570_v4 = vshll.u32 %v7024_v28, 16 }
 0x206   : > { %v3899_v60 = vadd.f32 %v3820_v57, %v3217_v63  ;;  %v4396_v63 = vadd.f32 %v7010_v48, %v4360_v54  ;;  %v2720_v57 = vunpack.c.l.b16 %v2644_v0  ;;  %v4068_v54 = vrot.slane %v4066_v1, 4 }
 0x207   : > { %v3559_v40 = vsel %vm5840_vm2, %v3554_v36, %v3558_v13 }
 0x208   : > { %v4325_v51 = vadd.f32 %v4246_v32, %v3899_v60  ;;  %v3141_v59 = vpop.f32.mrf.mxu2  ;;  %v2828_v32 = vpop.f32.mrf.mxu1  ;;  %v2742_v13 = vpack.c.b16 %v2721_v35, %v2720_v57  ;;  %v3718_v42 = vunpack.c.l.b16 %v3559_v40  ;;  %v3572_v35 = vrot.slane %v3570_v4, 5 }
 0x209   : > { %v3218_v45 = vadd.f32 %v3141_v59, %v2903_v16  ;;  %v2904_v16 = vadd.f32 %v2828_v32, %v6464_v47  ;;  %v4428_v47 = vmax.f32 %v4396_v63, 0.0  ;;  %v3566_v59 = vrot.slane %v3564_v41, 5  ;;  %v5661_v32 = vld [vmem:[%s5825_s11 + $0x94] sm:$0xf] }
 0x20a   : > { %v4361_v25 = vmul.f32 %v6995_v27, %v4325_v51  ;;  %3862 = vmatmul.bf16.gmra.mxu3 %v3738_v9  ;;  %v3563_v51 = vrot.slane %v3561_v3, 4  ;;  %v3717_v63 = vunpack.c.l.b16 %v3549_v31  ;;  %v4067_v3 = vsel %vm6140_vm5, %v5373_v5, %v4066_v1 }
 0x20b   : > { %v4249_v20 = vpop.f32.mrf.mxu0  ;;  %v4070_v41 = vsel %vm6140_vm5, %v4068_v54, %v4069_v22 }
 0x20c   : > { %v4397_v7 = vadd.f32 %v7010_v48, %v4361_v25  ;;  %v5519_v25 = vld [vmem:[%s5825_s11 + $0x90] sm:$0xff]  ;;  %v3567_v57 = vor.u32 %v3566_v59, %v3563_v51 }
 0x20d   : > { %v3823_v61 = vpop.f32.mrf.mxu3 }
 0x20e   : > { %v4429_v60 = vmax.f32 %v4397_v7, 0.0  ;;  %4288 = vmatmul.bf16.gmra.mxu0 %v4164_v19  ;;  %v3900_v9 = vadd.f32 %v3823_v61, %v3218_v45  ;;  %v2650_v19 = vrot.slane %v5661_v32, 5  ;;  %v3576_v61 = vrot.slane %v3574_v24, 4 }
 0x20f   : > { %v3568_v51 = vrot.slane %v3567_v57, 4  ;;  %v7058_v57 = vld [vmem:[%s5825_s11 + $0xac] sm:$0xf] }
 0x210   : > { %v4460_v46 = vadd.f32 %v4429_v60, %v4428_v47  ;;  %v4326_v0 = vadd.f32 %v4249_v20, %v3900_v9  ;;  %v3143_v36 = vpop.f32.mrf.mxu2  ;;  %v2831_v18 = vpop.f32.mrf.mxu1  ;;  %v5038_v20 = vld [vmem:[%s5825_s11 + $0x90] sm:$0xe]  ;;  %v7045_v47 = vld [vmem:[%s5825_s11 + $0xa4] sm:$0x1]  ;;  %v4143_v60 = vunpack.c.l.b16 %v4067_v3  ;;  %v2652_v5 = vrot.slane %v2650_v19, 4 }
 0x211   : > { %v3219_v38 = vadd.f32 %v3143_v36, %v2904_v16  ;;  %v2905_v16 = vadd.f32 %v2831_v18, %v6484_v52  ;;  %v5054_v1 = vrot.slane %v5038_v20, 9  ;;  %v5662_v9 = vld [vmem:[%s5825_s11 + $0x98] sm:$0x1]  ;;  %v3739_v36 = vpack.c.b16 %v3718_v42, %v3717_v63  ;;  %v5287_v3 = vld [vmem:[%s5825_s11 + $0xa8] sm:$0xf] }
 0x212   : > { %v4362_v45 = vmul.f32 %v6995_v27, %v4326_v0  ;;  %v2653_v54 = vrot.slane %v5662_v9, 5  ;;  %v4144_v52 = vunpack.c.l.b16 %v4070_v41  ;;  %v3577_v59 = vor.u32 %v3576_v61, %v3572_v35  ;;  %v5358_v41 = vld [vmem:[%s5825_s11 + $0x9c] sm:$0xe] }
 0x213   : > { %v4251_v7 = vpop.f32.mrf.mxu0  ;;  %2870 = vmatmul.bf16.gmra.mxu1 %v2742_v13  ;;  %v3580_v4 = vshll.u32 %v7045_v47, 16  ;;  %v4073_v20 = vrot.slane %v7024_v28, 5  ;;  %v5374_v9 = vrot.slane %v5358_v41, 9  ;;  %v3594_v28 = vshll.u32 %v7058_v57, 16 }
 0x214   : > { %v4398_v31 = vadd.f32 %v7010_v48, %v4362_v45  ;;  %v2651_v45 = vsel %vm6140_vm5, %v5054_v1, %v2650_v19  ;;  %v2654_v18 = vsel %vm6140_vm5, %v2652_v5, %v2653_v54  ;;  %v4165_v63 = vpack.c.b16 %v4144_v52, %v4143_v60 }
 0x215   : > { %v3825_v40 = vpop.f32.mrf.mxu3  ;;  %3185 = vmatmul.bf16.gmra.mxu2 %v5519_v25  ;;  %v3573_v19 = vsel %vm5840_vm2, %v3568_v51, %v3572_v35  ;;  %v3582_v61 = vrot.slane %v3580_v4, 5  ;;  %v2723_v1 = vunpack.c.l.b16 %v2654_v18  ;;  %v3585_v60 = vshrl.u32 %v5287_v3, 16 }
 0x216   : > { %v4430_v22 = vmax.f32 %v4398_v31, 0.0  ;;  %v3901_v0 = vadd.f32 %v3825_v40, %v3219_v38  ;;  %v2722_v40 = vunpack.c.l.b16 %v2651_v45  ;;  %v3588_v54 = vshll.u32 %v5287_v3, 16  ;;  %v5039_v3 = vld [vmem:[%s5825_s11 + $0x9c] sm:$0xe] }
 0x217   : > { %v3719_v51 = vunpack.c.l.b16 %v3573_v19  ;;  %v7072_v41 = vrot.slane %v3594_v28, 5 }
 0x218   : > { %v4461_v24 = vadd.f32 %v4460_v46, %v4430_v22  ;;  %v4327_v13 = vadd.f32 %v4251_v7, %v3901_v0  ;;  %v3146_v32 = vpop.f32.mrf.mxu2  ;;  %v2833_v42 = vpop.f32.mrf.mxu1  ;;  %v3598_v22 = vshrl.u32 %v7058_v57, 16  ;;  %v4075_v0 = vrot.slane %v4073_v20, 4 }
 0x219   : > { %v3220_v25 = vadd.f32 %v3146_v32, %v2905_v16  ;;  %v2906_v7 = vadd.f32 %v2833_v42, %v6504_v34  ;;  %v3578_v16 = vrot.slane %v3577_v59, 4  ;;  %v5663_v59 = vld [vmem:[%s5825_s11 + $0xa0] sm:$0xf]  ;;  %v2743_v18 = vpack.c.b16 %v2723_v1, %v2722_v40 }
 0x21a   : > { %v4363_v38 = vmul.f32 %v6995_v27, %v4327_v13  ;;  %3867 = vmatmul.bf16.gmra.mxu3 %v3739_v36  ;;  %v4076_v36 = vrot.slane %v7045_v47, 5  ;;  %v2657_v4 = vrot.slane %v5663_v59, 5  ;;  %v3600_v47 = vrot.slane %v3598_v22, 4 }
 0x21b   : > { %v4254_v46 = vpop.f32.mrf.mxu0  ;;  %v3583_v52 = vsel %vm5840_vm2, %v3578_v16, %v3582_v61 }
 0x21c   : > { %v4399_v31 = vadd.f32 %v7010_v48, %v4363_v38  ;;  %v3587_v38 = vrot.slane %v3585_v60, 4  ;;  %v3720_v19 = vunpack.c.l.b16 %v3583_v52  ;;  %v2659_v1 = vrot.slane %v2657_v4, 4  ;;  %v5664_v60 = vld [vmem:[%s5825_s11 + $0xa4] sm:$0x1] }
 0x21d   : > { %v3828_v5 = vpop.f32.mrf.mxu3 }
 0x21e   : > { %v4431_v34 = vmax.f32 %v4399_v31, 0.0  ;;  %4293 = vmatmul.bf16.gmra.mxu0 %v4165_v63  ;;  %v3902_v35 = vadd.f32 %v3828_v5, %v3220_v25  ;;  %v5520_v63 = vld [vmem:[%s5825_s11 + $0x9c] sm:$0xff]  ;;  %v3590_v25 = vrot.slane %v3588_v54, 5  ;;  %v2660_v5 = vrot.slane %v5664_v60, 5  ;;  %v7082_v54 = vld [vmem:[%s5825_s11 + $0xb0] sm:$0x1] }
 0x21f   : > { %v3604_v52 = vshll.u32 %v7082_v54, 16 }
 0x220   : > { %v4462_v13 = vadd.f32 %v4461_v24, %v4431_v34  ;;  %v4328_v32 = vadd.f32 %v4254_v46, %v3902_v35  ;;  %v3148_v45 = vpop.f32.mrf.mxu2  ;;  %v2836_v16 = vpop.f32.mrf.mxu1  ;;  %v4074_v24 = vsel %vm6140_vm5, %v5374_v9, %v4073_v20  ;;  %v4077_v46 = vsel %vm6140_vm5, %v4075_v0, %v4076_v36 }
 0x221   : > { %v3221_v42 = vadd.f32 %v3148_v45, %v2906_v7  ;;  %v2907_v40 = vadd.f32 %v2836_v16, %v6514_v10  ;;  %v5055_v7 = vrot.slane %v5039_v3, 9  ;;  %v4145_v34 = vunpack.c.l.b16 %v4074_v24  ;;  %v7093_v16 = vld [vmem:[%s5825_s11 + $0xb8] sm:$0xf] }
 0x222   : > { %v4364_v31 = vmul.f32 %v6995_v27, %v4328_v32  ;;  %v4146_v20 = vunpack.c.l.b16 %v4077_v46  ;;  %v3591_v9 = vor.u32 %v3590_v25, %v3587_v38  ;;  %v3601_v35 = vor.u32 %v3600_v47, %v7072_v41  ;;  %v5359_v46 = vld [vmem:[%s5825_s11 + $0xa8] sm:$0xe] }
 0x223   : > { %v4256_v61 = vpop.f32.mrf.mxu0  ;;  %2875 = vmatmul.bf16.gmra.mxu1 %v2743_v18  ;;  %v3740_v36 = vpack.c.b16 %v3720_v19, %v3719_v51  ;;  %v2658_v59 = vsel %vm6140_vm5, %v5055_v7, %v2657_v4  ;;  %v2661_v32 = vsel %vm6140_vm5, %v2659_v1, %v2660_v5  ;;  %v3606_v24 = vrot.slane %v3604_v52, 5 }
 0x224   : > { %v4400_v28 = vadd.f32 %v7010_v48, %v4364_v31  ;;  %v4166_v38 = vpack.c.b16 %v4146_v20, %v4145_v34  ;;  %v3592_v31 = vrot.slane %v3591_v9, 4  ;;  %v3602_v47 = vrot.slane %v3601_v35, 4 }
 0x225   : > { %v3830_v22 = vpop.f32.mrf.mxu3  ;;  %3190 = vmatmul.bf16.gmra.mxu2 %v5520_v63  ;;  %v5290_v63 = vld [vmem:[%s5825_s11 + $0xb4] sm:$0xf]  ;;  %v2724_v19 = vunpack.c.l.b16 %v2658_v59  ;;  %v2725_v4 = vunpack.c.l.b16 %v2661_v32  ;;  %v3618_v5 = vshll.u32 %v7093_v16, 16  ;;  %v5375_v20 = vrot.slane %v5359_v46, 9 }
 0x226   : > { %v4432_v0 = vmax.f32 %v4400_v28, 0.0  ;;  %v3903_v10 = vadd.f32 %v3830_v22, %v3221_v42  ;;  %v3609_v1 = vshrl.u32 %v5290_v63, 16  ;;  %v3612_v60 = vshll.u32 %v5290_v63, 16 }
 0x227   : > { %v3622_v28 = vshrl.u32 %v7093_v16, 16  ;;  %v3597_v34 = vsel %vm5840_vm2, %v3592_v31, %v7072_v41  ;;  %v3607_v35 = vsel %vm5840_vm2, %v3602_v47, %v3606_v24  ;;  %v7113_v47 = vld [vmem:[%s5825_s11 + $0xbc] sm:$0x1] }
 0x228   : > { %v4463_v45 = vadd.f32 %v4462_v13, %v4432_v0  ;;  %v4329_v18 = vadd.f32 %v4256_v61, %v3903_v10  ;;  %v3151_v3 = vpop.f32.mrf.mxu2  ;;  %v2838_v42 = vpop.f32.mrf.mxu1  ;;  %v4080_v61 = vrot.slane %v7058_v57, 5  ;;  %v2744_v57 = vpack.c.b16 %v2725_v4, %v2724_v19  ;;  %v5040_v4 = vld [vmem:[%s5825_s11 + $0xa8] sm:$0xe] }
 0x229   : > { %v3222_v25 = vadd.f32 %v3151_v3, %v2907_v40  ;;  %v2908_v13 = vadd.f32 %v2838_v42, %v6524_v11  ;;  %v4083_v10 = vrot.slane %v7082_v54, 5  ;;  %v3614_v52 = vrot.slane %v3612_v60, 5 }
 0x22a   : > { %v4365_v51 = vmul.f32 %v6995_v27, %v4329_v18  ;;  %3872 = vmatmul.bf16.gmra.mxu3 %v3740_v36  ;;  %v4082_v0 = vrot.slane %v4080_v61, 4  ;;  %v3611_v36 = vrot.slane %v3609_v1, 4  ;;  %v7108_v18 = vrot.slane %v3618_v5, 5 }
 0x22b   : > { %v4259_v7 = vpop.f32.mrf.mxu0  ;;  %v3624_v3 = vrot.slane %v3622_v28, 4  ;;  %v3722_v31 = vunpack.c.l.b16 %v3607_v35  ;;  %v4081_v46 = vsel %vm6140_vm5, %v5375_v20, %v4080_v61 }
 0x22c   : > { %v4401_v40 = vadd.f32 %v7010_v48, %v4365_v51  ;;  %v5665_v51 = vld [vmem:[%s5825_s11 + $0xac] sm:$0xf] }
 0x22d   : > { %v3833_v22 = vpop.f32.mrf.mxu3  ;;  %v2664_v42 = vrot.slane %v5665_v51, 5  ;;  %v3625_v60 = vor.u32 %v3624_v3, %v7108_v18  ;;  %v7128_v3 = vld [vmem:[%s5825_s11 + $0xc4] sm:$0xf] }
 0x22e   : > { %v4433_v9 = vmax.f32 %v4401_v40, 0.0  ;;  %4298 = vmatmul.bf16.gmra.mxu0 %v4166_v38  ;;  %v3904_v11 = vadd.f32 %v3833_v22, %v3222_v25  ;;  %v5521_v38 = vld [vmem:[%s5825_s11 + $0xa8] sm:$0xff]  ;;  %v3721_v25 = vunpack.c.l.b16 %v3597_v34  ;;  %v3628_v40 = vshll.u32 %v7113_v47, 16  ;;  %v5666_v34 = vld [vmem:[%s5825_s11 + $0xb0] sm:$0x1] }
 0x22f   : > { %v2666_v22 = vrot.slane %v2664_v42, 4  ;;  %v2667_v61 = vrot.slane %v5666_v34, 5 }
 0x230   : > { %v4464_v59 = vadd.f32 %v4463_v45, %v4433_v9  ;;  %v4330_v32 = vadd.f32 %v4259_v7, %v3904_v11  ;;  %v3153_v41 = vpop.f32.mrf.mxu2  ;;  %v2841_v54 = vpop.f32.mrf.mxu1  ;;  %v4084_v7 = vsel %vm6140_vm5, %v4082_v0, %v4083_v10  ;;  %v3741_v28 = vpack.c.b16 %v3722_v31, %v3721_v25  ;;  %v5293_v10 = vld [vmem:[%s5825_s11 + $0xc0] sm:$0xf] }
 0x231   : > { %v3223_v63 = vadd.f32 %v3153_v41, %v2908_v13  ;;  %v2909_v45 = vadd.f32 %v2841_v54, %v6544_v23  ;;  %v3615_v13 = vor.u32 %v3614_v52, %v3611_v36  ;;  %v5056_v23 = vrot.slane %v5040_v4, 9  ;;  %v5360_v54 = vld [vmem:[%s5825_s11 + $0xb4] sm:$0xe] }
 0x232   : > { %v4366_v19 = vmul.f32 %v6995_v27, %v4330_v32  ;;  %v4147_v11 = vunpack.c.l.b16 %v4081_v46  ;;  %v4148_v35 = vunpack.c.l.b16 %v4084_v7  ;;  %v3626_v32 = vrot.slane %v3625_v60, 4 }
 0x233   : > { %v4261_v24 = vpop.f32.mrf.mxu0  ;;  %2880 = vmatmul.bf16.gmra.mxu1 %v2744_v57  ;;  %v3616_v0 = vrot.slane %v3615_v13, 4  ;;  %v3630_v41 = vrot.slane %v3628_v40, 5  ;;  %v2665_v25 = vsel %vm6140_vm5, %v5056_v23, %v2664_v42  ;;  %v2668_v31 = vsel %vm6140_vm5, %v2666_v22, %v2667_v61 }
 0x234   : > { %v4402_v1 = vadd.f32 %v7010_v48, %v4366_v19  ;;  %v4167_v19 = vpack.c.b16 %v4148_v35, %v4147_v11  ;;  %v3633_v4 = vshrl.u32 %v5293_v10, 16  ;;  %v3646_v42 = vshrl.u32 %v7128_v3, 16 }
 0x235   : > { %v3835_v5 = vpop.f32.mrf.mxu3  ;;  %3195 = vmatmul.bf16.gmra.mxu2 %v5521_v38  ;;  %v2727_v60 = vunpack.c.l.b16 %v2668_v31  ;;  %v4090_v23 = vrot.slane %v7113_v47, 5  ;;  %v5522_v47 = vld [vmem:[%s5825_s11 + $0xb4] sm:$0xff] }
 0x236   : > { %v4434_v20 = vmax.f32 %v4402_v1, 0.0  ;;  %v3905_v9 = vadd.f32 %v3835_v5, %v3223_v63  ;;  %v4087_v63 = vrot.slane %v7093_v16, 5  ;;  %v2726_v1 = vunpack.c.l.b16 %v2665_v25 }
 0x237   : > { %v3621_v16 = vsel %vm5840_vm2, %v3616_v0, %v7108_v18  ;;  %v3631_v5 = vsel %vm5840_vm2, %v3626_v32, %v3630_v41  ;;  %v3635_v61 = vrot.slane %v3633_v4, 4  ;;  %v3648_v18 = vrot.slane %v3646_v42, 4  ;;  %v7152_v41 = vld [vmem:[%s5825_s11 + $0xc8] sm:$0x1] }
 0x238   : > { %v4465_v57 = vadd.f32 %v4464_v59, %v4434_v20  ;;  %v4331_v36 = vadd.f32 %v4261_v24, %v3905_v9  ;;  %v3156_v52 = vpop.f32.mrf.mxu2  ;;  %v2843_v59 = vpop.f32.mrf.mxu1  ;;  %v3636_v24 = vshll.u32 %v5293_v10, 16  ;;  %v2745_v10 = vpack.c.b16 %v2727_v60, %v2726_v1  ;;  %v5668_v60 = vld [vmem:[%s5825_s11 + $0xbc] sm:$0x1] }
 0x239   : > { %v3224_v38 = vadd.f32 %v3156_v52, %v2909_v45  ;;  %v2910_v7 = vadd.f32 %v2843_v59, %v6564_v8  ;;  %v3642_v45 = vshll.u32 %v7128_v3, 16  ;;  %v4089_v8 = vrot.slane %v4087_v63, 4  ;;  %v5667_v52 = vld [vmem:[%s5825_s11 + $0xb8] sm:$0xf] }
 0x23a   : > { %v4367_v51 = vmul.f32 %v6995_v27, %v4331_v36  ;;  %3877 = vmatmul.bf16.gmra.mxu3 %v3741_v28  ;;  %v5376_v28 = vrot.slane %v5360_v54, 9  ;;  %v3638_v20 = vrot.slane %v3636_v24, 5  ;;  %v5041_v36 = vld [vmem:[%s5825_s11 + $0xb4] sm:$0xe]  ;;  %v2671_v32 = vrot.slane %v5667_v52, 5  ;;  %v7329_v24 = vld [vmem:[#allocation5_spill] sm:$0xff] }
 0x23b   : > { %v4264_v46 = vpop.f32.mrf.mxu0  ;;  %v7147_v9 = vrot.slane %v3642_v45, 5  ;;  %v3723_v31 = vunpack.c.l.b16 %v3621_v16  ;;  %v5057_v45 = vrot.slane %v5041_v36, 9  ;;  %v3652_v42 = vshll.u32 %v7152_v41, 16  ;;  %v5361_v36 = vld [vmem:[%s5825_s11 + $0xc0] sm:$0xe] }
 0x23c   : > { %v4403_v13 = vadd.f32 %v7010_v48, %v4367_v51  ;;  %v3724_v51 = vunpack.c.l.b16 %v3631_v5  ;;  %v4088_v59 = vsel %vm6140_vm5, %v5376_v28, %v4087_v63  ;;  %v3639_v54 = vor.u32 %v3638_v20, %v3635_v61 }
 0x23d   : > { %v3838_v40 = vpop.f32.mrf.mxu3  ;;  %v2673_v1 = vrot.slane %v2671_v32, 4  ;;  %v2674_v16 = vrot.slane %v5668_v60, 5  ;;  %v4149_v5 = vunpack.c.l.b16 %v4088_v59  ;;  %v3654_v20 = vrot.slane %v3652_v42, 5 }
 0x23e   : > { %v4435_v22 = vmax.f32 %v4403_v13, 0.0  ;;  %4303 = vmatmul.bf16.gmra.mxu0 %v4167_v19  ;;  %v3906_v34 = vadd.f32 %v3838_v40, %v3224_v38  ;;  %v3742_v40 = vpack.c.b16 %v3724_v51, %v3723_v31  ;;  %v4094_v52 = vrot.slane %v7128_v3, 5 }
 0x240   : > { %v4466_v11 = vadd.f32 %v4465_v57, %v4435_v22  ;;  %v4332_v35 = vadd.f32 %v4264_v46, %v3906_v34  ;;  %v3158_v0 = vpop.f32.mrf.mxu2  ;;  %v2846_v19 = vpop.f32.mrf.mxu1  ;;  %v4091_v57 = vsel %vm6140_vm5, %v4089_v8, %v4090_v23  ;;  %v3640_v22 = vrot.slane %v3639_v54, 4 }
 0x241   : > { %v3225_v25 = vadd.f32 %v3158_v0, %v2910_v7  ;;  %v2911_v46 = vadd.f32 %v2846_v19, %v7329_v24  ;;  %v3649_v7 = vor.u32 %v3648_v18, %v7147_v9  ;;  %v4150_v23 = vunpack.c.l.b16 %v4091_v57  ;;  %v7330_v19 = vld [vmem:[#allocation6_spill] sm:$0xff] }
 0x242   : > { %v4368_v38 = vmul.f32 %v6995_v27, %v4332_v35  ;;  %v2672_v34 = vsel %vm6140_vm5, %v5057_v45, %v2671_v32  ;;  %v3645_v32 = vsel %vm5840_vm2, %v3640_v22, %v7147_v9  ;;  %v7178_v24 = vld [vmem:[%s5825_s11 + $0xd0] sm:$0xf]  ;;  %v4096_v45 = vrot.slane %v4094_v52, 4 }
 0x243   : > { %v4266_v4 = vpop.f32.mrf.mxu0  ;;  %2885 = vmatmul.bf16.gmra.mxu1 %v2745_v10  ;;  %v3650_v61 = vrot.slane %v3649_v7, 4  ;;  %v2675_v10 = vsel %vm6140_vm5, %v2673_v1, %v2674_v16  ;;  %v4168_v31 = vpack.c.b16 %v4150_v23, %v4149_v5  ;;  %v2728_v57 = vunpack.c.l.b16 %v2672_v34 }
 0x244   : > { %v4404_v13 = vadd.f32 %v7010_v48, %v4368_v38  ;;  %v2729_v54 = vunpack.c.l.b16 %v2675_v10  ;;  %v4097_v7 = vrot.slane %v7152_v41, 5  ;;  %v3666_v16 = vshll.u32 %v7178_v24, 16 }
 0x245   : > { %v3840_v63 = vpop.f32.mrf.mxu3  ;;  %3200 = vmatmul.bf16.gmra.mxu2 %v5522_v47  ;;  %v3725_v5 = vunpack.c.l.b16 %v3645_v32 }
 0x246   : > { %v4436_v28 = vmax.f32 %v4404_v13, 0.0  ;;  %v3907_v8 = vadd.f32 %v3840_v63, %v3225_v25  ;;  %v3670_v63 = vshrl.u32 %v7178_v24, 16  ;;  %v4098_v34 = vsel %vm6140_vm5, %v4096_v45, %v4097_v7 }
 0x248   : > { %v4467_v18 = vadd.f32 %v4466_v11, %v4436_v28  ;;  %v4333_v35 = vadd.f32 %v4266_v4, %v3907_v8  ;;  %v3161_v0 = vpop.f32.mrf.mxu2  ;;  %v2848_v51 = vpop.f32.mrf.mxu1  ;;  %v5296_v11 = vld [vmem:[%s5825_s11 + $0xcc] sm:$0xf]  ;;  %v5377_v4 = vrot.slane %v5361_v36, 9 }
 0x249   : > { %v3226_v47 = vadd.f32 %v3161_v0, %v2911_v46  ;;  %v2912_v59 = vadd.f32 %v2848_v51, %v7330_v19  ;;  %v3655_v46 = vsel %vm5840_vm2, %v3650_v61, %v3654_v20  ;;  %v3657_v13 = vshrl.u32 %v5296_v11, 16  ;;  %v5523_v20 = vld [vmem:[%s5825_s11 + $0xc0] sm:$0xff] }
 0x24a   : > { %v4369_v25 = vmul.f32 %v6995_v27, %v4333_v35  ;;  %3882 = vmatmul.bf16.gmra.mxu3 %v3742_v40  ;;  %v3660_v9 = vshll.u32 %v5296_v11, 16  ;;  %v2746_v40 = vpack.c.b16 %v2729_v54, %v2728_v57  ;;  %v3726_v28 = vunpack.c.l.b16 %v3655_v46  ;;  %v5669_v35 = vld [vmem:[%s5825_s11 + $0xc4] sm:$0xf]  ;;  %v5670_v46 = vld [vmem:[%s5825_s11 + $0xc8] sm:$0x1] }
 0x24b   : > { %v4269_v38 = vpop.f32.mrf.mxu0  ;;  %v4095_v41 = vsel %vm6140_vm5, %v5377_v4, %v4094_v52  ;;  %v2678_v0 = vrot.slane %v5669_v35, 5  ;;  %v3659_v10 = vrot.slane %v3657_v13, 4  ;;  %v3672_v51 = vrot.slane %v3670_v63, 4  ;;  %v5298_v52 = vld [vmem:[%s5825_s11 + $0xd4] sm:$0x1] }
 0x24c   : > { %v4405_v3 = vadd.f32 %v7010_v48, %v4369_v25  ;;  %v3662_v36 = vrot.slane %v3660_v9, 5  ;;  %v3743_v19 = vpack.c.b16 %v3726_v28, %v3725_v5  ;;  %v4152_v57 = vunpack.c.l.b16 %v4098_v34 }
 0x24d   : > { %v3843_v42 = vpop.f32.mrf.mxu3  ;;  %v2681_v45 = vrot.slane %v5670_v46, 5  ;;  %v4101_v35 = vrot.slane %v7178_v24, 5 }
 0x24e   : > { %v4437_v1 = vmax.f32 %v4405_v3, 0.0  ;;  %4308 = vmatmul.bf16.gmra.mxu0 %v4168_v31  ;;  %v3908_v60 = vadd.f32 %v3843_v42, %v3226_v47  ;;  %v3668_v31 = vrot.slane %v3666_v16, 5  ;;  %v2680_v3 = vrot.slane %v2678_v0, 4 }
 0x24f   : > { %v3663_v7 = vor.u32 %v3662_v36, %v3659_v10 }
 0x250   : > { %v4468_v8 = vadd.f32 %v4467_v18, %v4437_v1  ;;  %v4334_v23 = vadd.f32 %v4269_v38, %v3908_v60  ;;  %v3163_v22 = vpop.f32.mrf.mxu2  ;;  %v2851_v25 = vpop.f32.mrf.mxu1  ;;  %v5042_v18 = vld [vmem:[%s5825_s11 + $0xc0] sm:$0xe]  ;;  %v3673_v9 = vor.u32 %v3672_v51, %v3668_v31  ;;  %v3676_v1 = vshll.u32 %v5298_v52, 16 }
 0x251   : > { %v3227_v61 = vadd.f32 %v3163_v22, %v2912_v59  ;;  %v2913_v11 = vadd.f32 %v2851_v25, %v6608_v26  ;;  %v4151_v59 = vunpack.c.l.b16 %v4095_v41  ;;  %v5058_v4 = vrot.slane %v5042_v18, 9 }
 0x252   : > { %v4370_v47 = vmul.f32 %v6995_v27, %v4334_v23  ;;  %v2682_v28 = vsel %vm6140_vm5, %v2680_v3, %v2681_v45  ;;  %v3664_v41 = vrot.slane %v3663_v7, 4  ;;  %v3674_v34 = vrot.slane %v3673_v9, 4  ;;  %v5524_v3 = vld [vmem:[%s5825_s11 + $0xcc] sm:$0xff] }
 0x253   : > { %v4271_v32 = vpop.f32.mrf.mxu0  ;;  %2890 = vmatmul.bf16.gmra.mxu1 %v2746_v40  ;;  %v4169_v63 = vpack.c.b16 %v4152_v57, %v4151_v59  ;;  %v2679_v5 = vsel %vm6140_vm5, %v5058_v4, %v2678_v0  ;;  %v5362_v0 = vld [vmem:[%s5825_s11 + $0xcc] sm:$0xe] }
 0x254   : > { %v4406_v38 = vadd.f32 %v7010_v48, %v4370_v47  ;;  %v2730_v36 = vunpack.c.l.b16 %v2679_v5  ;;  %v2731_v47 = vunpack.c.l.b16 %v2682_v28 }
 0x255   : > { %v3845_v54 = vpop.f32.mrf.mxu3  ;;  %3205 = vmatmul.bf16.gmra.mxu2 %v5523_v20 }
 0x256   : > { %v4438_v42 = vmax.f32 %v4406_v38, 0.0  ;;  %v3909_v13 = vadd.f32 %v3845_v54, %v3227_v61  ;;  %v3678_v61 = vrot.slane %v3676_v1, 5  ;;  %v5378_v38 = vrot.slane %v5362_v0, 9 }
 0x257   : > { %v2747_v54 = vpack.c.b16 %v2731_v47, %v2730_v36 }
 0x258   : > { %v4469_v60 = vadd.f32 %v4468_v8, %v4438_v42  ;;  %v4335_v26 = vadd.f32 %v4271_v32, %v3909_v13  ;;  %v3166_v16 = vpop.f32.mrf.mxu2  ;;  %v2853_v22 = vpop.f32.mrf.mxu1  ;;  %v3669_v32 = vsel %vm5840_vm2, %v3664_v41, %v3668_v31  ;;  %v4102_v30 = vsel %vm6140_vm5, %v5378_v38, %v4101_v35 }
 0x259   : > { %v3228_v40 = vadd.f32 %v3166_v16, %v2913_v11  ;;  %v2914_v8 = vadd.f32 %v2853_v22, %v6621_v37  ;;  %v3679_v11 = vsel %vm5840_vm2, %v3674_v34, %v3678_v61  ;;  %v4103_v37 = vrot.slane %v4101_v35, 4 }
 0x25a   : > { %v4371_v23 = vmul.f32 %v6995_v27, %v4335_v26  ;;  %3887 = vmatmul.bf16.gmra.mxu3 %v3743_v19  ;;  %v4104_v19 = vrot.slane %v5298_v52, 5  ;;  %v3727_v46 = vunpack.c.l.b16 %v3669_v32  ;;  %v3728_v45 = vunpack.c.l.b16 %v3679_v11 }
 0x25b   : > { %v4274_v20 = vpop.f32.mrf.mxu0 }
 0x25c   : > { %v4407_v10 = vadd.f32 %v7010_v48, %v4371_v23  ;;  %v4105_v52 = vsel %vm6140_vm5, %v4103_v37, %v4104_v19 }
 0x25d   : > { %v3848_v25 = vpop.f32.mrf.mxu3 }
 0x25e   : > { %v4439_v18 = vmax.f32 %v4407_v10, 0.0  ;;  %4313 = vmatmul.bf16.gmra.mxu0 %v4169_v63  ;;  %v3910_v51 = vadd.f32 %v3848_v25, %v3228_v40  ;;  %v4153_v63 = vunpack.c.l.b16 %v4102_v30  ;;  %v4154_v40 = vunpack.c.l.b16 %v4105_v52 }
 0x260   : > { %v4470_v24 = vadd.f32 %v4469_v60, %v4439_v18  ;;  %v4336_v59 = vadd.f32 %v4274_v20, %v3910_v51  ;;  %v3168_v57 = vpop.f32.mrf.mxu2  ;;  %v2856_v42 = vpop.f32.mrf.mxu1  ;;  %v3744_v60 = vpack.c.b16 %v3728_v45, %v3727_v46  ;;  %v4170_v41 = vpack.c.b16 %v4154_v40, %v4153_v63 }
 0x261   : > { %v3229_v4 = vadd.f32 %v3168_v57, %v2914_v8  ;;  %v2915_v31 = vadd.f32 %v2856_v42, %v6634_v55 }
 0x262   : > { %v4372_v7 = vmul.f32 %v6995_v27, %v4336_v59 }
 0x263   : > { %v4276_v13 = vpop.f32.mrf.mxu0  ;;  %2895 = vmatmul.bf16.gmra.mxu1 %v2747_v54 }
 0x264   : > { %v4408_v9 = vadd.f32 %v7010_v48, %v4372_v7 }
 0x265   : > { %v3850_v1 = vpop.f32.mrf.mxu3  ;;  %3210 = vmatmul.bf16.gmra.mxu2 %v5524_v3 }
 0x266   : > { %v4440_v26 = vmax.f32 %v4408_v9, 0.0  ;;  %v3911_v16 = vadd.f32 %v3850_v1, %v3229_v4 }
 0x268   : > { %v4471_v5 = vadd.f32 %v4470_v24, %v4440_v26  ;;  %v4337_v28 = vadd.f32 %v4276_v13, %v3911_v16  ;;  %v3171_v23 = vpop.f32.mrf.mxu2  ;;  %v2858_v43 = vpop.f32.mrf.mxu1 }
 0x269   : > { %v3230_v55 = vadd.f32 %v3171_v23, %v2915_v31  ;;  %v2916_v61 = vadd.f32 %v2858_v43, %v6661_v29 }
 0x26a   : > { %v4373_v22 = vmul.f32 %v6995_v27, %v4337_v28  ;;  %3892 = vmatmul.bf16.gmra.mxu3 %v3744_v60 }
 0x26b   : > { %v4279_v34 = vpop.f32.mrf.mxu0 }
 0x26c   : > { %v4409_v20 = vadd.f32 %v7010_v48, %v4373_v22 }
 0x26d   : > { %v3853_v8 = vpop.f32.mrf.mxu3 }
 0x26e   : > { %v4441_v35 = vmax.f32 %v4409_v20, 0.0  ;;  %4318 = vmatmul.bf16.gmra.mxu0 %v4170_v41  ;;  %v3912_v10 = vadd.f32 %v3853_v8, %v3230_v55 }
 0x270   : > { %v4472_v36 = vadd.f32 %v4471_v5, %v4441_v35  ;;  %v4338_v47 = vadd.f32 %v4279_v34, %v3912_v10  ;;  %v3173_v0 = vpop.f32.mrf.mxu2  ;;  %v2861_v51 = vpop.f32.mrf.mxu1 }
 0x271   : > { %v3231_v25 = vadd.f32 %v3173_v0, %v2916_v61  ;;  %v2917_v11 = vadd.f32 %v2861_v51, %v6675_v33 }
 0x272   : > { %v4374_v18 = vmul.f32 %v6995_v27, %v4338_v47 }
 0x273   : > { %v4281_v32 = vpop.f32.mrf.mxu0 }
 0x274   : > { %v4410_v38 = vadd.f32 %v7010_v48, %v4374_v18 }
 0x275   : > { %v3855_v37 = vpop.f32.mrf.mxu3 }
 0x276   : > { %v4442_v29 = vmax.f32 %v4410_v38, 0.0  ;;  %v3913_v19 = vadd.f32 %v3855_v37, %v3231_v25 }
 0x278   : > { %v4473_v24 = vadd.f32 %v4472_v36, %v4442_v29  ;;  %v4339_v59 = vadd.f32 %v4281_v32, %v3913_v19  ;;  %v3176_v57 = vpop.f32.mrf.mxu2  ;;  %v2863_v3 = vpop.f32.mrf.mxu1 }
 0x279   : > { %v3232_v54 = vadd.f32 %v3176_v57, %v2917_v11  ;;  %v2918_v45 = vadd.f32 %v2863_v3, %v6698_v2 }
 0x27a   : > { %v4375_v4 = vmul.f32 %v6995_v27, %v4339_v59 }
 0x27b   : > { %v4284_v46 = vpop.f32.mrf.mxu0 }
 0x27c   : > { %v4411_v7 = vadd.f32 %v7010_v48, %v4375_v4 }
 0x27d   : > { %v3858_v42 = vpop.f32.mrf.mxu3 }
 0x27e   : > { %v4443_v13 = vmax.f32 %v4411_v7, 0.0  ;;  %v3914_v33 = vadd.f32 %v3858_v42, %v3232_v54 }
 0x280   : > { %v4474_v31 = vadd.f32 %v4473_v24, %v4443_v13  ;;  %v4340_v30 = vadd.f32 %v4284_v46, %v3914_v33  ;;  %v3178_v52 = vpop.f32.mrf.mxu2  ;;  %v2866_v60 = vpop.f32.mrf.mxu1 }
 0x281   : > { %v3233_v9 = vadd.f32 %v3178_v52, %v2918_v45  ;;  %v2919_v16 = vadd.f32 %v2866_v60, %v6713_v53 }
 0x282   : > { %v4376_v1 = vmul.f32 %v6995_v27, %v4340_v30 }
 0x283   : > { %v4286_v26 = vpop.f32.mrf.mxu0 }
 0x284   : > { %v4412_v63 = vadd.f32 %v7010_v48, %v4376_v1 }
 0x285   : > { %v3860_v40 = vpop.f32.mrf.mxu3 }
 0x286   : > { %v4444_v5 = vmax.f32 %v4412_v63, 0.0  ;;  %v3915_v2 = vadd.f32 %v3860_v40, %v3233_v9 }
 0x288   : > { %v4475_v28 = vadd.f32 %v4474_v31, %v4444_v5  ;;  %v4341_v23 = vadd.f32 %v4286_v26, %v3915_v2  ;;  %v3181_v55 = vpop.f32.mrf.mxu2  ;;  %v2868_v43 = vpop.f32.mrf.mxu1  ;;  %v7243_v31 = vld [vmem:[%s7318_s2] ss:$0 sm:$0xff] }
 0x289   : > { %v3234_v22 = vadd.f32 %v3181_v55, %v2919_v16  ;;  %v2920_v61 = vadd.f32 %v2868_v43, %v6739_v49 }
 0x28a   : > { %v4377_v41 = vmul.f32 %v6995_v27, %v4341_v23 }
 0x28b   : > { %v4289_v34 = vpop.f32.mrf.mxu0 }
 0x28c   : > { %v4413_v20 = vadd.f32 %v7010_v48, %v4377_v41 }
 0x28d   : > { %v3863_v8 = vpop.f32.mrf.mxu3 }
 0x28e   : > { %v4445_v35 = vmax.f32 %v4413_v20, 0.0  ;;  %v3916_v53 = vadd.f32 %v3863_v8, %v3234_v22  ;;  %v7252_v22 = vld [vmem:[%s7319_s3] ss:$0 sm:$0xff] }
 0x290   : > { %v4476_v10 = vadd.f32 %v4475_v28, %v4445_v35  ;;  %v4342_v36 = vadd.f32 %v4289_v34, %v3916_v53  ;;  %v3183_v47 = vpop.f32.mrf.mxu2  ;;  %v2871_v18 = vpop.f32.mrf.mxu1 }
 0x291   : > { %v3235_v0 = vadd.f32 %v3183_v47, %v2920_v61  ;;  %v2921_v32 = vadd.f32 %v2871_v18, %v6753_v17 }
 0x292   : > { %v4378_v25 = vmul.f32 %v6995_v27, %v4342_v36 }
 0x293   : > { %v4291_v51 = vpop.f32.mrf.mxu0 }
 0x294   : > { %v4414_v11 = vadd.f32 %v7010_v48, %v4378_v25 }
 0x295   : > { %v3865_v38 = vpop.f32.mrf.mxu3 }
 0x296   : > { %v4446_v37 = vmax.f32 %v4414_v11, 0.0  ;;  %v3917_v49 = vadd.f32 %v3865_v38, %v3235_v0 }
 0x298   : > { %v4477_v29 = vadd.f32 %v4476_v10, %v4446_v37  ;;  %v4343_v19 = vadd.f32 %v4291_v51, %v3917_v49  ;;  %v3186_v24 = vpop.f32.mrf.mxu2  ;;  %v2873_v54 = vpop.f32.mrf.mxu1 }
 0x299   : > { %v3236_v59 = vadd.f32 %v3186_v24, %v2921_v32  ;;  %v2922_v13 = vadd.f32 %v2873_v54, %v6776_v14 }
 0x29a   : > { %v4379_v57 = vmul.f32 %v6995_v27, %v4343_v19 }
 0x29b   : > { %v4294_v4 = vpop.f32.mrf.mxu0 }
 0x29c   : > { %v4415_v3 = vadd.f32 %v7010_v48, %v4379_v57 }
 0x29d   : > { %v3868_v46 = vpop.f32.mrf.mxu3 }
 0x29e   : > { %v4447_v45 = vmax.f32 %v4415_v3, 0.0  ;;  %v3918_v7 = vadd.f32 %v3868_v46, %v3236_v59 }
 0x2a0   : > { %v4478_v42 = vadd.f32 %v4477_v29, %v4447_v45  ;;  %v4344_v17 = vadd.f32 %v4294_v4, %v3918_v7  ;;  %v3188_v33 = vpop.f32.mrf.mxu2  ;;  %v2876_v52 = vpop.f32.mrf.mxu1 }
 0x2a1   : > { %v3237_v27 = vadd.f32 %v3188_v33, %v2922_v13  ;;  %v2923_v14 = vadd.f32 %v2876_v52, %v6791_v21 }
 0x2a2   : > { %v4380_v30 = vmul.f32 %v7243_v31, %v4344_v17 }
 0x2a3   : > { %v4296_v9 = vpop.f32.mrf.mxu0 }
 0x2a4   : > { %v4416_v1 = vadd.f32 %v7010_v48, %v4380_v30 }
 0x2a5   : > { %v3870_v60 = vpop.f32.mrf.mxu3 }
 0x2a6   : > { %v4448_v26 = vmax.f32 %v4416_v1, 0.0  ;;  %v3919_v16 = vadd.f32 %v3870_v60, %v3237_v27 }
 0x2a8   : > { %v4479_v63 = vadd.f32 %v4478_v42, %v4448_v26  ;;  %v4345_v40 = vadd.f32 %v4296_v9, %v3919_v16  ;;  %v3191_v5 = vpop.f32.mrf.mxu2  ;;  %v2878_v23 = vpop.f32.mrf.mxu1 }
 0x2a9   : > { %v3238_v28 = vadd.f32 %v3191_v5, %v2923_v14  ;;  %v2924_v21 = vadd.f32 %v2878_v23, %v6817_v12 }
 0x2aa   : > { %v4381_v2 = vmul.f32 %v7243_v31, %v4345_v40 }
 0x2ab   : > { %v4299_v55 = vpop.f32.mrf.mxu0 }
 0x2ac   : > { %v4417_v48 = vadd.f32 %v7252_v22, %v4381_v2 }
 0x2ad   : > { %v3873_v41 = vpop.f32.mrf.mxu3 }
 0x2ae   : > { %v4449_v43 = vmax.f32 %v4417_v48, 0.0  ;;  %v3920_v34 = vadd.f32 %v3873_v41, %v3238_v28 }
 0x2b0   : > { %v4480_v61 = vadd.f32 %v4479_v63, %v4449_v43  ;;  %v4346_v20 = vadd.f32 %v4299_v55, %v3920_v34  ;;  %v3193_v8 = vpop.f32.mrf.mxu2  ;;  %v2881_v10 = vpop.f32.mrf.mxu1 }
 0x2b1   : > { %v3239_v53 = vadd.f32 %v3193_v8, %v2924_v21  ;;  %v2925_v11 = vadd.f32 %v2881_v10, %v6831_v58 }
 0x2b2   : > { %v4382_v35 = vmul.f32 %v7243_v31, %v4346_v20 }
 0x2b3   : > { %v4301_v36 = vpop.f32.mrf.mxu0 }
 0x2b4   : > { %v4418_v47 = vadd.f32 %v7252_v22, %v4382_v35 }
 0x2b5   : > { %v3875_v0 = vpop.f32.mrf.mxu3 }
 0x2b6   : > { %v4450_v25 = vmax.f32 %v4418_v47, 0.0  ;;  %v3921_v18 = vadd.f32 %v3875_v0, %v3239_v53 }
 0x2b8   : > { %v4481_v51 = vadd.f32 %v4480_v61, %v4450_v25  ;;  %v4347_v32 = vadd.f32 %v4301_v36, %v3921_v18  ;;  %v3196_v38 = vpop.f32.mrf.mxu2  ;;  %v2883_v12 = vpop.f32.mrf.mxu1 }
 0x2b9   : > { %v3240_v49 = vadd.f32 %v3196_v38, %v2925_v11  ;;  %v2926_v3 = vadd.f32 %v2883_v12, %v6854_v6 }
 0x2ba   : > { %v4383_v37 = vmul.f32 %v7243_v31, %v4347_v32 }
 0x2bb   : > { %v4304_v29 = vpop.f32.mrf.mxu0 }
 0x2bc   : > { %v4419_v19 = vadd.f32 %v7252_v22, %v4383_v37 }
 0x2bd   : > { %v3878_v24 = vpop.f32.mrf.mxu3 }
 0x2be   : > { %v4451_v59 = vmax.f32 %v4419_v19, 0.0  ;;  %v3922_v57 = vadd.f32 %v3878_v24, %v3240_v49 }
 0x2c0   : > { %v4482_v54 = vadd.f32 %v4481_v51, %v4451_v59  ;;  %v4348_v4 = vadd.f32 %v4304_v29, %v3922_v57  ;;  %v3198_v46 = vpop.f32.mrf.mxu2  ;;  %v2886_v58 = vpop.f32.mrf.mxu1 }
 0x2c1   : > { %v3241_v7 = vadd.f32 %v3198_v46, %v2926_v3  ;;  %v2927_v9 = vadd.f32 %v2886_v58, %v6869_v44 }
 0x2c2   : > { %v4384_v45 = vmul.f32 %v7243_v31, %v4348_v4 }
 0x2c3   : > { %v4306_v42 = vpop.f32.mrf.mxu0 }
 0x2c4   : > { %v4420_v17 = vadd.f32 %v7252_v22, %v4384_v45 }
 0x2c5   : > { %v3880_v13 = vpop.f32.mrf.mxu3 }
 0x2c6   : > { %v4452_v33 = vmax.f32 %v4420_v17, 0.0  ;;  %v3923_v30 = vadd.f32 %v3880_v13, %v3241_v7 }
 0x2c8   : > { %v4483_v27 = vadd.f32 %v4482_v54, %v4452_v33  ;;  %v4349_v52 = vadd.f32 %v4306_v42, %v3923_v30  ;;  %v3201_v1 = vpop.f32.mrf.mxu2  ;;  %v2888_v6 = vpop.f32.mrf.mxu1 }
 0x2c9   : > { %v3242_v26 = vadd.f32 %v3201_v1, %v2927_v9  ;;  %v2928_v23 = vadd.f32 %v2888_v6, %v6895_v62 }
 0x2ca   : > { %v4385_v60 = vmul.f32 %v7243_v31, %v4349_v52 }
 0x2cb   : > { %v4309_v16 = vpop.f32.mrf.mxu0 }
 0x2cc   : > { %v4421_v63 = vadd.f32 %v7252_v22, %v4385_v60 }
 0x2cd   : > { %v3883_v40 = vpop.f32.mrf.mxu3 }
 0x2ce   : > { %v4453_v14 = vmax.f32 %v4421_v63, 0.0  ;;  %v3924_v5 = vadd.f32 %v3883_v40, %v3242_v26 }
 0x2d0   : > { %v4484_v2 = vadd.f32 %v4483_v27, %v4453_v14  ;;  %v4350_v28 = vadd.f32 %v4309_v16, %v3924_v5  ;;  %v3203_v55 = vpop.f32.mrf.mxu2  ;;  %v2891_v44 = vpop.f32.mrf.mxu1 }
 0x2d1   : > { %v3243_v41 = vadd.f32 %v3203_v55, %v2928_v23  ;;  %v2929_v53 = vadd.f32 %v2891_v44, %v6909_v50 }
 0x2d2   : > { %v4386_v48 = vmul.f32 %v7243_v31, %v4350_v28 }
 0x2d3   : > { %v4311_v43 = vpop.f32.mrf.mxu0 }
 0x2d4   : > { %v4422_v34 = vadd.f32 %v7252_v22, %v4386_v48 }
 0x2d5   : > { %v3885_v61 = vpop.f32.mrf.mxu3 }
 0x2d6   : > { %v4454_v20 = vmax.f32 %v4422_v34, 0.0  ;;  %v3925_v21 = vadd.f32 %v3885_v61, %v3243_v41 }
 0x2d8   : > { %v4485_v8 = vadd.f32 %v4484_v2, %v4454_v20  ;;  %v4351_v35 = vadd.f32 %v4311_v43, %v3925_v21  ;;  %v3206_v10 = vpop.f32.mrf.mxu2  ;;  %v2893_v62 = vpop.f32.mrf.mxu1 }
 0x2d9   : > { %v3244_v47 = vadd.f32 %v3206_v10, %v2929_v53  ;;  %v2930_v37 = vadd.f32 %v2893_v62, %v6932_v15 }
 0x2da   : > { %v4387_v36 = vmul.f32 %v7243_v31, %v4351_v35 }
 0x2db   : > { %v4314_v0 = vpop.f32.mrf.mxu0 }
 0x2dc   : > { %v4423_v25 = vadd.f32 %v7252_v22, %v4387_v36 }
 0x2dd   : > { %v3888_v18 = vpop.f32.mrf.mxu3 }
 0x2de   : > { %v4455_v51 = vmax.f32 %v4423_v25, 0.0  ;;  %v3926_v32 = vadd.f32 %v3888_v18, %v3244_v47 }
 0x2e0   : > { %v4486_v11 = vadd.f32 %v4485_v8, %v4455_v51  ;;  %v4352_v38 = vadd.f32 %v4314_v0, %v3926_v32  ;;  %v3208_v49 = vpop.f32.mrf.mxu2  ;;  %v2896_v50 = vpop.f32.mrf.mxu1 }
 0x2e1   : > { %v3245_v29 = vadd.f32 %v3208_v49, %v2930_v37  ;;  %v2931_v46 = vadd.f32 %v2896_v50, %v6947_v39  ;;  %v5737_v39 = vmov 256.0  }
 0x2e2   : > { %v4388_v12 = vmul.f32 %v7243_v31, %v4352_v38  ;;  %5616 = vrcp.f32 %v5737_v39 }
 0x2e3   : > { %v4316_v19 = vpop.f32.mrf.mxu0 }
 0x2e4   : > { %v4424_v24 = vadd.f32 %v7252_v22, %v4388_v12 }
 0x2e5   : > { %v3890_v59 = vpop.f32.mrf.mxu3 }
 0x2e6   : > { %v4456_v57 = vmax.f32 %v4424_v24, 0.0  ;;  %v3927_v54 = vadd.f32 %v3890_v59, %v3245_v29 }
 0x2e8   : > { %v4487_v4 = vadd.f32 %v4486_v11, %v4456_v57  ;;  %v4353_v3 = vadd.f32 %v4316_v19, %v3927_v54  ;;  %v3211_v45 = vpop.f32.mrf.mxu2  ;;  %v2898_v42 = vpop.f32.mrf.mxu1 }
 0x2e9   : > { %v3246_v58 = vadd.f32 %v3211_v45, %v2931_v46  ;;  %v2932_v9 = vadd.f32 %v2898_v42, %v6973_v56  ;;  %v5617_v5 = vpop.eup %5616 }
 0x2ea   : > { %v4389_v7 = vmul.f32 %v7243_v31, %v4353_v3  ;;  %v4498_v56 = vmul.f32 256.0, %v5617_v5  ;;  %vm4502_vm6 = vweird.f32 %v5617_v5 }
 0x2eb   : > { %v4319_v17 = vpop.f32.mrf.mxu0 }
 0x2ec   : > { %v4425_v15 = vadd.f32 %v7252_v22, %v4389_v7  ;;  %v4499_v41 = vsub.f32 1.0, %v4498_v56 }
 0x2ed   : > { %v3893_v13 = vpop.f32.mrf.mxu3 }
 0x2ee   : > { %v4457_v33 = vmax.f32 %v4425_v15, 0.0  ;;  %v3928_v30 = vadd.f32 %v3893_v13, %v3246_v58  ;;  %v4500_v34 = vmul.f32 %v5617_v5, %v4499_v41 }
 0x2f0   : > { %v4488_v27 = vadd.f32 %v4487_v4, %v4457_v33  ;;  %v4354_v52 = vadd.f32 %v4319_v17, %v3928_v30  ;;  %v3213_v1 = vpop.f32.mrf.mxu2  ;;  %v4501_v21 = vadd.f32 %v5617_v5, %v4500_v34 }
 0x2f1   : > { %v3247_v26 = vadd.f32 %v3213_v1, %v2932_v9 }
 0x2f2   : > { %v4390_v60 = vmul.f32 %v7243_v31, %v4354_v52  ;;  %v4503_v35 = vsel %vm4502_vm6, %v5617_v5, %v4501_v21 }
 0x2f3   : > { %v4321_v14 = vpop.f32.mrf.mxu0 }
 0x2f4   : > { %v4426_v6 = vadd.f32 %v7252_v22, %v4390_v60 }
 0x2f5   : > { %v3895_v16 = vpop.f32.mrf.mxu3 }
 0x2f6   : > { %v4458_v63 = vmax.f32 %v4426_v6, 0.0  ;;  %v3929_v40 = vadd.f32 %v3895_v16, %v3247_v26 }
 0x2f8   : > { %v4489_v2 = vadd.f32 %v4488_v27, %v4458_v63  ;;  %v4355_v28 = vadd.f32 %v4321_v14, %v3929_v40 }
 0x2fa   : > { %v4391_v23 = vmul.f32 %v7243_v31, %v4355_v28 }
 0x2fc   : > { %v4427_v55 = vadd.f32 %v7252_v22, %v4391_v23 }
 0x2fe   : > { %v4459_v48 = vmax.f32 %v4427_v55, 0.0 }
 0x300   : > { %v4490_v44 = vadd.f32 %v4489_v2, %v4459_v48 }
 0x302   : > { %v4491_v43 = vrot.slane %v4490_v44, 4 }
 0x304   : > { %v4492_v61 = vadd.f32 %v4491_v43, %v4490_v44 }
 0x306   : > { %v4493_v20 = vrot.slane %v4492_v61, 2 }
 0x308   : > { %v4494_v8 = vadd.f32 %v4493_v20, %v4492_v61 }
 0x30a   : > { %v4495_v31 = vrot.slane %v4494_v8, 1 }
 0x30c   : > { %v4496_v22 = vadd.f32 %v4495_v31, %v4494_v8 }
 0x30e   : > { %v4504_v53 = vmul.f32 %v4503_v35, %v4496_v22 }
 0x310   : > { %4505 = vst [vmem:[%s189_s23] sm:$0x1] %v4504_v53 }
 0x311   : > { %5700 = shalt.err (!%p5697_p3)
}
 0x312   : > { %5574 = dma.vmem_to_hbm [thread:$0]  (%p5801_p5), %s4518_s27, 16, %s4520_s28, %s4507_s29  }
 0x313 PF: > { %p5580_p4 = scmp.ge.s32.totalorder %s5735_s18, 2  ;;  %s4531_s9 = sand.u32 1, %s5723_s15  }
 0x314   : > { %s4532_s10 = scalar_lea.sflag [#allocation3], %s4531_s9 }
 0x315   : > { %p5577_p7 = pnand %p5580_p4, %p5805_p6 }
 0x317   : > { %p5578_p8 = pneg %p5577_p7 }
 0x319   : > { %5718 = dma.done.wait (%p5578_p8), %s4532_s10, 16  }
 0x31a   : > { %5720 = vsyncadd (%p5578_p8), %s4532_s10, 4294967280  ;;  %p14_p9 = scmp.ge.s32.totalorder %s5788_s21, 4   ;;  %s7331_s15 = smov %s5727_s16 }
 0x31b   : > { %s7332_s16 = smov %s5731_s17  ;;  %s7333_s17 = smov %s5799_s24 }
 0x31c   : > { %s7334_s18 = smov %s5788_s21  ;;  %16 = sbr.rel (!%p14_p9) target bundleno = 3 (0x3), region = 81 }
 0x321   :  { %4537 = vsyncpa [#allocation3], 1 }
 0x322   :  { %4539 = vsyncpa [#allocation3 + $0x1], 1 }

</bundles_post_ra>
